<compile_context>
chip_gen: v7x
topology: tpu7x:2x2x1
jax: 0.10.0
libtpu: 0.0.40
codegen_flags: <defaults>
</compile_context>

<pallas_src>
import functools

import jax
import jax.numpy as jnp
from jax.experimental import pallas as pl
from jax.experimental.pallas import tpu as pltpu


_SQRT_2_OVER_PI = 0.7978845608028654


def _gelu_tanh(x):
    """tanh-approximate GELU (used identically in kernel and reference)."""
    return 0.5 * x * (1.0 + jnp.tanh(_SQRT_2_OVER_PI * (x + 0.044715 * x * x * x)))


def _dyt(x, n_ref):
    """DyT: gamma * tanh(a * x) + beta.  n_ref rows: [gamma, beta, a] (f32)."""
    gamma = n_ref[0:1, :]
    beta = n_ref[1:2, :]
    a = n_ref[2:3, :]
    xf = x.astype(jnp.float32)
    return (gamma * jnp.tanh(a * xf) + beta).astype(x.dtype)


def _proj(h, w_ref, bias, out_dtype):
    """h @ W + b with f32 accumulation, result cast back to activation dtype."""
    y = jnp.dot(h, w_ref[...], preferred_element_type=jnp.float32) + bias
    return y.astype(out_dtype)


def _mha_heads(q, k, v, scratch_ref, n_heads, head_size):
    """Per-head attention with deferred softmax normalization.

    q: (Sq, D), k/v: (Sk, D), D = n_heads*head_size; the 1/sqrt(hs) scale is
    already folded into q.  Each head's output is written into lane slice
    [h*hs:(h+1)*hs] of the (Sq, D) f32 scratch so the caller can run a single
    full-width W_o matmul.
    """
    for h in range(n_heads):
        lo = h * head_size
        hi = lo + head_size
        qh = q[:, lo:hi]
        kh = k[:, lo:hi]
        vh = v[:, lo:hi]
        # scores: contract the head axis of both operands (no explicit kh.T).
        s = jax.lax.dot_general(
            qh, kh,
            dimension_numbers=(((1,), (1,)), ((), ())),
            preferred_element_type=jnp.float32)
        # numerically-stable softmax, normalization deferred past the PV matmul
        m = jnp.max(s, axis=-1, keepdims=True)
        e = jnp.exp(s - m)
        l = jnp.sum(e, axis=-1, keepdims=True)
        oh = jnp.dot(e.astype(vh.dtype), vh, preferred_element_type=jnp.float32)
        scratch_ref[:, lo:hi] = oh * pl.reciprocal(l, approx=False)


def _decoder_layer_kernel(
    # activations
    x_ref, enc_ref, pos_ref,
    # self-attention block
    n1_ref, wq_s_ref, wk_s_ref, wv_s_ref, b_s_ref, wo_s_ref, bo_s_ref,
    # cross-attention block
    n2_ref, wq_c_ref, wk_c_ref, wv_c_ref, b_c_ref, wo_c_ref, bo_c_ref,
    # feed-forward block
    n3_ref, w1_ref, b1_ref, w2_ref, b2_ref,
    # output
    o_ref,
    # scratch
    attn_ref,
    *, n_heads, head_size):
    x = x_ref[0]
    x = x + pos_ref[0].astype(x.dtype)           # positional encoding
    dtype = x.dtype

    # ---- self-attention: x = x + W_o(MHA(DyT1(x))) ----
    h = _dyt(x, n1_ref)
    q = _proj(h, wq_s_ref, b_s_ref[0:1, :], dtype)   # scale pre-folded into Wq/bq
    k = _proj(h, wk_s_ref, b_s_ref[1:2, :], dtype)
    v = _proj(h, wv_s_ref, b_s_ref[2:3, :], dtype)
    _mha_heads(q, k, v, attn_ref, n_heads, head_size)
    attn = jnp.dot(attn_ref[...].astype(dtype), wo_s_ref[...],
                   preferred_element_type=jnp.float32) + bo_s_ref[...]
    x = x + attn.astype(dtype)

    # ---- cross-attention: x = x + W_o(MHCA(DyT2(x), enc)) ----
    h = _dyt(x, n2_ref)
    enc = enc_ref[0]
    qc = _proj(h, wq_c_ref, b_c_ref[0:1, :], dtype)
    kc = _proj(enc, wk_c_ref, b_c_ref[1:2, :], dtype)
    vc = _proj(enc, wv_c_ref, b_c_ref[2:3, :], dtype)
    _mha_heads(qc, kc, vc, attn_ref, n_heads, head_size)
    cattn = jnp.dot(attn_ref[...].astype(dtype), wo_c_ref[...],
                    preferred_element_type=jnp.float32) + bo_c_ref[...]
    x = x + cattn.astype(dtype)

    # ---- feed-forward: x = x + W2(gelu(W1(DyT3(x)))) ----
    h = _dyt(x, n3_ref)
    f1 = jnp.dot(h, w1_ref[...], preferred_element_type=jnp.float32) + b1_ref[...]
    g = _gelu_tanh(f1).astype(dtype)
    f2 = jnp.dot(g, w2_ref[...], preferred_element_type=jnp.float32) + b2_ref[...]
    x = x + f2.astype(dtype)

    o_ref[0] = x.astype(o_ref.dtype)


def prepare_decoder_params(params, n_heads, compute_dtype=None):
    """One-time parameter preprocessing, hoisted out of the per-call path.

    Folds 1/sqrt(head_size) into the query projections, stacks biases/norm rows
    and (optionally) casts all matmul weights to `compute_dtype` (e.g. bf16).
    Biases and DyT parameters stay in f32 (added to f32 accumulators).
    """
    D = params['self']['wq'].shape[0]
    hs = D // n_heads
    scale = 1.0 / (hs ** 0.5)

    def w(a):
        return a if compute_dtype is None else a.astype(compute_dtype)

    def norm_pack(n):  # rows: [gamma, beta, a]
        return jnp.stack(
            [n['gamma'], n['beta'], jnp.broadcast_to(n['a'], (D,))]
        ).astype(jnp.float32)

    sa, ca, ff = params['self'], params['cross'], params['ffn']
    cdt = compute_dtype if compute_dtype is not None else params['pos'].dtype
    return dict(
        dtype=cdt,
        pos=w(params['pos']),
        n1=norm_pack(params['norm1']),
        n2=norm_pack(params['norm2']),
        n3=norm_pack(params['norm3']),
        wq_s=w(sa['wq'] * scale), wk_s=w(sa['wk']), wv_s=w(sa['wv']),
        b_s=jnp.stack([sa['bq'] * scale, sa['bk'], sa['bv']]).astype(jnp.float32),
        wo_s=w(sa['wo']), bo_s=sa['bo'][None, :].astype(jnp.float32),
        wq_c=w(ca['wq'] * scale), wk_c=w(ca['wk']), wv_c=w(ca['wv']),
        b_c=jnp.stack([ca['bq'] * scale, ca['bk'], ca['bv']]).astype(jnp.float32),
        wo_c=w(ca['wo']), bo_c=ca['bo'][None, :].astype(jnp.float32),
        w1=w(ff['w1']), b1=ff['b1'][None, :].astype(jnp.float32),
        w2=w(ff['w2']), b2=ff['b2'][None, :].astype(jnp.float32),
    )


def _vmem_limit_bytes():
    """~3/4 of physical VMEM, capped at 96 MiB (=> ~48 MiB on v7x)."""
    try:
        cap = pltpu.get_tpu_info().vmem_capacity_bytes
    except Exception:
        cap = 128 * 1024 * 1024
    return max(32 * 1024 * 1024, min((int(cap) * 3) // 4, 96 * 1024 * 1024))


def transformer_decoder_layer(x, enc, prep, n_heads):
    """x: (B, S, d_model), enc: (B, Se, d_model) -> (B, S, d_model)."""
    cdt = prep['dtype']
    x = x.astype(cdt)
    enc = enc.astype(cdt)
    B, S, D = x.shape
    Se = enc.shape[1]
    hs = D // n_heads
    hidden = prep['w1'].shape[1]

    kernel = functools.partial(_decoder_layer_kernel,
                               n_heads=n_heads, head_size=hs)

    def make_specs(weight_mode):
        # Grid-invariant operands: single-buffer them when supported.
        kw = {} if weight_mode is None else dict(pipeline_mode=weight_mode)

        def inv(shape):
            return pl.BlockSpec(shape, lambda b: (0,) * len(shape), **kw)

        x_spec = pl.BlockSpec((1, S, D), lambda b: (b, 0, 0))
        enc_spec = pl.BlockSpec((1, Se, D), lambda b: (b, 0, 0))
        in_specs = [
            x_spec,                      # x
            enc_spec,                    # encoder output
            inv((1, S, D)),              # positional embedding
            inv((3, D)),                 # norm1 (gamma/beta/a)
            inv((D, D)),                 # wq_self (scaled)
            inv((D, D)),                 # wk_self
            inv((D, D)),                 # wv_self
            inv((3, D)),                 # bq/bk/bv self
            inv((D, D)),                 # wo_self
            inv((1, D)),                 # bo_self
            inv((3, D)),                 # norm2
            inv((D, D)),                 # wq_cross (scaled)
            inv((D, D)),                 # wk_cross
            inv((D, D)),                 # wv_cross
            inv((3, D)),                 # bq/bk/bv cross
            inv((D, D)),                 # wo_cross
            inv((1, D)),                 # bo_cross
            inv((3, D)),                 # norm3
            inv((D, hidden)),            # ffn w1
            inv((1, hidden)),            # ffn b1
            inv((hidden, D)),            # ffn w2
            inv((1, D)),                 # ffn b2
        ]
        out_spec = pl.BlockSpec((1, S, D), lambda b: (b, 0, 0))
        return in_specs, out_spec

    operands = (x, enc, prep['pos'],
                prep['n1'], prep['wq_s'], prep['wk_s'], prep['wv_s'],
                prep['b_s'], prep['wo_s'], prep['bo_s'],
                prep['n2'], prep['wq_c'], prep['wk_c'], prep['wv_c'],
                prep['b_c'], prep['wo_c'], prep['bo_c'],
                prep['n3'], prep['w1'], prep['b1'], prep['w2'], prep['b2'])

    last_err = None
    # Try single-buffered invariant weights first; fall back to default
    # double-buffering if this JAX build rejects pipeline_mode=Buffered(1).
    for weight_mode in (pl.Buffered(1), None):
        in_specs, out_spec = make_specs(weight_mode)
        try:
            return pl.pallas_call(
                kernel,
                out_shape=jax.ShapeDtypeStruct((B, S, D), cdt),
                grid_spec=pltpu.PrefetchScalarGridSpec(
                    num_scalar_prefetch=0,
                    grid=(B,),
                    in_specs=in_specs,
                    out_specs=out_spec,
                    scratch_shapes=[pltpu.VMEM((S, D), jnp.float32)],
                ),
                compiler_params=pltpu.CompilerParams(
                    dimension_semantics=("parallel",),
                    vmem_limit_bytes=_vmem_limit_bytes(),
                ),
            )(*operands)
        except Exception as e:  # fall back to default buffering
            last_err = e
    raise last_err


def init_decoder_params(key, d_model, n_heads, patch_num, r_mlp=4,
                        dtype=jnp.float32):
    """Parameters mirroring the PyTorch module.

    Linear weights are stored as (in_features, out_features) (already
    transposed relative to nn.Linear.weight) so x @ W + b applies directly.
    Per-head q/k/v Linears are stored fused along the output dim: head h owns
    columns [h*head_size : (h+1)*head_size].
    """
    D = d_model
    hidden = D * r_mlp
    keys = jax.random.split(key, 32)
    ki = iter(keys)

    def linear(fan_in, fan_out):
        bound = 1.0 / (fan_in ** 0.5)
        w = jax.random.uniform(next(ki), (fan_in, fan_out), dtype, -bound, bound)
        b = jax.random.uniform(next(ki), (fan_out,), dtype, -bound, bound)
        return w, b

    def norm():
        # DyT init is a=0.5, gamma=1, beta=0; perturb gamma/beta so the test
        # actually exercises them.
        return {
            'a': jnp.full((1,), 0.5, dtype),
            'gamma': 1.0 + 0.1 * jax.random.normal(next(ki), (D,), dtype),
            'beta': 0.1 * jax.random.normal(next(ki), (D,), dtype),
        }

    pos = jax.random.normal(next(ki), (1, patch_num, D), dtype)
    norm1, norm2, norm3 = norm(), norm(), norm()

    def attn_block():
        wq, bq = linear(D, D)
        wk, bk = linear(D, D)
        wv, bv = linear(D, D)
        wo, bo = linear(D, D)
        return dict(wq=wq, bq=bq, wk=wk, bk=bk, wv=wv, bv=bv, wo=wo, bo=bo)

    self_p = attn_block()
    cross_p = attn_block()
    w1, b1 = linear(D, hidden)
    w2, b2 = linear(hidden, D)
    ffn = dict(w1=w1, b1=b1, w2=w2, b2=b2)

    return dict(pos=pos, norm1=norm1, norm2=norm2, norm3=norm3,
                self=self_p, cross=cross_p, ffn=ffn)


def _reference(x, enc, params, n_heads):
    """Plain-JAX reference mirroring the PyTorch forward (unfolded scale)."""
    D = x.shape[-1]
    hs = D // n_heads
    p = params

    def dyt(v, n):
        return n['gamma'] * jnp.tanh(n['a'] * v) + n['beta']

    def heads_attn(Q, K, V):
        outs = []
        for i in range(n_heads):
            sl = slice(i * hs, (i + 1) * hs)
            q, k, v = Q[..., sl], K[..., sl], V[..., sl]
            att = q @ jnp.swapaxes(k, -1, -2)
            att = att / (hs ** 0.5)
            att = jax.nn.softmax(att, axis=-1)
            outs.append(att @ v)
        return jnp.concatenate(outs, axis=-1)

    x = x + p['pos']
    # self-attention
    h = dyt(x, p['norm1'])
    s = p['self']
    Q = h @ s['wq'] + s['bq']
    K = h @ s['wk'] + s['bk']
    V = h @ s['wv'] + s['bv']
    x = x + (heads_attn(Q, K, V) @ s['wo'] + s['bo'])
    # cross-attention
    h = dyt(x, p['norm2'])
    c = p['cross']
    Qc = h @ c['wq'] + c['bq']
    Kc = enc @ c['wk'] + c['bk']
    Vc = enc @ c['wv'] + c['bv']
    x = x + (heads_attn(Qc, Kc, Vc) @ c['wo'] + c['bo'])
    # feed-forward
    h = dyt(x, p['norm3'])
    f = p['ffn']
    x = x + (_gelu_tanh(h @ f['w1'] + f['b1']) @ f['w2'] + f['b2'])
    return x


if __name__ == "__main__":
    # Small shapes consistent with the module's forward:
    #   x: (batch, patch_num, d_model), encoder_output: (batch, seq_kv, d_model)
    B, patch_num, d_model, n_heads, r_mlp = 2, 8, 32, 4, 4
    enc_len = 8

    key = jax.random.PRNGKey(0)
    kx, ke, kp = jax.random.split(key, 3)
    x = jax.random.normal(kx, (B, patch_num, d_model), jnp.float32)
    enc = jax.random.normal(ke, (B, enc_len, d_model), jnp.float32)
    params = init_decoder_params(kp, d_model, n_heads, patch_num, r_mlp)

    ref = _reference(x, enc, params, n_heads)

    # f32 path: strict check against the plain-JAX reference.
    prep32 = prepare_decoder_params(params, n_heads)
    out32 = jax.block_until_ready(transformer_decoder_layer(x, enc, prep32, n_heads))
    assert out32.shape == (B, patch_num, d_model), out32.shape
    err32 = float(jnp.max(jnp.abs(out32 - ref)))
    assert err32 < 1e-4, err32

    # bf16 path (production configuration): bf16 MXU inputs, f32 accumulation.
    prep16 = prepare_decoder_params(params, n_heads, compute_dtype=jnp.bfloat16)
    out16 = jax.block_until_ready(transformer_decoder_layer(x, enc, prep16, n_heads))
    err16 = float(jnp.max(jnp.abs(out16.astype(jnp.float32) - ref)))
    assert err16 < 0.25, err16

    print("KERNEL_OK")
</pallas_src>

<mosaic_0001>
module attributes {stable_mosaic.version = 11 : i64} {
  func.func @_decoder_layer_kernel(%arg0: i32, %arg1: memref<1x8x32xf32, #tpu.memory_space<vmem>>, %arg2: memref<1x8x32xf32, #tpu.memory_space<vmem>>, %arg3: memref<1x8x32xf32, #tpu.memory_space<vmem>>, %arg4: memref<3x32xf32, #tpu.memory_space<vmem>>, %arg5: memref<32x32xf32, #tpu.memory_space<vmem>>, %arg6: memref<32x32xf32, #tpu.memory_space<vmem>>, %arg7: memref<32x32xf32, #tpu.memory_space<vmem>>, %arg8: memref<3x32xf32, #tpu.memory_space<vmem>>, %arg9: memref<32x32xf32, #tpu.memory_space<vmem>>, %arg10: memref<1x32xf32, #tpu.memory_space<vmem>>, %arg11: memref<3x32xf32, #tpu.memory_space<vmem>>, %arg12: memref<32x32xf32, #tpu.memory_space<vmem>>, %arg13: memref<32x32xf32, #tpu.memory_space<vmem>>, %arg14: memref<32x32xf32, #tpu.memory_space<vmem>>, %arg15: memref<3x32xf32, #tpu.memory_space<vmem>>, %arg16: memref<32x32xf32, #tpu.memory_space<vmem>>, %arg17: memref<1x32xf32, #tpu.memory_space<vmem>>, %arg18: memref<3x32xf32, #tpu.memory_space<vmem>>, %arg19: memref<32x128xf32, #tpu.memory_space<vmem>>, %arg20: memref<1x128xf32, #tpu.memory_space<vmem>>, %arg21: memref<128x32xf32, #tpu.memory_space<vmem>>, %arg22: memref<1x32xf32, #tpu.memory_space<vmem>>, %arg23: memref<1x8x32xf32, #tpu.memory_space<vmem>>, %arg24: memref<8x32xf32, #tpu.memory_space<vmem>>) attributes {dimension_semantics = [#tpu.dimension_semantics<parallel>], iteration_bounds = array<i64: 2>, scalar_prefetch = 0 : i64, scratch_operands = 1 : i64, tpu.core_type = #tpu.core_type<tc>, window_params = [{transform_indices = @transform_0, window_bounds = array<i64: 1, 8, 32>}, {transform_indices = @transform_1, window_bounds = array<i64: 1, 8, 32>}, {pipeline_mode = #tpu.pipeline_mode<synchronous>, transform_indices = @transform_2, window_bounds = array<i64: 1, 8, 32>}, {pipeline_mode = #tpu.pipeline_mode<synchronous>, transform_indices = @transform_3, window_bounds = array<i64: 3, 32>}, {pipeline_mode = #tpu.pipeline_mode<synchronous>, transform_indices = @transform_4, window_bounds = array<i64: 32, 32>}, {pipeline_mode = #tpu.pipeline_mode<synchronous>, transform_indices = @transform_5, window_bounds = array<i64: 32, 32>}, {pipeline_mode = #tpu.pipeline_mode<synchronous>, transform_indices = @transform_6, window_bounds = array<i64: 32, 32>}, {pipeline_mode = #tpu.pipeline_mode<synchronous>, transform_indices = @transform_7, window_bounds = array<i64: 3, 32>}, {pipeline_mode = #tpu.pipeline_mode<synchronous>, transform_indices = @transform_8, window_bounds = array<i64: 32, 32>}, {pipeline_mode = #tpu.pipeline_mode<synchronous>, transform_indices = @transform_9, window_bounds = array<i64: 1, 32>}, {pipeline_mode = #tpu.pipeline_mode<synchronous>, transform_indices = @transform_10, window_bounds = array<i64: 3, 32>}, {pipeline_mode = #tpu.pipeline_mode<synchronous>, transform_indices = @transform_11, window_bounds = array<i64: 32, 32>}, {pipeline_mode = #tpu.pipeline_mode<synchronous>, transform_indices = @transform_12, window_bounds = array<i64: 32, 32>}, {pipeline_mode = #tpu.pipeline_mode<synchronous>, transform_indices = @transform_13, window_bounds = array<i64: 32, 32>}, {pipeline_mode = #tpu.pipeline_mode<synchronous>, transform_indices = @transform_14, window_bounds = array<i64: 3, 32>}, {pipeline_mode = #tpu.pipeline_mode<synchronous>, transform_indices = @transform_15, window_bounds = array<i64: 32, 32>}, {pipeline_mode = #tpu.pipeline_mode<synchronous>, transform_indices = @transform_16, window_bounds = array<i64: 1, 32>}, {pipeline_mode = #tpu.pipeline_mode<synchronous>, transform_indices = @transform_17, window_bounds = array<i64: 3, 32>}, {pipeline_mode = #tpu.pipeline_mode<synchronous>, transform_indices = @transform_18, window_bounds = array<i64: 32, 128>}, {pipeline_mode = #tpu.pipeline_mode<synchronous>, transform_indices = @transform_19, window_bounds = array<i64: 1, 128>}, {pipeline_mode = #tpu.pipeline_mode<synchronous>, transform_indices = @transform_20, window_bounds = array<i64: 128, 32>}, {pipeline_mode = #tpu.pipeline_mode<synchronous>, transform_indices = @transform_21, window_bounds = array<i64: 1, 32>}, {transform_indices = @transform_22, window_bounds = array<i64: 1, 8, 32>}]} {
    %c0 = arith.constant 0 : index
    %c0_0 = arith.constant 0 : index
    %c0_1 = arith.constant 0 : index
    %0 = vector.load %arg1[%c0, %c0_0, %c0_1] : memref<1x8x32xf32, #tpu.memory_space<vmem>>, vector<1x8x32xf32>
    %1 = vector.shape_cast %0 : vector<1x8x32xf32> to vector<8x32xf32>
    %c0_2 = arith.constant 0 : index
    %c0_3 = arith.constant 0 : index
    %c0_4 = arith.constant 0 : index
    %2 = vector.load %arg3[%c0_2, %c0_3, %c0_4] : memref<1x8x32xf32, #tpu.memory_space<vmem>>, vector<1x8x32xf32>
    %3 = vector.shape_cast %2 : vector<1x8x32xf32> to vector<8x32xf32>
    %4 = arith.addf %1, %3 : vector<8x32xf32>
    %c0_5 = arith.constant 0 : index
    %c0_6 = arith.constant 0 : index
    %5 = vector.load %arg4[%c0_5, %c0_6] : memref<3x32xf32, #tpu.memory_space<vmem>>, vector<1x32xf32>
    %c1 = arith.constant 1 : index
    %c0_7 = arith.constant 0 : index
    %6 = vector.load %arg4[%c1, %c0_7] : memref<3x32xf32, #tpu.memory_space<vmem>>, vector<1x32xf32>
    %c2 = arith.constant 2 : index
    %c0_8 = arith.constant 0 : index
    %7 = vector.load %arg4[%c2, %c0_8] : memref<3x32xf32, #tpu.memory_space<vmem>>, vector<1x32xf32>
    %8 = vector.broadcast %7 : vector<1x32xf32> to vector<8x32xf32>
    %9 = arith.mulf %8, %4 : vector<8x32xf32>
    %10 = math.tanh %9 : vector<8x32xf32>
    %11 = vector.broadcast %5 : vector<1x32xf32> to vector<8x32xf32>
    %12 = arith.mulf %11, %10 : vector<8x32xf32>
    %13 = vector.broadcast %6 : vector<1x32xf32> to vector<8x32xf32>
    %14 = arith.addf %12, %13 : vector<8x32xf32>
    %c0_9 = arith.constant 0 : index
    %c0_10 = arith.constant 0 : index
    %15 = vector.load %arg8[%c0_9, %c0_10] : memref<3x32xf32, #tpu.memory_space<vmem>>, vector<1x32xf32>
    %c0_11 = arith.constant 0 : index
    %c0_12 = arith.constant 0 : index
    %16 = vector.load %arg5[%c0_11, %c0_12] : memref<32x32xf32, #tpu.memory_space<vmem>>, vector<32x32xf32>
    %cst = arith.constant dense<0.000000e+00> : vector<8x32xf32>
    %17 = tpu.matmul %14, %16, %cst {dimension_numbers = #tpu.dot_dimension_numbers<[1], [0], [0], [1], [0, 0, 1, 1], [], []>} : vector<8x32xf32>, vector<32x32xf32>, vector<8x32xf32> -> vector<8x32xf32>
    %18 = vector.broadcast %15 : vector<1x32xf32> to vector<8x32xf32>
    %19 = arith.addf %17, %18 : vector<8x32xf32>
    %c1_13 = arith.constant 1 : index
    %c0_14 = arith.constant 0 : index
    %20 = vector.load %arg8[%c1_13, %c0_14] : memref<3x32xf32, #tpu.memory_space<vmem>>, vector<1x32xf32>
    %c0_15 = arith.constant 0 : index
    %c0_16 = arith.constant 0 : index
    %21 = vector.load %arg6[%c0_15, %c0_16] : memref<32x32xf32, #tpu.memory_space<vmem>>, vector<32x32xf32>
    %cst_17 = arith.constant dense<0.000000e+00> : vector<8x32xf32>
    %22 = tpu.matmul %14, %21, %cst_17 {dimension_numbers = #tpu.dot_dimension_numbers<[1], [0], [0], [1], [0, 0, 1, 1], [], []>} : vector<8x32xf32>, vector<32x32xf32>, vector<8x32xf32> -> vector<8x32xf32>
    %23 = vector.broadcast %20 : vector<1x32xf32> to vector<8x32xf32>
    %24 = arith.addf %22, %23 : vector<8x32xf32>
    %c2_18 = arith.constant 2 : index
    %c0_19 = arith.constant 0 : index
    %25 = vector.load %arg8[%c2_18, %c0_19] : memref<3x32xf32, #tpu.memory_space<vmem>>, vector<1x32xf32>
    %c0_20 = arith.constant 0 : index
    %c0_21 = arith.constant 0 : index
    %26 = vector.load %arg7[%c0_20, %c0_21] : memref<32x32xf32, #tpu.memory_space<vmem>>, vector<32x32xf32>
    %cst_22 = arith.constant dense<0.000000e+00> : vector<8x32xf32>
    %27 = tpu.matmul %14, %26, %cst_22 {dimension_numbers = #tpu.dot_dimension_numbers<[1], [0], [0], [1], [0, 0, 1, 1], [], []>} : vector<8x32xf32>, vector<32x32xf32>, vector<8x32xf32> -> vector<8x32xf32>
    %28 = vector.broadcast %25 : vector<1x32xf32> to vector<8x32xf32>
    %29 = arith.addf %27, %28 : vector<8x32xf32>
    %30 = vector.extract_strided_slice %19 {offsets = [0, 0], sizes = [8, 8], strides = [1, 1]} : vector<8x32xf32> to vector<8x8xf32>
    %31 = vector.extract_strided_slice %24 {offsets = [0, 0], sizes = [8, 8], strides = [1, 1]} : vector<8x32xf32> to vector<8x8xf32>
    %32 = vector.extract_strided_slice %29 {offsets = [0, 0], sizes = [8, 8], strides = [1, 1]} : vector<8x32xf32> to vector<8x8xf32>
    %cst_23 = arith.constant dense<0.000000e+00> : vector<8x8xf32>
    %33 = tpu.matmul %30, %31, %cst_23 {dimension_numbers = #tpu.dot_dimension_numbers<[1], [1], [0], [0], [0, 0, 1, 0], [], []>} : vector<8x8xf32>, vector<8x8xf32>, vector<8x8xf32> -> vector<8x8xf32>
    %cst_24 = arith.constant dense<0xFF800000> : vector<8xf32>
    %34 = vector.multi_reduction <maximumf>, %33, %cst_24 [1] : vector<8x8xf32> to vector<8xf32>
    %35 = vector.shape_cast %34 : vector<8xf32> to vector<8x1xf32>
    %36 = vector.broadcast %35 : vector<8x1xf32> to vector<8x8xf32>
    %37 = arith.subf %33, %36 : vector<8x8xf32>
    %38 = math.exp %37 : vector<8x8xf32>
    %cst_25 = arith.constant dense<0.000000e+00> : vector<8xf32>
    %39 = vector.multi_reduction <add>, %38, %cst_25 [1] : vector<8x8xf32> to vector<8xf32>
    %40 = vector.shape_cast %39 : vector<8xf32> to vector<8x1xf32>
    %cst_26 = arith.constant dense<0.000000e+00> : vector<8x8xf32>
    %41 = tpu.matmul %38, %32, %cst_26 {dimension_numbers = #tpu.dot_dimension_numbers<[1], [0], [0], [1], [0, 0, 1, 1], [], []>} : vector<8x8xf32>, vector<8x8xf32>, vector<8x8xf32> -> vector<8x8xf32>
    %42 = tpu.reciprocal %40 : vector<8x1xf32> -> vector<8x1xf32>
    %43 = vector.broadcast %42 : vector<8x1xf32> to vector<8x8xf32>
    %44 = arith.mulf %41, %43 : vector<8x8xf32>
    %c0_27 = arith.constant 0 : index
    %c0_28 = arith.constant 0 : index
    %45 = vector.load %arg24[%c0_27, %c0_28] : memref<8x32xf32, #tpu.memory_space<vmem>>, vector<8x8xf32>
    tpu.vector_store %arg24[%c0_27, %c0_28], %44 {strides = array<i32>} : memref<8x32xf32, #tpu.memory_space<vmem>>, vector<8x8xf32>,
    %46 = vector.extract_strided_slice %19 {offsets = [0, 8], sizes = [8, 8], strides = [1, 1]} : vector<8x32xf32> to vector<8x8xf32>
    %47 = vector.extract_strided_slice %24 {offsets = [0, 8], sizes = [8, 8], strides = [1, 1]} : vector<8x32xf32> to vector<8x8xf32>
    %48 = vector.extract_strided_slice %29 {offsets = [0, 8], sizes = [8, 8], strides = [1, 1]} : vector<8x32xf32> to vector<8x8xf32>
    %cst_29 = arith.constant dense<0.000000e+00> : vector<8x8xf32>
    %49 = tpu.matmul %46, %47, %cst_29 {dimension_numbers = #tpu.dot_dimension_numbers<[1], [1], [0], [0], [0, 0, 1, 0], [], []>} : vector<8x8xf32>, vector<8x8xf32>, vector<8x8xf32> -> vector<8x8xf32>
    %cst_30 = arith.constant dense<0xFF800000> : vector<8xf32>
    %50 = vector.multi_reduction <maximumf>, %49, %cst_30 [1] : vector<8x8xf32> to vector<8xf32>
    %51 = vector.shape_cast %50 : vector<8xf32> to vector<8x1xf32>
    %52 = vector.broadcast %51 : vector<8x1xf32> to vector<8x8xf32>
    %53 = arith.subf %49, %52 : vector<8x8xf32>
    %54 = math.exp %53 : vector<8x8xf32>
    %cst_31 = arith.constant dense<0.000000e+00> : vector<8xf32>
    %55 = vector.multi_reduction <add>, %54, %cst_31 [1] : vector<8x8xf32> to vector<8xf32>
    %56 = vector.shape_cast %55 : vector<8xf32> to vector<8x1xf32>
    %cst_32 = arith.constant dense<0.000000e+00> : vector<8x8xf32>
    %57 = tpu.matmul %54, %48, %cst_32 {dimension_numbers = #tpu.dot_dimension_numbers<[1], [0], [0], [1], [0, 0, 1, 1], [], []>} : vector<8x8xf32>, vector<8x8xf32>, vector<8x8xf32> -> vector<8x8xf32>
    %58 = tpu.reciprocal %56 : vector<8x1xf32> -> vector<8x1xf32>
    %59 = vector.broadcast %58 : vector<8x1xf32> to vector<8x8xf32>
    %60 = arith.mulf %57, %59 : vector<8x8xf32>
    %c0_33 = arith.constant 0 : index
    %c8 = arith.constant 8 : index
    %61 = vector.load %arg24[%c0_33, %c8] : memref<8x32xf32, #tpu.memory_space<vmem>>, vector<8x8xf32>
    tpu.vector_store %arg24[%c0_33, %c8], %60 {strides = array<i32>} : memref<8x32xf32, #tpu.memory_space<vmem>>, vector<8x8xf32>,
    %62 = vector.extract_strided_slice %19 {offsets = [0, 16], sizes = [8, 8], strides = [1, 1]} : vector<8x32xf32> to vector<8x8xf32>
    %63 = vector.extract_strided_slice %24 {offsets = [0, 16], sizes = [8, 8], strides = [1, 1]} : vector<8x32xf32> to vector<8x8xf32>
    %64 = vector.extract_strided_slice %29 {offsets = [0, 16], sizes = [8, 8], strides = [1, 1]} : vector<8x32xf32> to vector<8x8xf32>
    %cst_34 = arith.constant dense<0.000000e+00> : vector<8x8xf32>
    %65 = tpu.matmul %62, %63, %cst_34 {dimension_numbers = #tpu.dot_dimension_numbers<[1], [1], [0], [0], [0, 0, 1, 0], [], []>} : vector<8x8xf32>, vector<8x8xf32>, vector<8x8xf32> -> vector<8x8xf32>
    %cst_35 = arith.constant dense<0xFF800000> : vector<8xf32>
    %66 = vector.multi_reduction <maximumf>, %65, %cst_35 [1] : vector<8x8xf32> to vector<8xf32>
    %67 = vector.shape_cast %66 : vector<8xf32> to vector<8x1xf32>
    %68 = vector.broadcast %67 : vector<8x1xf32> to vector<8x8xf32>
    %69 = arith.subf %65, %68 : vector<8x8xf32>
    %70 = math.exp %69 : vector<8x8xf32>
    %cst_36 = arith.constant dense<0.000000e+00> : vector<8xf32>
    %71 = vector.multi_reduction <add>, %70, %cst_36 [1] : vector<8x8xf32> to vector<8xf32>
    %72 = vector.shape_cast %71 : vector<8xf32> to vector<8x1xf32>
    %cst_37 = arith.constant dense<0.000000e+00> : vector<8x8xf32>
    %73 = tpu.matmul %70, %64, %cst_37 {dimension_numbers = #tpu.dot_dimension_numbers<[1], [0], [0], [1], [0, 0, 1, 1], [], []>} : vector<8x8xf32>, vector<8x8xf32>, vector<8x8xf32> -> vector<8x8xf32>
    %74 = tpu.reciprocal %72 : vector<8x1xf32> -> vector<8x1xf32>
    %75 = vector.broadcast %74 : vector<8x1xf32> to vector<8x8xf32>
    %76 = arith.mulf %73, %75 : vector<8x8xf32>
    %c0_38 = arith.constant 0 : index
    %c16 = arith.constant 16 : index
    %77 = vector.load %arg24[%c0_38, %c16] : memref<8x32xf32, #tpu.memory_space<vmem>>, vector<8x8xf32>
    tpu.vector_store %arg24[%c0_38, %c16], %76 {strides = array<i32>} : memref<8x32xf32, #tpu.memory_space<vmem>>, vector<8x8xf32>,
    %78 = vector.extract_strided_slice %19 {offsets = [0, 24], sizes = [8, 8], strides = [1, 1]} : vector<8x32xf32> to vector<8x8xf32>
    %79 = vector.extract_strided_slice %24 {offsets = [0, 24], sizes = [8, 8], strides = [1, 1]} : vector<8x32xf32> to vector<8x8xf32>
    %80 = vector.extract_strided_slice %29 {offsets = [0, 24], sizes = [8, 8], strides = [1, 1]} : vector<8x32xf32> to vector<8x8xf32>
    %cst_39 = arith.constant dense<0.000000e+00> : vector<8x8xf32>
    %81 = tpu.matmul %78, %79, %cst_39 {dimension_numbers = #tpu.dot_dimension_numbers<[1], [1], [0], [0], [0, 0, 1, 0], [], []>} : vector<8x8xf32>, vector<8x8xf32>, vector<8x8xf32> -> vector<8x8xf32>
    %cst_40 = arith.constant dense<0xFF800000> : vector<8xf32>
    %82 = vector.multi_reduction <maximumf>, %81, %cst_40 [1] : vector<8x8xf32> to vector<8xf32>
    %83 = vector.shape_cast %82 : vector<8xf32> to vector<8x1xf32>
    %84 = vector.broadcast %83 : vector<8x1xf32> to vector<8x8xf32>
    %85 = arith.subf %81, %84 : vector<8x8xf32>
    %86 = math.exp %85 : vector<8x8xf32>
    %cst_41 = arith.constant dense<0.000000e+00> : vector<8xf32>
    %87 = vector.multi_reduction <add>, %86, %cst_41 [1] : vector<8x8xf32> to vector<8xf32>
    %88 = vector.shape_cast %87 : vector<8xf32> to vector<8x1xf32>
    %cst_42 = arith.constant dense<0.000000e+00> : vector<8x8xf32>
    %89 = tpu.matmul %86, %80, %cst_42 {dimension_numbers = #tpu.dot_dimension_numbers<[1], [0], [0], [1], [0, 0, 1, 1], [], []>} : vector<8x8xf32>, vector<8x8xf32>, vector<8x8xf32> -> vector<8x8xf32>
    %90 = tpu.reciprocal %88 : vector<8x1xf32> -> vector<8x1xf32>
    %91 = vector.broadcast %90 : vector<8x1xf32> to vector<8x8xf32>
    %92 = arith.mulf %89, %91 : vector<8x8xf32>
    %c0_43 = arith.constant 0 : index
    %c24 = arith.constant 24 : index
    %93 = vector.load %arg24[%c0_43, %c24] : memref<8x32xf32, #tpu.memory_space<vmem>>, vector<8x8xf32>
    tpu.vector_store %arg24[%c0_43, %c24], %92 {strides = array<i32>} : memref<8x32xf32, #tpu.memory_space<vmem>>, vector<8x8xf32>,
    %c0_44 = arith.constant 0 : index
    %c0_45 = arith.constant 0 : index
    %94 = vector.load %arg24[%c0_44, %c0_45] : memref<8x32xf32, #tpu.memory_space<vmem>>, vector<8x32xf32>
    %c0_46 = arith.constant 0 : index
    %c0_47 = arith.constant 0 : index
    %95 = vector.load %arg9[%c0_46, %c0_47] : memref<32x32xf32, #tpu.memory_space<vmem>>, vector<32x32xf32>
    %cst_48 = arith.constant dense<0.000000e+00> : vector<8x32xf32>
    %96 = tpu.matmul %94, %95, %cst_48 {dimension_numbers = #tpu.dot_dimension_numbers<[1], [0], [0], [1], [0, 0, 1, 1], [], []>} : vector<8x32xf32>, vector<32x32xf32>, vector<8x32xf32> -> vector<8x32xf32>
    %c0_49 = arith.constant 0 : index
    %c0_50 = arith.constant 0 : index
    %97 = vector.load %arg10[%c0_49, %c0_50] : memref<1x32xf32, #tpu.memory_space<vmem>>, vector<1x32xf32>
    %98 = vector.broadcast %97 : vector<1x32xf32> to vector<8x32xf32>
    %99 = arith.addf %96, %98 : vector<8x32xf32>
    %100 = arith.addf %4, %99 : vector<8x32xf32>
    %c0_51 = arith.constant 0 : index
    %c0_52 = arith.constant 0 : index
    %101 = vector.load %arg11[%c0_51, %c0_52] : memref<3x32xf32, #tpu.memory_space<vmem>>, vector<1x32xf32>
    %c1_53 = arith.constant 1 : index
    %c0_54 = arith.constant 0 : index
    %102 = vector.load %arg11[%c1_53, %c0_54] : memref<3x32xf32, #tpu.memory_space<vmem>>, vector<1x32xf32>
    %c2_55 = arith.constant 2 : index
    %c0_56 = arith.constant 0 : index
    %103 = vector.load %arg11[%c2_55, %c0_56] : memref<3x32xf32, #tpu.memory_space<vmem>>, vector<1x32xf32>
    %104 = vector.broadcast %103 : vector<1x32xf32> to vector<8x32xf32>
    %105 = arith.mulf %104, %100 : vector<8x32xf32>
    %106 = math.tanh %105 : vector<8x32xf32>
    %107 = vector.broadcast %101 : vector<1x32xf32> to vector<8x32xf32>
    %108 = arith.mulf %107, %106 : vector<8x32xf32>
    %109 = vector.broadcast %102 : vector<1x32xf32> to vector<8x32xf32>
    %110 = arith.addf %108, %109 : vector<8x32xf32>
    %c0_57 = arith.constant 0 : index
    %c0_58 = arith.constant 0 : index
    %c0_59 = arith.constant 0 : index
    %111 = vector.load %arg2[%c0_57, %c0_58, %c0_59] : memref<1x8x32xf32, #tpu.memory_space<vmem>>, vector<1x8x32xf32>
    %112 = vector.shape_cast %111 : vector<1x8x32xf32> to vector<8x32xf32>
    %c0_60 = arith.constant 0 : index
    %c0_61 = arith.constant 0 : index
    %113 = vector.load %arg15[%c0_60, %c0_61] : memref<3x32xf32, #tpu.memory_space<vmem>>, vector<1x32xf32>
    %c0_62 = arith.constant 0 : index
    %c0_63 = arith.constant 0 : index
    %114 = vector.load %arg12[%c0_62, %c0_63] : memref<32x32xf32, #tpu.memory_space<vmem>>, vector<32x32xf32>
    %cst_64 = arith.constant dense<0.000000e+00> : vector<8x32xf32>
    %115 = tpu.matmul %110, %114, %cst_64 {dimension_numbers = #tpu.dot_dimension_numbers<[1], [0], [0], [1], [0, 0, 1, 1], [], []>} : vector<8x32xf32>, vector<32x32xf32>, vector<8x32xf32> -> vector<8x32xf32>
    %116 = vector.broadcast %113 : vector<1x32xf32> to vector<8x32xf32>
    %117 = arith.addf %115, %116 : vector<8x32xf32>
    %c1_65 = arith.constant 1 : index
    %c0_66 = arith.constant 0 : index
    %118 = vector.load %arg15[%c1_65, %c0_66] : memref<3x32xf32, #tpu.memory_space<vmem>>, vector<1x32xf32>
    %c0_67 = arith.constant 0 : index
    %c0_68 = arith.constant 0 : index
    %119 = vector.load %arg13[%c0_67, %c0_68] : memref<32x32xf32, #tpu.memory_space<vmem>>, vector<32x32xf32>
    %cst_69 = arith.constant dense<0.000000e+00> : vector<8x32xf32>
    %120 = tpu.matmul %112, %119, %cst_69 {dimension_numbers = #tpu.dot_dimension_numbers<[1], [0], [0], [1], [0, 0, 1, 1], [], []>} : vector<8x32xf32>, vector<32x32xf32>, vector<8x32xf32> -> vector<8x32xf32>
    %121 = vector.broadcast %118 : vector<1x32xf32> to vector<8x32xf32>
    %122 = arith.addf %120, %121 : vector<8x32xf32>
    %c2_70 = arith.constant 2 : index
    %c0_71 = arith.constant 0 : index
    %123 = vector.load %arg15[%c2_70, %c0_71] : memref<3x32xf32, #tpu.memory_space<vmem>>, vector<1x32xf32>
    %c0_72 = arith.constant 0 : index
    %c0_73 = arith.constant 0 : index
    %124 = vector.load %arg14[%c0_72, %c0_73] : memref<32x32xf32, #tpu.memory_space<vmem>>, vector<32x32xf32>
    %cst_74 = arith.constant dense<0.000000e+00> : vector<8x32xf32>
    %125 = tpu.matmul %112, %124, %cst_74 {dimension_numbers = #tpu.dot_dimension_numbers<[1], [0], [0], [1], [0, 0, 1, 1], [], []>} : vector<8x32xf32>, vector<32x32xf32>, vector<8x32xf32> -> vector<8x32xf32>
    %126 = vector.broadcast %123 : vector<1x32xf32> to vector<8x32xf32>
    %127 = arith.addf %125, %126 : vector<8x32xf32>
    %128 = vector.extract_strided_slice %117 {offsets = [0, 0], sizes = [8, 8], strides = [1, 1]} : vector<8x32xf32> to vector<8x8xf32>
    %129 = vector.extract_strided_slice %122 {offsets = [0, 0], sizes = [8, 8], strides = [1, 1]} : vector<8x32xf32> to vector<8x8xf32>
    %130 = vector.extract_strided_slice %127 {offsets = [0, 0], sizes = [8, 8], strides = [1, 1]} : vector<8x32xf32> to vector<8x8xf32>
    %cst_75 = arith.constant dense<0.000000e+00> : vector<8x8xf32>
    %131 = tpu.matmul %128, %129, %cst_75 {dimension_numbers = #tpu.dot_dimension_numbers<[1], [1], [0], [0], [0, 0, 1, 0], [], []>} : vector<8x8xf32>, vector<8x8xf32>, vector<8x8xf32> -> vector<8x8xf32>
    %cst_76 = arith.constant dense<0xFF800000> : vector<8xf32>
    %132 = vector.multi_reduction <maximumf>, %131, %cst_76 [1] : vector<8x8xf32> to vector<8xf32>
    %133 = vector.shape_cast %132 : vector<8xf32> to vector<8x1xf32>
    %134 = vector.broadcast %133 : vector<8x1xf32> to vector<8x8xf32>
    %135 = arith.subf %131, %134 : vector<8x8xf32>
    %136 = math.exp %135 : vector<8x8xf32>
    %cst_77 = arith.constant dense<0.000000e+00> : vector<8xf32>
    %137 = vector.multi_reduction <add>, %136, %cst_77 [1] : vector<8x8xf32> to vector<8xf32>
    %138 = vector.shape_cast %137 : vector<8xf32> to vector<8x1xf32>
    %cst_78 = arith.constant dense<0.000000e+00> : vector<8x8xf32>
    %139 = tpu.matmul %136, %130, %cst_78 {dimension_numbers = #tpu.dot_dimension_numbers<[1], [0], [0], [1], [0, 0, 1, 1], [], []>} : vector<8x8xf32>, vector<8x8xf32>, vector<8x8xf32> -> vector<8x8xf32>
    %140 = tpu.reciprocal %138 : vector<8x1xf32> -> vector<8x1xf32>
    %141 = vector.broadcast %140 : vector<8x1xf32> to vector<8x8xf32>
    %142 = arith.mulf %139, %141 : vector<8x8xf32>
    %c0_79 = arith.constant 0 : index
    %c0_80 = arith.constant 0 : index
    %143 = vector.load %arg24[%c0_79, %c0_80] : memref<8x32xf32, #tpu.memory_space<vmem>>, vector<8x8xf32>
    tpu.vector_store %arg24[%c0_79, %c0_80], %142 {strides = array<i32>} : memref<8x32xf32, #tpu.memory_space<vmem>>, vector<8x8xf32>,
    %144 = vector.extract_strided_slice %117 {offsets = [0, 8], sizes = [8, 8], strides = [1, 1]} : vector<8x32xf32> to vector<8x8xf32>
    %145 = vector.extract_strided_slice %122 {offsets = [0, 8], sizes = [8, 8], strides = [1, 1]} : vector<8x32xf32> to vector<8x8xf32>
    %146 = vector.extract_strided_slice %127 {offsets = [0, 8], sizes = [8, 8], strides = [1, 1]} : vector<8x32xf32> to vector<8x8xf32>
    %cst_81 = arith.constant dense<0.000000e+00> : vector<8x8xf32>
    %147 = tpu.matmul %144, %145, %cst_81 {dimension_numbers = #tpu.dot_dimension_numbers<[1], [1], [0], [0], [0, 0, 1, 0], [], []>} : vector<8x8xf32>, vector<8x8xf32>, vector<8x8xf32> -> vector<8x8xf32>
    %cst_82 = arith.constant dense<0xFF800000> : vector<8xf32>
    %148 = vector.multi_reduction <maximumf>, %147, %cst_82 [1] : vector<8x8xf32> to vector<8xf32>
    %149 = vector.shape_cast %148 : vector<8xf32> to vector<8x1xf32>
    %150 = vector.broadcast %149 : vector<8x1xf32> to vector<8x8xf32>
    %151 = arith.subf %147, %150 : vector<8x8xf32>
    %152 = math.exp %151 : vector<8x8xf32>
    %cst_83 = arith.constant dense<0.000000e+00> : vector<8xf32>
    %153 = vector.multi_reduction <add>, %152, %cst_83 [1] : vector<8x8xf32> to vector<8xf32>
    %154 = vector.shape_cast %153 : vector<8xf32> to vector<8x1xf32>
    %cst_84 = arith.constant dense<0.000000e+00> : vector<8x8xf32>
    %155 = tpu.matmul %152, %146, %cst_84 {dimension_numbers = #tpu.dot_dimension_numbers<[1], [0], [0], [1], [0, 0, 1, 1], [], []>} : vector<8x8xf32>, vector<8x8xf32>, vector<8x8xf32> -> vector<8x8xf32>
    %156 = tpu.reciprocal %154 : vector<8x1xf32> -> vector<8x1xf32>
    %157 = vector.broadcast %156 : vector<8x1xf32> to vector<8x8xf32>
    %158 = arith.mulf %155, %157 : vector<8x8xf32>
    %c0_85 = arith.constant 0 : index
    %c8_86 = arith.constant 8 : index
    %159 = vector.load %arg24[%c0_85, %c8_86] : memref<8x32xf32, #tpu.memory_space<vmem>>, vector<8x8xf32>
    tpu.vector_store %arg24[%c0_85, %c8_86], %158 {strides = array<i32>} : memref<8x32xf32, #tpu.memory_space<vmem>>, vector<8x8xf32>,
    %160 = vector.extract_strided_slice %117 {offsets = [0, 16], sizes = [8, 8], strides = [1, 1]} : vector<8x32xf32> to vector<8x8xf32>
    %161 = vector.extract_strided_slice %122 {offsets = [0, 16], sizes = [8, 8], strides = [1, 1]} : vector<8x32xf32> to vector<8x8xf32>
    %162 = vector.extract_strided_slice %127 {offsets = [0, 16], sizes = [8, 8], strides = [1, 1]} : vector<8x32xf32> to vector<8x8xf32>
    %cst_87 = arith.constant dense<0.000000e+00> : vector<8x8xf32>
    %163 = tpu.matmul %160, %161, %cst_87 {dimension_numbers = #tpu.dot_dimension_numbers<[1], [1], [0], [0], [0, 0, 1, 0], [], []>} : vector<8x8xf32>, vector<8x8xf32>, vector<8x8xf32> -> vector<8x8xf32>
    %cst_88 = arith.constant dense<0xFF800000> : vector<8xf32>
    %164 = vector.multi_reduction <maximumf>, %163, %cst_88 [1] : vector<8x8xf32> to vector<8xf32>
    %165 = vector.shape_cast %164 : vector<8xf32> to vector<8x1xf32>
    %166 = vector.broadcast %165 : vector<8x1xf32> to vector<8x8xf32>
    %167 = arith.subf %163, %166 : vector<8x8xf32>
    %168 = math.exp %167 : vector<8x8xf32>
    %cst_89 = arith.constant dense<0.000000e+00> : vector<8xf32>
    %169 = vector.multi_reduction <add>, %168, %cst_89 [1] : vector<8x8xf32> to vector<8xf32>
    %170 = vector.shape_cast %169 : vector<8xf32> to vector<8x1xf32>
    %cst_90 = arith.constant dense<0.000000e+00> : vector<8x8xf32>
    %171 = tpu.matmul %168, %162, %cst_90 {dimension_numbers = #tpu.dot_dimension_numbers<[1], [0], [0], [1], [0, 0, 1, 1], [], []>} : vector<8x8xf32>, vector<8x8xf32>, vector<8x8xf32> -> vector<8x8xf32>
    %172 = tpu.reciprocal %170 : vector<8x1xf32> -> vector<8x1xf32>
    %173 = vector.broadcast %172 : vector<8x1xf32> to vector<8x8xf32>
    %174 = arith.mulf %171, %173 : vector<8x8xf32>
    %c0_91 = arith.constant 0 : index
    %c16_92 = arith.constant 16 : index
    %175 = vector.load %arg24[%c0_91, %c16_92] : memref<8x32xf32, #tpu.memory_space<vmem>>, vector<8x8xf32>
    tpu.vector_store %arg24[%c0_91, %c16_92], %174 {strides = array<i32>} : memref<8x32xf32, #tpu.memory_space<vmem>>, vector<8x8xf32>,
    %176 = vector.extract_strided_slice %117 {offsets = [0, 24], sizes = [8, 8], strides = [1, 1]} : vector<8x32xf32> to vector<8x8xf32>
    %177 = vector.extract_strided_slice %122 {offsets = [0, 24], sizes = [8, 8], strides = [1, 1]} : vector<8x32xf32> to vector<8x8xf32>
    %178 = vector.extract_strided_slice %127 {offsets = [0, 24], sizes = [8, 8], strides = [1, 1]} : vector<8x32xf32> to vector<8x8xf32>
    %cst_93 = arith.constant dense<0.000000e+00> : vector<8x8xf32>
    %179 = tpu.matmul %176, %177, %cst_93 {dimension_numbers = #tpu.dot_dimension_numbers<[1], [1], [0], [0], [0, 0, 1, 0], [], []>} : vector<8x8xf32>, vector<8x8xf32>, vector<8x8xf32> -> vector<8x8xf32>
    %cst_94 = arith.constant dense<0xFF800000> : vector<8xf32>
    %180 = vector.multi_reduction <maximumf>, %179, %cst_94 [1] : vector<8x8xf32> to vector<8xf32>
    %181 = vector.shape_cast %180 : vector<8xf32> to vector<8x1xf32>
    %182 = vector.broadcast %181 : vector<8x1xf32> to vector<8x8xf32>
    %183 = arith.subf %179, %182 : vector<8x8xf32>
    %184 = math.exp %183 : vector<8x8xf32>
    %cst_95 = arith.constant dense<0.000000e+00> : vector<8xf32>
    %185 = vector.multi_reduction <add>, %184, %cst_95 [1] : vector<8x8xf32> to vector<8xf32>
    %186 = vector.shape_cast %185 : vector<8xf32> to vector<8x1xf32>
    %cst_96 = arith.constant dense<0.000000e+00> : vector<8x8xf32>
    %187 = tpu.matmul %184, %178, %cst_96 {dimension_numbers = #tpu.dot_dimension_numbers<[1], [0], [0], [1], [0, 0, 1, 1], [], []>} : vector<8x8xf32>, vector<8x8xf32>, vector<8x8xf32> -> vector<8x8xf32>
    %188 = tpu.reciprocal %186 : vector<8x1xf32> -> vector<8x1xf32>
    %189 = vector.broadcast %188 : vector<8x1xf32> to vector<8x8xf32>
    %190 = arith.mulf %187, %189 : vector<8x8xf32>
    %c0_97 = arith.constant 0 : index
    %c24_98 = arith.constant 24 : index
    %191 = vector.load %arg24[%c0_97, %c24_98] : memref<8x32xf32, #tpu.memory_space<vmem>>, vector<8x8xf32>
    tpu.vector_store %arg24[%c0_97, %c24_98], %190 {strides = array<i32>} : memref<8x32xf32, #tpu.memory_space<vmem>>, vector<8x8xf32>,
    %c0_99 = arith.constant 0 : index
    %c0_100 = arith.constant 0 : index
    %192 = vector.load %arg24[%c0_99, %c0_100] : memref<8x32xf32, #tpu.memory_space<vmem>>, vector<8x32xf32>
    %c0_101 = arith.constant 0 : index
    %c0_102 = arith.constant 0 : index
    %193 = vector.load %arg16[%c0_101, %c0_102] : memref<32x32xf32, #tpu.memory_space<vmem>>, vector<32x32xf32>
    %cst_103 = arith.constant dense<0.000000e+00> : vector<8x32xf32>
    %194 = tpu.matmul %192, %193, %cst_103 {dimension_numbers = #tpu.dot_dimension_numbers<[1], [0], [0], [1], [0, 0, 1, 1], [], []>} : vector<8x32xf32>, vector<32x32xf32>, vector<8x32xf32> -> vector<8x32xf32>
    %c0_104 = arith.constant 0 : index
    %c0_105 = arith.constant 0 : index
    %195 = vector.load %arg17[%c0_104, %c0_105] : memref<1x32xf32, #tpu.memory_space<vmem>>, vector<1x32xf32>
    %196 = vector.broadcast %195 : vector<1x32xf32> to vector<8x32xf32>
    %197 = arith.addf %194, %196 : vector<8x32xf32>
    %198 = arith.addf %100, %197 : vector<8x32xf32>
    %c0_106 = arith.constant 0 : index
    %c0_107 = arith.constant 0 : index
    %199 = vector.load %arg18[%c0_106, %c0_107] : memref<3x32xf32, #tpu.memory_space<vmem>>, vector<1x32xf32>
    %c1_108 = arith.constant 1 : index
    %c0_109 = arith.constant 0 : index
    %200 = vector.load %arg18[%c1_108, %c0_109] : memref<3x32xf32, #tpu.memory_space<vmem>>, vector<1x32xf32>
    %c2_110 = arith.constant 2 : index
    %c0_111 = arith.constant 0 : index
    %201 = vector.load %arg18[%c2_110, %c0_111] : memref<3x32xf32, #tpu.memory_space<vmem>>, vector<1x32xf32>
    %202 = vector.broadcast %201 : vector<1x32xf32> to vector<8x32xf32>
    %203 = arith.mulf %202, %198 : vector<8x32xf32>
    %204 = math.tanh %203 : vector<8x32xf32>
    %205 = vector.broadcast %199 : vector<1x32xf32> to vector<8x32xf32>
    %206 = arith.mulf %205, %204 : vector<8x32xf32>
    %207 = vector.broadcast %200 : vector<1x32xf32> to vector<8x32xf32>
    %208 = arith.addf %206, %207 : vector<8x32xf32>
    %c0_112 = arith.constant 0 : index
    %c0_113 = arith.constant 0 : index
    %209 = vector.load %arg19[%c0_112, %c0_113] : memref<32x128xf32, #tpu.memory_space<vmem>>, vector<32x128xf32>
    %cst_114 = arith.constant dense<0.000000e+00> : vector<8x128xf32>
    %210 = tpu.matmul %208, %209, %cst_114 {dimension_numbers = #tpu.dot_dimension_numbers<[1], [0], [0], [1], [0, 0, 1, 1], [], []>} : vector<8x32xf32>, vector<32x128xf32>, vector<8x128xf32> -> vector<8x128xf32>
    %c0_115 = arith.constant 0 : index
    %c0_116 = arith.constant 0 : index
    %211 = vector.load %arg20[%c0_115, %c0_116] : memref<1x128xf32, #tpu.memory_space<vmem>>, vector<1x128xf32>
    %212 = vector.broadcast %211 : vector<1x128xf32> to vector<8x128xf32>
    %213 = arith.addf %210, %212 : vector<8x128xf32>
    %cst_117 = arith.constant 5.000000e-01 : f32
    %214 = vector.broadcast %cst_117 : f32 to vector<8x128xf32>
    %215 = arith.mulf %214, %213 : vector<8x128xf32>
    %cst_118 = arith.constant 4.471500e-02 : f32
    %216 = vector.broadcast %cst_118 : f32 to vector<8x128xf32>
    %217 = arith.mulf %216, %213 : vector<8x128xf32>
    %218 = arith.mulf %217, %213 : vector<8x128xf32>
    %219 = arith.mulf %218, %213 : vector<8x128xf32>
    %220 = arith.addf %213, %219 : vector<8x128xf32>
    %cst_119 = arith.constant 0.797884583 : f32
    %221 = vector.broadcast %cst_119 : f32 to vector<8x128xf32>
    %222 = arith.mulf %221, %220 : vector<8x128xf32>
    %223 = math.tanh %222 : vector<8x128xf32>
    %cst_120 = arith.constant 1.000000e+00 : f32
    %224 = vector.broadcast %cst_120 : f32 to vector<8x128xf32>
    %225 = arith.addf %224, %223 : vector<8x128xf32>
    %226 = arith.mulf %215, %225 : vector<8x128xf32>
    %c0_121 = arith.constant 0 : index
    %c0_122 = arith.constant 0 : index
    %227 = vector.load %arg21[%c0_121, %c0_122] : memref<128x32xf32, #tpu.memory_space<vmem>>, vector<128x32xf32>
    %cst_123 = arith.constant dense<0.000000e+00> : vector<8x32xf32>
    %228 = tpu.matmul %226, %227, %cst_123 {dimension_numbers = #tpu.dot_dimension_numbers<[1], [0], [0], [1], [0, 0, 1, 1], [], []>} : vector<8x128xf32>, vector<128x32xf32>, vector<8x32xf32> -> vector<8x32xf32>
    %c0_124 = arith.constant 0 : index
    %c0_125 = arith.constant 0 : index
    %229 = vector.load %arg22[%c0_124, %c0_125] : memref<1x32xf32, #tpu.memory_space<vmem>>, vector<1x32xf32>
    %230 = vector.broadcast %229 : vector<1x32xf32> to vector<8x32xf32>
    %231 = arith.addf %228, %230 : vector<8x32xf32>
    %232 = arith.addf %198, %231 : vector<8x32xf32>
    %c0_126 = arith.constant 0 : index
    %c0_127 = arith.constant 0 : index
    %c0_128 = arith.constant 0 : index
    %233 = vector.load %arg23[%c0_126, %c0_127, %c0_128] : memref<1x8x32xf32, #tpu.memory_space<vmem>>, vector<1x8x32xf32>
    %234 = vector.shape_cast %233 : vector<1x8x32xf32> to vector<8x32xf32>
    %235 = vector.shape_cast %232 : vector<8x32xf32> to vector<1x8x32xf32>
    tpu.vector_store %arg23[%c0_126, %c0_127, %c0_128], %235 {strides = array<i32>} : memref<1x8x32xf32, #tpu.memory_space<vmem>>, vector<1x8x32xf32>,
    return
  }
  func.func @transform_0(%arg0: i32) -> (i32, i32, i32) {
    %c0_i32 = arith.constant 0 : i32
    %c0_i32_0 = arith.constant 0 : i32
    %c0_i32_1 = arith.constant 0 : i32
    return %arg0, %c0_i32, %c0_i32_0 : i32, i32, i32
  }
  func.func @transform_1(%arg0: i32) -> (i32, i32, i32) {
    %c0_i32 = arith.constant 0 : i32
    %c0_i32_0 = arith.constant 0 : i32
    %c0_i32_1 = arith.constant 0 : i32
    return %arg0, %c0_i32, %c0_i32_0 : i32, i32, i32
  }
  func.func @transform_2(%arg0: i32) -> (i32, i32, i32) {
    %c0_i32 = arith.constant 0 : i32
    %c0_i32_0 = arith.constant 0 : i32
    %c0_i32_1 = arith.constant 0 : i32
    %c0_i32_2 = arith.constant 0 : i32
    return %c0_i32, %c0_i32_0, %c0_i32_1 : i32, i32, i32
  }
  func.func @transform_3(%arg0: i32) -> (i32, i32) {
    %c0_i32 = arith.constant 0 : i32
    %c0_i32_0 = arith.constant 0 : i32
    %c0_i32_1 = arith.constant 0 : i32
    return %c0_i32, %c0_i32_0 : i32, i32
  }
  func.func @transform_4(%arg0: i32) -> (i32, i32) {
    %c0_i32 = arith.constant 0 : i32
    %c0_i32_0 = arith.constant 0 : i32
    %c0_i32_1 = arith.constant 0 : i32
    return %c0_i32, %c0_i32_0 : i32, i32
  }
  func.func @transform_5(%arg0: i32) -> (i32, i32) {
    %c0_i32 = arith.constant 0 : i32
    %c0_i32_0 = arith.constant 0 : i32
    %c0_i32_1 = arith.constant 0 : i32
    return %c0_i32, %c0_i32_0 : i32, i32
  }
  func.func @transform_6(%arg0: i32) -> (i32, i32) {
    %c0_i32 = arith.constant 0 : i32
    %c0_i32_0 = arith.constant 0 : i32
    %c0_i32_1 = arith.constant 0 : i32
    return %c0_i32, %c0_i32_0 : i32, i32
  }
  func.func @transform_7(%arg0: i32) -> (i32, i32) {
    %c0_i32 = arith.constant 0 : i32
    %c0_i32_0 = arith.constant 0 : i32
    %c0_i32_1 = arith.constant 0 : i32
    return %c0_i32, %c0_i32_0 : i32, i32
  }
  func.func @transform_8(%arg0: i32) -> (i32, i32) {
    %c0_i32 = arith.constant 0 : i32
    %c0_i32_0 = arith.constant 0 : i32
    %c0_i32_1 = arith.constant 0 : i32
    return %c0_i32, %c0_i32_0 : i32, i32
  }
  func.func @transform_9(%arg0: i32) -> (i32, i32) {
    %c0_i32 = arith.constant 0 : i32
    %c0_i32_0 = arith.constant 0 : i32
    %c0_i32_1 = arith.constant 0 : i32
    return %c0_i32, %c0_i32_0 : i32, i32
  }
  func.func @transform_10(%arg0: i32) -> (i32, i32) {
    %c0_i32 = arith.constant 0 : i32
    %c0_i32_0 = arith.constant 0 : i32
    %c0_i32_1 = arith.constant 0 : i32
    return %c0_i32, %c0_i32_0 : i32, i32
  }
  func.func @transform_11(%arg0: i32) -> (i32, i32) {
    %c0_i32 = arith.constant 0 : i32
    %c0_i32_0 = arith.constant 0 : i32
    %c0_i32_1 = arith.constant 0 : i32
    return %c0_i32, %c0_i32_0 : i32, i32
  }
  func.func @transform_12(%arg0: i32) -> (i32, i32) {
    %c0_i32 = arith.constant 0 : i32
    %c0_i32_0 = arith.constant 0 : i32
    %c0_i32_1 = arith.constant 0 : i32
    return %c0_i32, %c0_i32_0 : i32, i32
  }
  func.func @transform_13(%arg0: i32) -> (i32, i32) {
    %c0_i32 = arith.constant 0 : i32
    %c0_i32_0 = arith.constant 0 : i32
    %c0_i32_1 = arith.constant 0 : i32
    return %c0_i32, %c0_i32_0 : i32, i32
  }
  func.func @transform_14(%arg0: i32) -> (i32, i32) {
    %c0_i32 = arith.constant 0 : i32
    %c0_i32_0 = arith.constant 0 : i32
    %c0_i32_1 = arith.constant 0 : i32
    return %c0_i32, %c0_i32_0 : i32, i32
  }
  func.func @transform_15(%arg0: i32) -> (i32, i32) {
    %c0_i32 = arith.constant 0 : i32
    %c0_i32_0 = arith.constant 0 : i32
    %c0_i32_1 = arith.constant 0 : i32
    return %c0_i32, %c0_i32_0 : i32, i32
  }
  func.func @transform_16(%arg0: i32) -> (i32, i32) {
    %c0_i32 = arith.constant 0 : i32
    %c0_i32_0 = arith.constant 0 : i32
    %c0_i32_1 = arith.constant 0 : i32
    return %c0_i32, %c0_i32_0 : i32, i32
  }
  func.func @transform_17(%arg0: i32) -> (i32, i32) {
    %c0_i32 = arith.constant 0 : i32
    %c0_i32_0 = arith.constant 0 : i32
    %c0_i32_1 = arith.constant 0 : i32
    return %c0_i32, %c0_i32_0 : i32, i32
  }
  func.func @transform_18(%arg0: i32) -> (i32, i32) {
    %c0_i32 = arith.constant 0 : i32
    %c0_i32_0 = arith.constant 0 : i32
    %c0_i32_1 = arith.constant 0 : i32
    return %c0_i32, %c0_i32_0 : i32, i32
  }
  func.func @transform_19(%arg0: i32) -> (i32, i32) {
    %c0_i32 = arith.constant 0 : i32
    %c0_i32_0 = arith.constant 0 : i32
    %c0_i32_1 = arith.constant 0 : i32
    return %c0_i32, %c0_i32_0 : i32, i32
  }
  func.func @transform_20(%arg0: i32) -> (i32, i32) {
    %c0_i32 = arith.constant 0 : i32
    %c0_i32_0 = arith.constant 0 : i32
    %c0_i32_1 = arith.constant 0 : i32
    return %c0_i32, %c0_i32_0 : i32, i32
  }
  func.func @transform_21(%arg0: i32) -> (i32, i32) {
    %c0_i32 = arith.constant 0 : i32
    %c0_i32_0 = arith.constant 0 : i32
    %c0_i32_1 = arith.constant 0 : i32
    return %c0_i32, %c0_i32_0 : i32, i32
  }
  func.func @transform_22(%arg0: i32) -> (i32, i32, i32) {
    %c0_i32 = arith.constant 0 : i32
    %c0_i32_0 = arith.constant 0 : i32
    %c0_i32_1 = arith.constant 0 : i32
    return %arg0, %c0_i32, %c0_i32_0 : i32, i32, i32
  }
}

module attributes {stable_mosaic.version = 11 : i64} {
  func.func @_decoder_layer_kernel(%arg0: i32, %arg1: memref<1x8x32xf32, #tpu.memory_space<vmem>>, %arg2: memref<1x8x32xf32, #tpu.memory_space<vmem>>, %arg3: memref<1x8x32xf32, #tpu.memory_space<vmem>>, %arg4: memref<3x32xf32, #tpu.memory_space<vmem>>, %arg5: memref<32x32xf32, #tpu.memory_space<vmem>>, %arg6: memref<32x32xf32, #tpu.memory_space<vmem>>, %arg7: memref<32x32xf32, #tpu.memory_space<vmem>>, %arg8: memref<3x32xf32, #tpu.memory_space<vmem>>, %arg9: memref<32x32xf32, #tpu.memory_space<vmem>>, %arg10: memref<1x32xf32, #tpu.memory_space<vmem>>, %arg11: memref<3x32xf32, #tpu.memory_space<vmem>>, %arg12: memref<32x32xf32, #tpu.memory_space<vmem>>, %arg13: memref<32x32xf32, #tpu.memory_space<vmem>>, %arg14: memref<32x32xf32, #tpu.memory_space<vmem>>, %arg15: memref<3x32xf32, #tpu.memory_space<vmem>>, %arg16: memref<32x32xf32, #tpu.memory_space<vmem>>, %arg17: memref<1x32xf32, #tpu.memory_space<vmem>>, %arg18: memref<3x32xf32, #tpu.memory_space<vmem>>, %arg19: memref<32x128xf32, #tpu.memory_space<vmem>>, %arg20: memref<1x128xf32, #tpu.memory_space<vmem>>, %arg21: memref<128x32xf32, #tpu.memory_space<vmem>>, %arg22: memref<1x32xf32, #tpu.memory_space<vmem>>, %arg23: memref<1x8x32xf32, #tpu.memory_space<vmem>>, %arg24: memref<8x32xf32, #tpu.memory_space<vmem>>) attributes {dimension_semantics = [#tpu.dimension_semantics<parallel>], iteration_bounds = array<i64: 2>, scalar_prefetch = 0 : i64, scratch_operands = 1 : i64, tpu.core_type = #tpu.core_type<tc>, window_params = [{transform_indices = @transform_0, window_bounds = array<i64: 1, 8, 32>}, {transform_indices = @transform_1, window_bounds = array<i64: 1, 8, 32>}, {pipeline_mode = #tpu.pipeline_mode<synchronous>, transform_indices = @transform_2, window_bounds = array<i64: 1, 8, 32>}, {pipeline_mode = #tpu.pipeline_mode<synchronous>, transform_indices = @transform_3, window_bounds = array<i64: 3, 32>}, {pipeline_mode = #tpu.pipeline_mode<synchronous>, transform_indices = @transform_4, window_bounds = array<i64: 32, 32>}, {pipeline_mode = #tpu.pipeline_mode<synchronous>, transform_indices = @transform_5, window_bounds = array<i64: 32, 32>}, {pipeline_mode = #tpu.pipeline_mode<synchronous>, transform_indices = @transform_6, window_bounds = array<i64: 32, 32>}, {pipeline_mode = #tpu.pipeline_mode<synchronous>, transform_indices = @transform_7, window_bounds = array<i64: 3, 32>}, {pipeline_mode = #tpu.pipeline_mode<synchronous>, transform_indices = @transform_8, window_bounds = array<i64: 32, 32>}, {pipeline_mode = #tpu.pipeline_mode<synchronous>, transform_indices = @transform_9, window_bounds = array<i64: 1, 32>}, {pipeline_mode = #tpu.pipeline_mode<synchronous>, transform_indices = @transform_10, window_bounds = array<i64: 3, 32>}, {pipeline_mode = #tpu.pipeline_mode<synchronous>, transform_indices = @transform_11, window_bounds = array<i64: 32, 32>}, {pipeline_mode = #tpu.pipeline_mode<synchronous>, transform_indices = @transform_12, window_bounds = array<i64: 32, 32>}, {pipeline_mode = #tpu.pipeline_mode<synchronous>, transform_indices = @transform_13, window_bounds = array<i64: 32, 32>}, {pipeline_mode = #tpu.pipeline_mode<synchronous>, transform_indices = @transform_14, window_bounds = array<i64: 3, 32>}, {pipeline_mode = #tpu.pipeline_mode<synchronous>, transform_indices = @transform_15, window_bounds = array<i64: 32, 32>}, {pipeline_mode = #tpu.pipeline_mode<synchronous>, transform_indices = @transform_16, window_bounds = array<i64: 1, 32>}, {pipeline_mode = #tpu.pipeline_mode<synchronous>, transform_indices = @transform_17, window_bounds = array<i64: 3, 32>}, {pipeline_mode = #tpu.pipeline_mode<synchronous>, transform_indices = @transform_18, window_bounds = array<i64: 32, 128>}, {pipeline_mode = #tpu.pipeline_mode<synchronous>, transform_indices = @transform_19, window_bounds = array<i64: 1, 128>}, {pipeline_mode = #tpu.pipeline_mode<synchronous>, transform_indices = @transform_20, window_bounds = array<i64: 128, 32>}, {pipeline_mode = #tpu.pipeline_mode<synchronous>, transform_indices = @transform_21, window_bounds = array<i64: 1, 32>}, {transform_indices = @transform_22, window_bounds = array<i64: 1, 8, 32>}]} {
    %c0 = arith.constant 0 : index
    %c0_0 = arith.constant 0 : index
    %c0_1 = arith.constant 0 : index
    %0 = vector.load %arg1[%c0, %c0_0, %c0_1] : memref<1x8x32xf32, #tpu.memory_space<vmem>>, vector<1x8x32xf32>
    %1 = vector.shape_cast %0 : vector<1x8x32xf32> to vector<8x32xf32>
    %c0_2 = arith.constant 0 : index
    %c0_3 = arith.constant 0 : index
    %c0_4 = arith.constant 0 : index
    %2 = vector.load %arg3[%c0_2, %c0_3, %c0_4] : memref<1x8x32xf32, #tpu.memory_space<vmem>>, vector<1x8x32xf32>
    %3 = vector.shape_cast %2 : vector<1x8x32xf32> to vector<8x32xf32>
    %4 = arith.addf %1, %3 : vector<8x32xf32>
    %c0_5 = arith.constant 0 : index
    %c0_6 = arith.constant 0 : index
    %5 = vector.load %arg4[%c0_5, %c0_6] : memref<3x32xf32, #tpu.memory_space<vmem>>, vector<1x32xf32>
    %c1 = arith.constant 1 : index
    %c0_7 = arith.constant 0 : index
    %6 = vector.load %arg4[%c1, %c0_7] : memref<3x32xf32, #tpu.memory_space<vmem>>, vector<1x32xf32>
    %c2 = arith.constant 2 : index
    %c0_8 = arith.constant 0 : index
    %7 = vector.load %arg4[%c2, %c0_8] : memref<3x32xf32, #tpu.memory_space<vmem>>, vector<1x32xf32>
    %8 = vector.broadcast %7 : vector<1x32xf32> to vector<8x32xf32>
    %9 = arith.mulf %8, %4 : vector<8x32xf32>
    %10 = math.tanh %9 : vector<8x32xf32>
    %11 = vector.broadcast %5 : vector<1x32xf32> to vector<8x32xf32>
    %12 = arith.mulf %11, %10 : vector<8x32xf32>
    %13 = vector.broadcast %6 : vector<1x32xf32> to vector<8x32xf32>
    %14 = arith.addf %12, %13 : vector<8x32xf32>
    %c0_9 = arith.constant 0 : index
    %c0_10 = arith.constant 0 : index
    %15 = vector.load %arg8[%c0_9, %c0_10] : memref<3x32xf32, #tpu.memory_space<vmem>>, vector<1x32xf32>
    %c0_11 = arith.constant 0 : index
    %c0_12 = arith.constant 0 : index
    %16 = vector.load %arg5[%c0_11, %c0_12] : memref<32x32xf32, #tpu.memory_space<vmem>>, vector<32x32xf32>
    %cst = arith.constant dense<0.000000e+00> : vector<8x32xf32>
    %17 = tpu.matmul %14, %16, %cst {dimension_numbers = #tpu.dot_dimension_numbers<[1], [0], [0], [1], [0, 0, 1, 1], [], []>} : vector<8x32xf32>, vector<32x32xf32>, vector<8x32xf32> -> vector<8x32xf32>
    %18 = vector.broadcast %15 : vector<1x32xf32> to vector<8x32xf32>
    %19 = arith.addf %17, %18 : vector<8x32xf32>
    %c1_13 = arith.constant 1 : index
    %c0_14 = arith.constant 0 : index
    %20 = vector.load %arg8[%c1_13, %c0_14] : memref<3x32xf32, #tpu.memory_space<vmem>>, vector<1x32xf32>
    %c0_15 = arith.constant 0 : index
    %c0_16 = arith.constant 0 : index
    %21 = vector.load %arg6[%c0_15, %c0_16] : memref<32x32xf32, #tpu.memory_space<vmem>>, vector<32x32xf32>
    %cst_17 = arith.constant dense<0.000000e+00> : vector<8x32xf32>
    %22 = tpu.matmul %14, %21, %cst_17 {dimension_numbers = #tpu.dot_dimension_numbers<[1], [0], [0], [1], [0, 0, 1, 1], [], []>} : vector<8x32xf32>, vector<32x32xf32>, vector<8x32xf32> -> vector<8x32xf32>
    %23 = vector.broadcast %20 : vector<1x32xf32> to vector<8x32xf32>
    %24 = arith.addf %22, %23 : vector<8x32xf32>
    %c2_18 = arith.constant 2 : index
    %c0_19 = arith.constant 0 : index
    %25 = vector.load %arg8[%c2_18, %c0_19] : memref<3x32xf32, #tpu.memory_space<vmem>>, vector<1x32xf32>
    %c0_20 = arith.constant 0 : index
    %c0_21 = arith.constant 0 : index
    %26 = vector.load %arg7[%c0_20, %c0_21] : memref<32x32xf32, #tpu.memory_space<vmem>>, vector<32x32xf32>
    %cst_22 = arith.constant dense<0.000000e+00> : vector<8x32xf32>
    %27 = tpu.matmul %14, %26, %cst_22 {dimension_numbers = #tpu.dot_dimension_numbers<[1], [0], [0], [1], [0, 0, 1, 1], [], []>} : vector<8x32xf32>, vector<32x32xf32>, vector<8x32xf32> -> vector<8x32xf32>
    %28 = vector.broadcast %25 : vector<1x32xf32> to vector<8x32xf32>
    %29 = arith.addf %27, %28 : vector<8x32xf32>
    %30 = vector.extract_strided_slice %19 {offsets = [0, 0], sizes = [8, 8], strides = [1, 1]} : vector<8x32xf32> to vector<8x8xf32>
    %31 = vector.extract_strided_slice %24 {offsets = [0, 0], sizes = [8, 8], strides = [1, 1]} : vector<8x32xf32> to vector<8x8xf32>
    %32 = vector.extract_strided_slice %29 {offsets = [0, 0], sizes = [8, 8], strides = [1, 1]} : vector<8x32xf32> to vector<8x8xf32>
    %cst_23 = arith.constant dense<0.000000e+00> : vector<8x8xf32>
    %33 = tpu.matmul %30, %31, %cst_23 {dimension_numbers = #tpu.dot_dimension_numbers<[1], [1], [0], [0], [0, 0, 1, 0], [], []>} : vector<8x8xf32>, vector<8x8xf32>, vector<8x8xf32> -> vector<8x8xf32>
    %cst_24 = arith.constant dense<0xFF800000> : vector<8xf32>
    %34 = vector.multi_reduction <maximumf>, %33, %cst_24 [1] : vector<8x8xf32> to vector<8xf32>
    %35 = vector.shape_cast %34 : vector<8xf32> to vector<8x1xf32>
    %36 = vector.broadcast %35 : vector<8x1xf32> to vector<8x8xf32>
    %37 = arith.subf %33, %36 : vector<8x8xf32>
    %38 = math.exp %37 : vector<8x8xf32>
    %cst_25 = arith.constant dense<0.000000e+00> : vector<8xf32>
    %39 = vector.multi_reduction <add>, %38, %cst_25 [1] : vector<8x8xf32> to vector<8xf32>
    %40 = vector.shape_cast %39 : vector<8xf32> to vector<8x1xf32>
    %cst_26 = arith.constant dense<0.000000e+00> : vector<8x8xf32>
    %41 = tpu.matmul %38, %32, %cst_26 {dimension_numbers = #tpu.dot_dimension_numbers<[1], [0], [0], [1], [0, 0, 1, 1], [], []>} : vector<8x8xf32>, vector<8x8xf32>, vector<8x8xf32> -> vector<8x8xf32>
    %42 = tpu.reciprocal %40 : vector<8x1xf32> -> vector<8x1xf32>
    %43 = vector.broadcast %42 : vector<8x1xf32> to vector<8x8xf32>
    %44 = arith.mulf %41, %43 : vector<8x8xf32>
    %c0_27 = arith.constant 0 : index
    %c0_28 = arith.constant 0 : index
    %45 = vector.load %arg24[%c0_27, %c0_28] : memref<8x32xf32, #tpu.memory_space<vmem>>, vector<8x8xf32>
    tpu.vector_store %arg24[%c0_27, %c0_28], %44 {strides = array<i32>} : memref<8x32xf32, #tpu.memory_space<vmem>>, vector<8x8xf32>,
    %46 = vector.extract_strided_slice %19 {offsets = [0, 8], sizes = [8, 8], strides = [1, 1]} : vector<8x32xf32> to vector<8x8xf32>
    %47 = vector.extract_strided_slice %24 {offsets = [0, 8], sizes = [8, 8], strides = [1, 1]} : vector<8x32xf32> to vector<8x8xf32>
    %48 = vector.extract_strided_slice %29 {offsets = [0, 8], sizes = [8, 8], strides = [1, 1]} : vector<8x32xf32> to vector<8x8xf32>
    %cst_29 = arith.constant dense<0.000000e+00> : vector<8x8xf32>
    %49 = tpu.matmul %46, %47, %cst_29 {dimension_numbers = #tpu.dot_dimension_numbers<[1], [1], [0], [0], [0, 0, 1, 0], [], []>} : vector<8x8xf32>, vector<8x8xf32>, vector<8x8xf32> -> vector<8x8xf32>
    %cst_30 = arith.constant dense<0xFF800000> : vector<8xf32>
    %50 = vector.multi_reduction <maximumf>, %49, %cst_30 [1] : vector<8x8xf32> to vector<8xf32>
    %51 = vector.shape_cast %50 : vector<8xf32> to vector<8x1xf32>
    %52 = vector.broadcast %51 : vector<8x1xf32> to vector<8x8xf32>
    %53 = arith.subf %49, %52 : vector<8x8xf32>
    %54 = math.exp %53 : vector<8x8xf32>
    %cst_31 = arith.constant dense<0.000000e+00> : vector<8xf32>
    %55 = vector.multi_reduction <add>, %54, %cst_31 [1] : vector<8x8xf32> to vector<8xf32>
    %56 = vector.shape_cast %55 : vector<8xf32> to vector<8x1xf32>
    %cst_32 = arith.constant dense<0.000000e+00> : vector<8x8xf32>
    %57 = tpu.matmul %54, %48, %cst_32 {dimension_numbers = #tpu.dot_dimension_numbers<[1], [0], [0], [1], [0, 0, 1, 1], [], []>} : vector<8x8xf32>, vector<8x8xf32>, vector<8x8xf32> -> vector<8x8xf32>
    %58 = tpu.reciprocal %56 : vector<8x1xf32> -> vector<8x1xf32>
    %59 = vector.broadcast %58 : vector<8x1xf32> to vector<8x8xf32>
    %60 = arith.mulf %57, %59 : vector<8x8xf32>
    %c0_33 = arith.constant 0 : index
    %c8 = arith.constant 8 : index
    %61 = vector.load %arg24[%c0_33, %c8] : memref<8x32xf32, #tpu.memory_space<vmem>>, vector<8x8xf32>
    tpu.vector_store %arg24[%c0_33, %c8], %60 {strides = array<i32>} : memref<8x32xf32, #tpu.memory_space<vmem>>, vector<8x8xf32>,
    %62 = vector.extract_strided_slice %19 {offsets = [0, 16], sizes = [8, 8], strides = [1, 1]} : vector<8x32xf32> to vector<8x8xf32>
    %63 = vector.extract_strided_slice %24 {offsets = [0, 16], sizes = [8, 8], strides = [1, 1]} : vector<8x32xf32> to vector<8x8xf32>
    %64 = vector.extract_strided_slice %29 {offsets = [0, 16], sizes = [8, 8], strides = [1, 1]} : vector<8x32xf32> to vector<8x8xf32>
    %cst_34 = arith.constant dense<0.000000e+00> : vector<8x8xf32>
    %65 = tpu.matmul %62, %63, %cst_34 {dimension_numbers = #tpu.dot_dimension_numbers<[1], [1], [0], [0], [0, 0, 1, 0], [], []>} : vector<8x8xf32>, vector<8x8xf32>, vector<8x8xf32> -> vector<8x8xf32>
    %cst_35 = arith.constant dense<0xFF800000> : vector<8xf32>
    %66 = vector.multi_reduction <maximumf>, %65, %cst_35 [1] : vector<8x8xf32> to vector<8xf32>
    %67 = vector.shape_cast %66 : vector<8xf32> to vector<8x1xf32>
    %68 = vector.broadcast %67 : vector<8x1xf32> to vector<8x8xf32>
    %69 = arith.subf %65, %68 : vector<8x8xf32>
    %70 = math.exp %69 : vector<8x8xf32>
    %cst_36 = arith.constant dense<0.000000e+00> : vector<8xf32>
    %71 = vector.multi_reduction <add>, %70, %cst_36 [1] : vector<8x8xf32> to vector<8xf32>
    %72 = vector.shape_cast %71 : vector<8xf32> to vector<8x1xf32>
    %cst_37 = arith.constant dense<0.000000e+00> : vector<8x8xf32>
    %73 = tpu.matmul %70, %64, %cst_37 {dimension_numbers = #tpu.dot_dimension_numbers<[1], [0], [0], [1], [0, 0, 1, 1], [], []>} : vector<8x8xf32>, vector<8x8xf32>, vector<8x8xf32> -> vector<8x8xf32>
    %74 = tpu.reciprocal %72 : vector<8x1xf32> -> vector<8x1xf32>
    %75 = vector.broadcast %74 : vector<8x1xf32> to vector<8x8xf32>
    %76 = arith.mulf %73, %75 : vector<8x8xf32>
    %c0_38 = arith.constant 0 : index
    %c16 = arith.constant 16 : index
    %77 = vector.load %arg24[%c0_38, %c16] : memref<8x32xf32, #tpu.memory_space<vmem>>, vector<8x8xf32>
    tpu.vector_store %arg24[%c0_38, %c16], %76 {strides = array<i32>} : memref<8x32xf32, #tpu.memory_space<vmem>>, vector<8x8xf32>,
    %78 = vector.extract_strided_slice %19 {offsets = [0, 24], sizes = [8, 8], strides = [1, 1]} : vector<8x32xf32> to vector<8x8xf32>
    %79 = vector.extract_strided_slice %24 {offsets = [0, 24], sizes = [8, 8], strides = [1, 1]} : vector<8x32xf32> to vector<8x8xf32>
    %80 = vector.extract_strided_slice %29 {offsets = [0, 24], sizes = [8, 8], strides = [1, 1]} : vector<8x32xf32> to vector<8x8xf32>
    %cst_39 = arith.constant dense<0.000000e+00> : vector<8x8xf32>
    %81 = tpu.matmul %78, %79, %cst_39 {dimension_numbers = #tpu.dot_dimension_numbers<[1], [1], [0], [0], [0, 0, 1, 0], [], []>} : vector<8x8xf32>, vector<8x8xf32>, vector<8x8xf32> -> vector<8x8xf32>
    %cst_40 = arith.constant dense<0xFF800000> : vector<8xf32>
    %82 = vector.multi_reduction <maximumf>, %81, %cst_40 [1] : vector<8x8xf32> to vector<8xf32>
    %83 = vector.shape_cast %82 : vector<8xf32> to vector<8x1xf32>
    %84 = vector.broadcast %83 : vector<8x1xf32> to vector<8x8xf32>
    %85 = arith.subf %81, %84 : vector<8x8xf32>
    %86 = math.exp %85 : vector<8x8xf32>
    %cst_41 = arith.constant dense<0.000000e+00> : vector<8xf32>
    %87 = vector.multi_reduction <add>, %86, %cst_41 [1] : vector<8x8xf32> to vector<8xf32>
    %88 = vector.shape_cast %87 : vector<8xf32> to vector<8x1xf32>
    %cst_42 = arith.constant dense<0.000000e+00> : vector<8x8xf32>
    %89 = tpu.matmul %86, %80, %cst_42 {dimension_numbers = #tpu.dot_dimension_numbers<[1], [0], [0], [1], [0, 0, 1, 1], [], []>} : vector<8x8xf32>, vector<8x8xf32>, vector<8x8xf32> -> vector<8x8xf32>
    %90 = tpu.reciprocal %88 : vector<8x1xf32> -> vector<8x1xf32>
    %91 = vector.broadcast %90 : vector<8x1xf32> to vector<8x8xf32>
    %92 = arith.mulf %89, %91 : vector<8x8xf32>
    %c0_43 = arith.constant 0 : index
    %c24 = arith.constant 24 : index
    %93 = vector.load %arg24[%c0_43, %c24] : memref<8x32xf32, #tpu.memory_space<vmem>>, vector<8x8xf32>
    tpu.vector_store %arg24[%c0_43, %c24], %92 {strides = array<i32>} : memref<8x32xf32, #tpu.memory_space<vmem>>, vector<8x8xf32>,
    %c0_44 = arith.constant 0 : index
    %c0_45 = arith.constant 0 : index
    %94 = vector.load %arg24[%c0_44, %c0_45] : memref<8x32xf32, #tpu.memory_space<vmem>>, vector<8x32xf32>
    %c0_46 = arith.constant 0 : index
    %c0_47 = arith.constant 0 : index
    %95 = vector.load %arg9[%c0_46, %c0_47] : memref<32x32xf32, #tpu.memory_space<vmem>>, vector<32x32xf32>
    %cst_48 = arith.constant dense<0.000000e+00> : vector<8x32xf32>
    %96 = tpu.matmul %94, %95, %cst_48 {dimension_numbers = #tpu.dot_dimension_numbers<[1], [0], [0], [1], [0, 0, 1, 1], [], []>} : vector<8x32xf32>, vector<32x32xf32>, vector<8x32xf32> -> vector<8x32xf32>
    %c0_49 = arith.constant 0 : index
    %c0_50 = arith.constant 0 : index
    %97 = vector.load %arg10[%c0_49, %c0_50] : memref<1x32xf32, #tpu.memory_space<vmem>>, vector<1x32xf32>
    %98 = vector.broadcast %97 : vector<1x32xf32> to vector<8x32xf32>
    %99 = arith.addf %96, %98 : vector<8x32xf32>
    %100 = arith.addf %4, %99 : vector<8x32xf32>
    %c0_51 = arith.constant 0 : index
    %c0_52 = arith.constant 0 : index
    %101 = vector.load %arg11[%c0_51, %c0_52] : memref<3x32xf32, #tpu.memory_space<vmem>>, vector<1x32xf32>
    %c1_53 = arith.constant 1 : index
    %c0_54 = arith.constant 0 : index
    %102 = vector.load %arg11[%c1_53, %c0_54] : memref<3x32xf32, #tpu.memory_space<vmem>>, vector<1x32xf32>
    %c2_55 = arith.constant 2 : index
    %c0_56 = arith.constant 0 : index
    %103 = vector.load %arg11[%c2_55, %c0_56] : memref<3x32xf32, #tpu.memory_space<vmem>>, vector<1x32xf32>
    %104 = vector.broadcast %103 : vector<1x32xf32> to vector<8x32xf32>
    %105 = arith.mulf %104, %100 : vector<8x32xf32>
    %106 = math.tanh %105 : vector<8x32xf32>
    %107 = vector.broadcast %101 : vector<1x32xf32> to vector<8x32xf32>
    %108 = arith.mulf %107, %106 : vector<8x32xf32>
    %109 = vector.broadcast %102 : vector<1x32xf32> to vector<8x32xf32>
    %110 = arith.addf %108, %109 : vector<8x32xf32>
    %c0_57 = arith.constant 0 : index
    %c0_58 = arith.constant 0 : index
    %c0_59 = arith.constant 0 : index
    %111 = vector.load %arg2[%c0_57, %c0_58, %c0_59] : memref<1x8x32xf32, #tpu.memory_space<vmem>>, vector<1x8x32xf32>
    %112 = vector.shape_cast %111 : vector<1x8x32xf32> to vector<8x32xf32>
    %c0_60 = arith.constant 0 : index
    %c0_61 = arith.constant 0 : index
    %113 = vector.load %arg15[%c0_60, %c0_61] : memref<3x32xf32, #tpu.memory_space<vmem>>, vector<1x32xf32>
    %c0_62 = arith.constant 0 : index
    %c0_63 = arith.constant 0 : index
    %114 = vector.load %arg12[%c0_62, %c0_63] : memref<32x32xf32, #tpu.memory_space<vmem>>, vector<32x32xf32>
    %cst_64 = arith.constant dense<0.000000e+00> : vector<8x32xf32>
    %115 = tpu.matmul %110, %114, %cst_64 {dimension_numbers = #tpu.dot_dimension_numbers<[1], [0], [0], [1], [0, 0, 1, 1], [], []>} : vector<8x32xf32>, vector<32x32xf32>, vector<8x32xf32> -> vector<8x32xf32>
    %116 = vector.broadcast %113 : vector<1x32xf32> to vector<8x32xf32>
    %117 = arith.addf %115, %116 : vector<8x32xf32>
    %c1_65 = arith.constant 1 : index
    %c0_66 = arith.constant 0 : index
    %118 = vector.load %arg15[%c1_65, %c0_66] : memref<3x32xf32, #tpu.memory_space<vmem>>, vector<1x32xf32>
    %c0_67 = arith.constant 0 : index
    %c0_68 = arith.constant 0 : index
    %119 = vector.load %arg13[%c0_67, %c0_68] : memref<32x32xf32, #tpu.memory_space<vmem>>, vector<32x32xf32>
    %cst_69 = arith.constant dense<0.000000e+00> : vector<8x32xf32>
    %120 = tpu.matmul %112, %119, %cst_69 {dimension_numbers = #tpu.dot_dimension_numbers<[1], [0], [0], [1], [0, 0, 1, 1], [], []>} : vector<8x32xf32>, vector<32x32xf32>, vector<8x32xf32> -> vector<8x32xf32>
    %121 = vector.broadcast %118 : vector<1x32xf32> to vector<8x32xf32>
    %122 = arith.addf %120, %121 : vector<8x32xf32>
    %c2_70 = arith.constant 2 : index
    %c0_71 = arith.constant 0 : index
    %123 = vector.load %arg15[%c2_70, %c0_71] : memref<3x32xf32, #tpu.memory_space<vmem>>, vector<1x32xf32>
    %c0_72 = arith.constant 0 : index
    %c0_73 = arith.constant 0 : index
    %124 = vector.load %arg14[%c0_72, %c0_73] : memref<32x32xf32, #tpu.memory_space<vmem>>, vector<32x32xf32>
    %cst_74 = arith.constant dense<0.000000e+00> : vector<8x32xf32>
    %125 = tpu.matmul %112, %124, %cst_74 {dimension_numbers = #tpu.dot_dimension_numbers<[1], [0], [0], [1], [0, 0, 1, 1], [], []>} : vector<8x32xf32>, vector<32x32xf32>, vector<8x32xf32> -> vector<8x32xf32>
    %126 = vector.broadcast %123 : vector<1x32xf32> to vector<8x32xf32>
    %127 = arith.addf %125, %126 : vector<8x32xf32>
    %128 = vector.extract_strided_slice %117 {offsets = [0, 0], sizes = [8, 8], strides = [1, 1]} : vector<8x32xf32> to vector<8x8xf32>
    %129 = vector.extract_strided_slice %122 {offsets = [0, 0], sizes = [8, 8], strides = [1, 1]} : vector<8x32xf32> to vector<8x8xf32>
    %130 = vector.extract_strided_slice %127 {offsets = [0, 0], sizes = [8, 8], strides = [1, 1]} : vector<8x32xf32> to vector<8x8xf32>
    %cst_75 = arith.constant dense<0.000000e+00> : vector<8x8xf32>
    %131 = tpu.matmul %128, %129, %cst_75 {dimension_numbers = #tpu.dot_dimension_numbers<[1], [1], [0], [0], [0, 0, 1, 0], [], []>} : vector<8x8xf32>, vector<8x8xf32>, vector<8x8xf32> -> vector<8x8xf32>
    %cst_76 = arith.constant dense<0xFF800000> : vector<8xf32>
    %132 = vector.multi_reduction <maximumf>, %131, %cst_76 [1] : vector<8x8xf32> to vector<8xf32>
    %133 = vector.shape_cast %132 : vector<8xf32> to vector<8x1xf32>
    %134 = vector.broadcast %133 : vector<8x1xf32> to vector<8x8xf32>
    %135 = arith.subf %131, %134 : vector<8x8xf32>
    %136 = math.exp %135 : vector<8x8xf32>
    %cst_77 = arith.constant dense<0.000000e+00> : vector<8xf32>
    %137 = vector.multi_reduction <add>, %136, %cst_77 [1] : vector<8x8xf32> to vector<8xf32>
    %138 = vector.shape_cast %137 : vector<8xf32> to vector<8x1xf32>
    %cst_78 = arith.constant dense<0.000000e+00> : vector<8x8xf32>
    %139 = tpu.matmul %136, %130, %cst_78 {dimension_numbers = #tpu.dot_dimension_numbers<[1], [0], [0], [1], [0, 0, 1, 1], [], []>} : vector<8x8xf32>, vector<8x8xf32>, vector<8x8xf32> -> vector<8x8xf32>
    %140 = tpu.reciprocal %138 : vector<8x1xf32> -> vector<8x1xf32>
    %141 = vector.broadcast %140 : vector<8x1xf32> to vector<8x8xf32>
    %142 = arith.mulf %139, %141 : vector<8x8xf32>
    %c0_79 = arith.constant 0 : index
    %c0_80 = arith.constant 0 : index
    %143 = vector.load %arg24[%c0_79, %c0_80] : memref<8x32xf32, #tpu.memory_space<vmem>>, vector<8x8xf32>
    tpu.vector_store %arg24[%c0_79, %c0_80], %142 {strides = array<i32>} : memref<8x32xf32, #tpu.memory_space<vmem>>, vector<8x8xf32>,
    %144 = vector.extract_strided_slice %117 {offsets = [0, 8], sizes = [8, 8], strides = [1, 1]} : vector<8x32xf32> to vector<8x8xf32>
    %145 = vector.extract_strided_slice %122 {offsets = [0, 8], sizes = [8, 8], strides = [1, 1]} : vector<8x32xf32> to vector<8x8xf32>
    %146 = vector.extract_strided_slice %127 {offsets = [0, 8], sizes = [8, 8], strides = [1, 1]} : vector<8x32xf32> to vector<8x8xf32>
    %cst_81 = arith.constant dense<0.000000e+00> : vector<8x8xf32>
    %147 = tpu.matmul %144, %145, %cst_81 {dimension_numbers = #tpu.dot_dimension_numbers<[1], [1], [0], [0], [0, 0, 1, 0], [], []>} : vector<8x8xf32>, vector<8x8xf32>, vector<8x8xf32> -> vector<8x8xf32>
    %cst_82 = arith.constant dense<0xFF800000> : vector<8xf32>
    %148 = vector.multi_reduction <maximumf>, %147, %cst_82 [1] : vector<8x8xf32> to vector<8xf32>
    %149 = vector.shape_cast %148 : vector<8xf32> to vector<8x1xf32>
    %150 = vector.broadcast %149 : vector<8x1xf32> to vector<8x8xf32>
    %151 = arith.subf %147, %150 : vector<8x8xf32>
    %152 = math.exp %151 : vector<8x8xf32>
    %cst_83 = arith.constant dense<0.000000e+00> : vector<8xf32>
    %153 = vector.multi_reduction <add>, %152, %cst_83 [1] : vector<8x8xf32> to vector<8xf32>
    %154 = vector.shape_cast %153 : vector<8xf32> to vector<8x1xf32>
    %cst_84 = arith.constant dense<0.000000e+00> : vector<8x8xf32>
    %155 = tpu.matmul %152, %146, %cst_84 {dimension_numbers = #tpu.dot_dimension_numbers<[1], [0], [0], [1], [0, 0, 1, 1], [], []>} : vector<8x8xf32>, vector<8x8xf32>, vector<8x8xf32> -> vector<8x8xf32>
    %156 = tpu.reciprocal %154 : vector<8x1xf32> -> vector<8x1xf32>
    %157 = vector.broadcast %156 : vector<8x1xf32> to vector<8x8xf32>
    %158 = arith.mulf %155, %157 : vector<8x8xf32>
    %c0_85 = arith.constant 0 : index
    %c8_86 = arith.constant 8 : index
    %159 = vector.load %arg24[%c0_85, %c8_86] : memref<8x32xf32, #tpu.memory_space<vmem>>, vector<8x8xf32>
    tpu.vector_store %arg24[%c0_85, %c8_86], %158 {strides = array<i32>} : memref<8x32xf32, #tpu.memory_space<vmem>>, vector<8x8xf32>,
    %160 = vector.extract_strided_slice %117 {offsets = [0, 16], sizes = [8, 8], strides = [1, 1]} : vector<8x32xf32> to vector<8x8xf32>
    %161 = vector.extract_strided_slice %122 {offsets = [0, 16], sizes = [8, 8], strides = [1, 1]} : vector<8x32xf32> to vector<8x8xf32>
    %162 = vector.extract_strided_slice %127 {offsets = [0, 16], sizes = [8, 8], strides = [1, 1]} : vector<8x32xf32> to vector<8x8xf32>
    %cst_87 = arith.constant dense<0.000000e+00> : vector<8x8xf32>
    %163 = tpu.matmul %160, %161, %cst_87 {dimension_numbers = #tpu.dot_dimension_numbers<[1], [1], [0], [0], [0, 0, 1, 0], [], []>} : vector<8x8xf32>, vector<8x8xf32>, vector<8x8xf32> -> vector<8x8xf32>
    %cst_88 = arith.constant dense<0xFF800000> : vector<8xf32>
    %164 = vector.multi_reduction <maximumf>, %163, %cst_88 [1] : vector<8x8xf32> to vector<8xf32>
    %165 = vector.shape_cast %164 : vector<8xf32> to vector<8x1xf32>
    %166 = vector.broadcast %165 : vector<8x1xf32> to vector<8x8xf32>
    %167 = arith.subf %163, %166 : vector<8x8xf32>
    %168 = math.exp %167 : vector<8x8xf32>
    %cst_89 = arith.constant dense<0.000000e+00> : vector<8xf32>
    %169 = vector.multi_reduction <add>, %168, %cst_89 [1] : vector<8x8xf32> to vector<8xf32>
    %170 = vector.shape_cast %169 : vector<8xf32> to vector<8x1xf32>
    %cst_90 = arith.constant dense<0.000000e+00> : vector<8x8xf32>
    %171 = tpu.matmul %168, %162, %cst_90 {dimension_numbers = #tpu.dot_dimension_numbers<[1], [0], [0], [1], [0, 0, 1, 1], [], []>} : vector<8x8xf32>, vector<8x8xf32>, vector<8x8xf32> -> vector<8x8xf32>
    %172 = tpu.reciprocal %170 : vector<8x1xf32> -> vector<8x1xf32>
    %173 = vector.broadcast %172 : vector<8x1xf32> to vector<8x8xf32>
    %174 = arith.mulf %171, %173 : vector<8x8xf32>
    %c0_91 = arith.constant 0 : index
    %c16_92 = arith.constant 16 : index
    %175 = vector.load %arg24[%c0_91, %c16_92] : memref<8x32xf32, #tpu.memory_space<vmem>>, vector<8x8xf32>
    tpu.vector_store %arg24[%c0_91, %c16_92], %174 {strides = array<i32>} : memref<8x32xf32, #tpu.memory_space<vmem>>, vector<8x8xf32>,
    %176 = vector.extract_strided_slice %117 {offsets = [0, 24], sizes = [8, 8], strides = [1, 1]} : vector<8x32xf32> to vector<8x8xf32>
    %177 = vector.extract_strided_slice %122 {offsets = [0, 24], sizes = [8, 8], strides = [1, 1]} : vector<8x32xf32> to vector<8x8xf32>
    %178 = vector.extract_strided_slice %127 {offsets = [0, 24], sizes = [8, 8], strides = [1, 1]} : vector<8x32xf32> to vector<8x8xf32>
    %cst_93 = arith.constant dense<0.000000e+00> : vector<8x8xf32>
    %179 = tpu.matmul %176, %177, %cst_93 {dimension_numbers = #tpu.dot_dimension_numbers<[1], [1], [0], [0], [0, 0, 1, 0], [], []>} : vector<8x8xf32>, vector<8x8xf32>, vector<8x8xf32> -> vector<8x8xf32>
    %cst_94 = arith.constant dense<0xFF800000> : vector<8xf32>
    %180 = vector.multi_reduction <maximumf>, %179, %cst_94 [1] : vector<8x8xf32> to vector<8xf32>
    %181 = vector.shape_cast %180 : vector<8xf32> to vector<8x1xf32>
    %182 = vector.broadcast %181 : vector<8x1xf32> to vector<8x8xf32>
    %183 = arith.subf %179, %182 : vector<8x8xf32>
    %184 = math.exp %183 : vector<8x8xf32>
    %cst_95 = arith.constant dense<0.000000e+00> : vector<8xf32>
    %185 = vector.multi_reduction <add>, %184, %cst_95 [1] : vector<8x8xf32> to vector<8xf32>
    %186 = vector.shape_cast %185 : vector<8xf32> to vector<8x1xf32>
    %cst_96 = arith.constant dense<0.000000e+00> : vector<8x8xf32>
    %187 = tpu.matmul %184, %178, %cst_96 {dimension_numbers = #tpu.dot_dimension_numbers<[1], [0], [0], [1], [0, 0, 1, 1], [], []>} : vector<8x8xf32>, vector<8x8xf32>, vector<8x8xf32> -> vector<8x8xf32>
    %188 = tpu.reciprocal %186 : vector<8x1xf32> -> vector<8x1xf32>
    %189 = vector.broadcast %188 : vector<8x1xf32> to vector<8x8xf32>
    %190 = arith.mulf %187, %189 : vector<8x8xf32>
    %c0_97 = arith.constant 0 : index
    %c24_98 = arith.constant 24 : index
    %191 = vector.load %arg24[%c0_97, %c24_98] : memref<8x32xf32, #tpu.memory_space<vmem>>, vector<8x8xf32>
    tpu.vector_store %arg24[%c0_97, %c24_98], %190 {strides = array<i32>} : memref<8x32xf32, #tpu.memory_space<vmem>>, vector<8x8xf32>,
    %c0_99 = arith.constant 0 : index
    %c0_100 = arith.constant 0 : index
    %192 = vector.load %arg24[%c0_99, %c0_100] : memref<8x32xf32, #tpu.memory_space<vmem>>, vector<8x32xf32>
    %c0_101 = arith.constant 0 : index
    %c0_102 = arith.constant 0 : index
    %193 = vector.load %arg16[%c0_101, %c0_102] : memref<32x32xf32, #tpu.memory_space<vmem>>, vector<32x32xf32>
    %cst_103 = arith.constant dense<0.000000e+00> : vector<8x32xf32>
    %194 = tpu.matmul %192, %193, %cst_103 {dimension_numbers = #tpu.dot_dimension_numbers<[1], [0], [0], [1], [0, 0, 1, 1], [], []>} : vector<8x32xf32>, vector<32x32xf32>, vector<8x32xf32> -> vector<8x32xf32>
    %c0_104 = arith.constant 0 : index
    %c0_105 = arith.constant 0 : index
    %195 = vector.load %arg17[%c0_104, %c0_105] : memref<1x32xf32, #tpu.memory_space<vmem>>, vector<1x32xf32>
    %196 = vector.broadcast %195 : vector<1x32xf32> to vector<8x32xf32>
    %197 = arith.addf %194, %196 : vector<8x32xf32>
    %198 = arith.addf %100, %197 : vector<8x32xf32>
    %c0_106 = arith.constant 0 : index
    %c0_107 = arith.constant 0 : index
    %199 = vector.load %arg18[%c0_106, %c0_107] : memref<3x32xf32, #tpu.memory_space<vmem>>, vector<1x32xf32>
    %c1_108 = arith.constant 1 : index
    %c0_109 = arith.constant 0 : index
    %200 = vector.load %arg18[%c1_108, %c0_109] : memref<3x32xf32, #tpu.memory_space<vmem>>, vector<1x32xf32>
    %c2_110 = arith.constant 2 : index
    %c0_111 = arith.constant 0 : index
    %201 = vector.load %arg18[%c2_110, %c0_111] : memref<3x32xf32, #tpu.memory_space<vmem>>, vector<1x32xf32>
    %202 = vector.broadcast %201 : vector<1x32xf32> to vector<8x32xf32>
    %203 = arith.mulf %202, %198 : vector<8x32xf32>
    %204 = math.tanh %203 : vector<8x32xf32>
    %205 = vector.broadcast %199 : vector<1x32xf32> to vector<8x32xf32>
    %206 = arith.mulf %205, %204 : vector<8x32xf32>
    %207 = vector.broadcast %200 : vector<1x32xf32> to vector<8x32xf32>
    %208 = arith.addf %206, %207 : vector<8x32xf32>
    %c0_112 = arith.constant 0 : index
    %c0_113 = arith.constant 0 : index
    %209 = vector.load %arg19[%c0_112, %c0_113] : memref<32x128xf32, #tpu.memory_space<vmem>>, vector<32x128xf32>
    %cst_114 = arith.constant dense<0.000000e+00> : vector<8x128xf32>
    %210 = tpu.matmul %208, %209, %cst_114 {dimension_numbers = #tpu.dot_dimension_numbers<[1], [0], [0], [1], [0, 0, 1, 1], [], []>} : vector<8x32xf32>, vector<32x128xf32>, vector<8x128xf32> -> vector<8x128xf32>
    %c0_115 = arith.constant 0 : index
    %c0_116 = arith.constant 0 : index
    %211 = vector.load %arg20[%c0_115, %c0_116] : memref<1x128xf32, #tpu.memory_space<vmem>>, vector<1x128xf32>
    %212 = vector.broadcast %211 : vector<1x128xf32> to vector<8x128xf32>
    %213 = arith.addf %210, %212 : vector<8x128xf32>
    %cst_117 = arith.constant 5.000000e-01 : f32
    %214 = vector.broadcast %cst_117 : f32 to vector<8x128xf32>
    %215 = arith.mulf %214, %213 : vector<8x128xf32>
    %cst_118 = arith.constant 4.471500e-02 : f32
    %216 = vector.broadcast %cst_118 : f32 to vector<8x128xf32>
    %217 = arith.mulf %216, %213 : vector<8x128xf32>
    %218 = arith.mulf %217, %213 : vector<8x128xf32>
    %219 = arith.mulf %218, %213 : vector<8x128xf32>
    %220 = arith.addf %213, %219 : vector<8x128xf32>
    %cst_119 = arith.constant 0.797884583 : f32
    %221 = vector.broadcast %cst_119 : f32 to vector<8x128xf32>
    %222 = arith.mulf %221, %220 : vector<8x128xf32>
    %223 = math.tanh %222 : vector<8x128xf32>
    %cst_120 = arith.constant 1.000000e+00 : f32
    %224 = vector.broadcast %cst_120 : f32 to vector<8x128xf32>
    %225 = arith.addf %224, %223 : vector<8x128xf32>
    %226 = arith.mulf %215, %225 : vector<8x128xf32>
    %c0_121 = arith.constant 0 : index
    %c0_122 = arith.constant 0 : index
    %227 = vector.load %arg21[%c0_121, %c0_122] : memref<128x32xf32, #tpu.memory_space<vmem>>, vector<128x32xf32>
    %cst_123 = arith.constant dense<0.000000e+00> : vector<8x32xf32>
    %228 = tpu.matmul %226, %227, %cst_123 {dimension_numbers = #tpu.dot_dimension_numbers<[1], [0], [0], [1], [0, 0, 1, 1], [], []>} : vector<8x128xf32>, vector<128x32xf32>, vector<8x32xf32> -> vector<8x32xf32>
    %c0_124 = arith.constant 0 : index
    %c0_125 = arith.constant 0 : index
    %229 = vector.load %arg22[%c0_124, %c0_125] : memref<1x32xf32, #tpu.memory_space<vmem>>, vector<1x32xf32>
    %230 = vector.broadcast %229 : vector<1x32xf32> to vector<8x32xf32>
    %231 = arith.addf %228, %230 : vector<8x32xf32>
    %232 = arith.addf %198, %231 : vector<8x32xf32>
    %c0_126 = arith.constant 0 : index
    %c0_127 = arith.constant 0 : index
    %c0_128 = arith.constant 0 : index
    %233 = vector.load %arg23[%c0_126, %c0_127, %c0_128] : memref<1x8x32xf32, #tpu.memory_space<vmem>>, vector<1x8x32xf32>
    %234 = vector.shape_cast %233 : vector<1x8x32xf32> to vector<8x32xf32>
    %235 = vector.shape_cast %232 : vector<8x32xf32> to vector<1x8x32xf32>
    tpu.vector_store %arg23[%c0_126, %c0_127, %c0_128], %235 {strides = array<i32>} : memref<1x8x32xf32, #tpu.memory_space<vmem>>, vector<1x8x32xf32>,
    return
  }
  func.func @transform_0(%arg0: i32) -> (i32, i32, i32) {
    %c0_i32 = arith.constant 0 : i32
    %c0_i32_0 = arith.constant 0 : i32
    %c0_i32_1 = arith.constant 0 : i32
    return %arg0, %c0_i32, %c0_i32_0 : i32, i32, i32
  }
  func.func @transform_1(%arg0: i32) -> (i32, i32, i32) {
    %c0_i32 = arith.constant 0 : i32
    %c0_i32_0 = arith.constant 0 : i32
    %c0_i32_1 = arith.constant 0 : i32
    return %arg0, %c0_i32, %c0_i32_0 : i32, i32, i32
  }
  func.func @transform_2(%arg0: i32) -> (i32, i32, i32) {
    %c0_i32 = arith.constant 0 : i32
    %c0_i32_0 = arith.constant 0 : i32
    %c0_i32_1 = arith.constant 0 : i32
    %c0_i32_2 = arith.constant 0 : i32
    return %c0_i32, %c0_i32_0, %c0_i32_1 : i32, i32, i32
  }
  func.func @transform_3(%arg0: i32) -> (i32, i32) {
    %c0_i32 = arith.constant 0 : i32
    %c0_i32_0 = arith.constant 0 : i32
    %c0_i32_1 = arith.constant 0 : i32
    return %c0_i32, %c0_i32_0 : i32, i32
  }
  func.func @transform_4(%arg0: i32) -> (i32, i32) {
    %c0_i32 = arith.constant 0 : i32
    %c0_i32_0 = arith.constant 0 : i32
    %c0_i32_1 = arith.constant 0 : i32
    return %c0_i32, %c0_i32_0 : i32, i32
  }
  func.func @transform_5(%arg0: i32) -> (i32, i32) {
    %c0_i32 = arith.constant 0 : i32
    %c0_i32_0 = arith.constant 0 : i32
    %c0_i32_1 = arith.constant 0 : i32
    return %c0_i32, %c0_i32_0 : i32, i32
  }
  func.func @transform_6(%arg0: i32) -> (i32, i32) {
    %c0_i32 = arith.constant 0 : i32
    %c0_i32_0 = arith.constant 0 : i32
    %c0_i32_1 = arith.constant 0 : i32
    return %c0_i32, %c0_i32_0 : i32, i32
  }
  func.func @transform_7(%arg0: i32) -> (i32, i32) {
    %c0_i32 = arith.constant 0 : i32
    %c0_i32_0 = arith.constant 0 : i32
    %c0_i32_1 = arith.constant 0 : i32
    return %c0_i32, %c0_i32_0 : i32, i32
  }
  func.func @transform_8(%arg0: i32) -> (i32, i32) {
    %c0_i32 = arith.constant 0 : i32
    %c0_i32_0 = arith.constant 0 : i32
    %c0_i32_1 = arith.constant 0 : i32
    return %c0_i32, %c0_i32_0 : i32, i32
  }
  func.func @transform_9(%arg0: i32) -> (i32, i32) {
    %c0_i32 = arith.constant 0 : i32
    %c0_i32_0 = arith.constant 0 : i32
    %c0_i32_1 = arith.constant 0 : i32
    return %c0_i32, %c0_i32_0 : i32, i32
  }
  func.func @transform_10(%arg0: i32) -> (i32, i32) {
    %c0_i32 = arith.constant 0 : i32
    %c0_i32_0 = arith.constant 0 : i32
    %c0_i32_1 = arith.constant 0 : i32
    return %c0_i32, %c0_i32_0 : i32, i32
  }
  func.func @transform_11(%arg0: i32) -> (i32, i32) {
    %c0_i32 = arith.constant 0 : i32
    %c0_i32_0 = arith.constant 0 : i32
    %c0_i32_1 = arith.constant 0 : i32
    return %c0_i32, %c0_i32_0 : i32, i32
  }
  func.func @transform_12(%arg0: i32) -> (i32, i32) {
    %c0_i32 = arith.constant 0 : i32
    %c0_i32_0 = arith.constant 0 : i32
    %c0_i32_1 = arith.constant 0 : i32
    return %c0_i32, %c0_i32_0 : i32, i32
  }
  func.func @transform_13(%arg0: i32) -> (i32, i32) {
    %c0_i32 = arith.constant 0 : i32
    %c0_i32_0 = arith.constant 0 : i32
    %c0_i32_1 = arith.constant 0 : i32
    return %c0_i32, %c0_i32_0 : i32, i32
  }
  func.func @transform_14(%arg0: i32) -> (i32, i32) {
    %c0_i32 = arith.constant 0 : i32
    %c0_i32_0 = arith.constant 0 : i32
    %c0_i32_1 = arith.constant 0 : i32
    return %c0_i32, %c0_i32_0 : i32, i32
  }
  func.func @transform_15(%arg0: i32) -> (i32, i32) {
    %c0_i32 = arith.constant 0 : i32
    %c0_i32_0 = arith.constant 0 : i32
    %c0_i32_1 = arith.constant 0 : i32
    return %c0_i32, %c0_i32_0 : i32, i32
  }
  func.func @transform_16(%arg0: i32) -> (i32, i32) {
    %c0_i32 = arith.constant 0 : i32
    %c0_i32_0 = arith.constant 0 : i32
    %c0_i32_1 = arith.constant 0 : i32
    return %c0_i32, %c0_i32_0 : i32, i32
  }
  func.func @transform_17(%arg0: i32) -> (i32, i32) {
    %c0_i32 = arith.constant 0 : i32
    %c0_i32_0 = arith.constant 0 : i32
    %c0_i32_1 = arith.constant 0 : i32
    return %c0_i32, %c0_i32_0 : i32, i32
  }
  func.func @transform_18(%arg0: i32) -> (i32, i32) {
    %c0_i32 = arith.constant 0 : i32
    %c0_i32_0 = arith.constant 0 : i32
    %c0_i32_1 = arith.constant 0 : i32
    return %c0_i32, %c0_i32_0 : i32, i32
  }
  func.func @transform_19(%arg0: i32) -> (i32, i32) {
    %c0_i32 = arith.constant 0 : i32
    %c0_i32_0 = arith.constant 0 : i32
    %c0_i32_1 = arith.constant 0 : i32
    return %c0_i32, %c0_i32_0 : i32, i32
  }
  func.func @transform_20(%arg0: i32) -> (i32, i32) {
    %c0_i32 = arith.constant 0 : i32
    %c0_i32_0 = arith.constant 0 : i32
    %c0_i32_1 = arith.constant 0 : i32
    return %c0_i32, %c0_i32_0 : i32, i32
  }
  func.func @transform_21(%arg0: i32) -> (i32, i32) {
    %c0_i32 = arith.constant 0 : i32
    %c0_i32_0 = arith.constant 0 : i32
    %c0_i32_1 = arith.constant 0 : i32
    return %c0_i32, %c0_i32_0 : i32, i32
  }
  func.func @transform_22(%arg0: i32) -> (i32, i32, i32) {
    %c0_i32 = arith.constant 0 : i32
    %c0_i32_0 = arith.constant 0 : i32
    %c0_i32_1 = arith.constant 0 : i32
    return %arg0, %c0_i32, %c0_i32_0 : i32, i32, i32
  }
}

</mosaic_0001>

<bundles_post_ra>
// kernel: tpu_custom_call.1
= control target key start
LH: loop header
LB: loop body
LE: loop exit
PB: predicated region body
PF: predicated region fallthrough
CT: control target
= control target key end

     0   :  { %s6097_s0 = inlined_call_operand.hbm [shape: f32[2,8,32], index: 0, kind: input, shape index: {}]   ;;  %s6098_s1 = inlined_call_operand.hbm [shape: f32[2,8,32], index: 1, kind: input, shape index: {}]   ;;  %s6099_s2 = inlined_call_operand.hbm [shape: f32[1,8,32], index: 2, kind: input, shape index: {}]   ;;  %s6100_s3 = inlined_call_operand.hbm [shape: f32[3,32], index: 3, kind: input, shape index: {}]   ;;  %s6101_s4 = inlined_call_operand.hbm [shape: f32[32,32], index: 4, kind: input, shape index: {}]   ;;  %s6102_s5 = inlined_call_operand.hbm [shape: f32[32,32], index: 5, kind: input, shape index: {}]   ;;  %s6103_s6 = inlined_call_operand.hbm [shape: f32[32,32], index: 6, kind: input, shape index: {}]   ;;  %s6104_s7 = inlined_call_operand.hbm [shape: f32[3,32], index: 7, kind: input, shape index: {}]   ;;  %s6105_s8 = inlined_call_operand.hbm [shape: f32[32,32], index: 8, kind: input, shape index: {}]   ;;  %s6106_s9 = inlined_call_operand.hbm [shape: f32[1,32], index: 9, kind: input, shape index: {}]   ;;  %s6107_s10 = inlined_call_operand.hbm [shape: f32[3,32], index: 10, kind: input, shape index: {}]   ;;  %s6108_s11 = inlined_call_operand.hbm [shape: f32[32,32], index: 11, kind: input, shape index: {}]   ;;  %s6109_s12 = inlined_call_operand.hbm [shape: f32[32,32], index: 12, kind: input, shape index: {}]   ;;  %s6110_s13 = inlined_call_operand.hbm [shape: f32[32,32], index: 13, kind: input, shape index: {}]   ;;  %s6111_s14 = inlined_call_operand.hbm [shape: f32[3,32], index: 14, kind: input, shape index: {}]   ;;  %s6112_s15 = inlined_call_operand.hbm [shape: f32[32,32], index: 15, kind: input, shape index: {}]   ;;  %s6113_s16 = inlined_call_operand.hbm [shape: f32[1,32], index: 16, kind: input, shape index: {}]   ;;  %s6114_s17 = inlined_call_operand.hbm [shape: f32[3,32], index: 17, kind: input, shape index: {}]   ;;  %s6115_s18 = inlined_call_operand.hbm [shape: f32[32,128], index: 18, kind: input, shape index: {}]   ;;  %s6116_s19 = inlined_call_operand.hbm [shape: f32[1,128], index: 19, kind: input, shape index: {}]   ;;  %s6117_s20 = inlined_call_operand.hbm [shape: f32[128,32], index: 20, kind: input, shape index: {}]   ;;  %s6118_s21 = inlined_call_operand.hbm [shape: f32[1,32], index: 21, kind: input, shape index: {}]   ;;  %s6119_s22 = inlined_call_operand.hbm [shape: f32[2,8,32], index: 22, kind: output, shape index: {}]  }
   0x1   :  { %6147 = sst [smem:[#allocation59_spill]] %s6097_s0 }
   0x2   :  { %6148 = sst [smem:[#allocation60_spill]] %s6098_s1 }
   0x3   :  { %6149 = sst [smem:[#allocation61_spill]] %s6099_s2 }
   0x4   :  { %6150 = sst [smem:[#allocation62_spill]] %s6100_s3 }
   0x5   :  { %6151 = sst [smem:[#allocation63_spill]] %s6101_s4 }
   0x6   :  { %6152 = sst [smem:[#allocation64_spill]] %s6102_s5 }
   0x7   :  { %6153 = sst [smem:[#allocation65_spill]] %s6103_s6 }
   0x8   :  { %6154 = sst [smem:[#allocation66_spill]] %s6104_s7 }
   0x9   :  { %6155 = sst [smem:[#allocation67_spill]] %s6105_s8 }
   0xa   :  { %6156 = sst [smem:[#allocation68_spill]] %s6106_s9 }
   0xb   :  { %6157 = sst [smem:[#allocation69_spill]] %s6107_s10 }
   0xc   :  { %6158 = sst [smem:[#allocation70_spill]] %s6108_s11 }
   0xd   :  { %6159 = sst [smem:[#allocation71_spill]] %s6109_s12 }
   0xe   :  { %6160 = sst [smem:[#allocation72_spill]] %s6110_s13 }
   0xf   :  { %6161 = sst [smem:[#allocation73_spill]] %s6111_s14 }
  0x10   :  { %6162 = sst [smem:[#allocation74_spill]] %s6112_s15 }
  0x11   :  { %6163 = sst [smem:[#allocation75_spill]] %s6115_s18 }
  0x12   :  { %6164 = sst [smem:[#allocation76_spill]] %s6117_s20 }
  0x13   :  { %6165 = sst [smem:[#allocation77_spill]] %s6118_s21 }
  0x14   :  { %6166 = sst [smem:[#allocation78_spill]] %s6119_s22 }
  0x15   :  { %27 = vsyncpa [#allocation4], 0 }
  0x16   :  { %29 = vsyncpa [#allocation4 + $0x1], 0 }
  0x17   :  { %30 = vsyncpa [#allocation7], 0 }
  0x18   :  { %32 = vsyncpa [#allocation7 + $0x1], 0 }
  0x19   :  { %33 = vsyncpa [#allocation10], 0 }
  0x1a   :  { %34 = vsyncpa [#allocation13], 0 }
  0x1b   :  { %35 = vsyncpa [#allocation16], 0 }
  0x1c   :  { %36 = vsyncpa [#allocation19], 0 }
  0x1d   :  { %37 = vsyncpa [#allocation22], 0 }
  0x1e   :  { %38 = vsyncpa [#allocation25], 0 }
  0x1f   :  { %39 = vsyncpa [#allocation28], 0 }
  0x20   :  { %40 = vsyncpa [#allocation31], 0 }
  0x21   :  { %41 = vsyncpa [#allocation34], 0 }
  0x22   :  { %42 = vsyncpa [#allocation37], 0 }
  0x23   :  { %43 = vsyncpa [#allocation5], 0 }
  0x24   :  { %45 = vsyncpa [#allocation5 + $0x1], 0  ;;  %s5237_s3 = smov 0   ;;  %s5239_s28 = smov 0  }
  0x25   :  { %s5241_s29 = smov 0   ;;  %s5243_s30 = smov 0  }
  0x26 LB: > { %6167 = sst [smem:[#allocation53_spill]] %s5074_s3  ;;  %s5088_s4 = smov [#allocation8]   ;;  %s5086_s30 = sphi %s5243_s30, %s5688_s30   ;;  %s5082_s29 = sphi %s5241_s29, %s6245_s29   ;;  %s5078_s28 = sphi %s5239_s28, %s6242_s28   ;;  %s5074_s3 = sphi %s5237_s3, %s6244_s3  }
  0x27   : > { %6168 = sst [smem:[#allocation54_spill]] %s5078_s28  ;;  %s567_s0 = sshll.u32 %s5088_s4, 4  ;;  %s568_s0 = int_to_ptr.vmem [resolvable:$true] %s567_s0 }
  0x28   : > { %6169 = sst [smem:[#allocation55_spill]] %s5082_s29  ;;  %s5258_s23 = sadd.s32 4294967295, %s5086_s30  }
  0x29   : > { %6170 = sst [smem:[#allocation56_spill]] %s5086_s30  ;;  %p3557_p0 = scmp.ge.s32.totalorder %s5086_s30, 1 }
  0x2a   : > { %6171 = sst [smem:[#allocation57_spill]] %s5258_s23  ;;  %p6132_p1 = scmp.eq.s32.totalorder %s5258_s23, 0 }
  0x2b   : > { %p554_p2 = scmp.lt.s32.totalorder %s5086_s30, 3  ;;  %s5089_s5 = smov [#allocation9]  }
  0x2c   : > { %s578_s24 = sshll.u32 %s5089_s5, 4  ;;  %s5090_s25 = smov [#allocation12]   ;;  %s5270_s24 = int_to_ptr.vmem [resolvable:$true] %s578_s24 }
  0x2d   : > { %p5263_p3 = pnand %p3557_p0, %p554_p2  ;;  %s601_s26 = sshll.u32 %s5090_s25, 4  ;;  %s5278_s26 = int_to_ptr.vmem [resolvable:$true] %s601_s26 }
  0x2e   : > { %s6175_s4 = sld [smem:[#allocation61_spill]] }
  0x2f   : > { %s6172_s1 = scalar_select %p5263_p3, 1, 0 }
  0x30   : > { %p4135_p5 = pneg %p5263_p3 }
  0x31   : > { %6173 = sst [smem:[#allocation58_spill]] %s6172_s1 }
  0x32   : > { %p5274_p6 = pnand %p4135_p5, %p6132_p1 }
  0x34   : > { %s4352_s22 = scalar_lea.hbm %s6175_s4, 128  ;;  %p5288_p8 = pneg %p5274_p6 }
  0x35   : > { %p4353_p7 = scmp.ne.s32.totalorder %s6175_s4, %s4352_s22  ;;  %p4359_p11 = scmp.lt.u32.totalorder %s4352_s22, %s6175_s4 }
  0x37   : > { %p4355_p9 = pnand %p5288_p8, %p4353_p7 }
  0x39   : > { %p4356_p10 = pneg %p4355_p9 }
  0x3b   : > { %p4361_p12 = pnand %p4359_p11, %p4356_p10 }
  0x3d   : > { %4364 = shalt.err (!%p4361_p12)
}
  0x3e   : > { %s4365_s2 = scalar_lea.vmem %s568_s0, 128  ;;  %p4373_p5 = scmp.lt.s32.totalorder %s568_s0, %s568_s0 }
  0x3f   : > { %p4366_p13 = scmp.ne.s32.totalorder %s568_s0, %s4365_s2  ;;  %p4374_p4 = scmp.lt.s32.totalorder %s4365_s2, %s4365_s2 }
  0x41   : > { %p4368_p0 = pnand %p4366_p13, %p5288_p8  ;;  %p4375_p1 = por %p4374_p4, %p4373_p5 }
  0x43   : > { %p4369_p2 = pneg %p4368_p0 }
  0x45   : > { %p4376_p3 = pnand %p4375_p1, %p4369_p2 }
  0x47   : > { %4379 = shalt.err (!%p4376_p3)
}
  0x48   : > { %4138 = dma.hbm_to_vmem [thread:$0]  (!%p5274_p6), %s6175_s4, 128, %s568_s0, [#allocation7]  }
  0x49   : > { %s6177_s27 = sld [smem:[#allocation62_spill]] }
  0x4f   : > { %s4380_s25 = scalar_lea.hbm %s6177_s27, 64 }
  0x50   : > { %p4381_p7 = scmp.ne.s32.totalorder %s6177_s27, %s4380_s25  ;;  %p4387_p1 = scmp.lt.u32.totalorder %s4380_s25, %s6177_s27 }
  0x52   : > { %p4383_p9 = pnand %p4381_p7, %p5288_p8 }
  0x54   : > { %p4384_p4 = pneg %p4383_p9 }
  0x56   : > { %p4389_p3 = pnand %p4387_p1, %p4384_p4 }
  0x58   : > { %4392 = shalt.err (!%p4389_p3)
}
  0x59   : > { %s4393_s0 = scalar_lea.vmem %s5270_s24, 64  ;;  %p4401_p13 = scmp.lt.s32.totalorder %s5270_s24, %s5270_s24 }
  0x5a   : > { %p4394_p10 = scmp.ne.s32.totalorder %s5270_s24, %s4393_s0  ;;  %p4402_p0 = scmp.lt.s32.totalorder %s4393_s0, %s4393_s0 }
  0x5c   : > { %p4396_p11 = pnand %p4394_p10, %p5288_p8  ;;  %p4403_p2 = por %p4402_p0, %p4401_p13 }
  0x5e   : > { %p4397_p12 = pneg %p4396_p11 }
  0x60   : > { %p4404_p5 = pnand %p4403_p2, %p4397_p12 }
  0x62   : > { %4407 = shalt.err (!%p4404_p5)
}
  0x63   : > { %4141 = dma.hbm_to_vmem [thread:$0]  (!%p5274_p6), %s6177_s27, 64, %s5270_s24, [#allocation10]  }
  0x64   : > { %s6178_s1 = sld [smem:[#allocation64_spill]] }
  0x6a   : > { %s4408_s22 = scalar_lea.hbm %s6178_s1, 512 }
  0x6b   : > { %p4409_p7 = scmp.ne.s32.totalorder %s6178_s1, %s4408_s22  ;;  %p4415_p1 = scmp.lt.u32.totalorder %s4408_s22, %s6178_s1 }
  0x6d   : > { %p4411_p9 = pnand %p4409_p7, %p5288_p8 }
  0x6f   : > { %p4412_p4 = pneg %p4411_p9 }
  0x71   : > { %p4417_p3 = pnand %p4415_p1, %p4412_p4 }
  0x73   : > { %4420 = shalt.err (!%p4417_p3)
}
  0x74   : > { %s4421_s24 = scalar_lea.vmem %s5278_s26, 512  ;;  %p4429_p13 = scmp.lt.s32.totalorder %s5278_s26, %s5278_s26 }
  0x75   : > { %p4422_p10 = scmp.ne.s32.totalorder %s5278_s26, %s4421_s24  ;;  %p4430_p0 = scmp.lt.s32.totalorder %s4421_s24, %s4421_s24 }
  0x77   : > { %p4424_p11 = pnand %p4422_p10, %p5288_p8  ;;  %p4431_p2 = por %p4430_p0, %p4429_p13 }
  0x79   : > { %p4425_p12 = pneg %p4424_p11 }
  0x7b   : > { %p4432_p5 = pnand %p4431_p2, %p4425_p12 }
  0x7d   : > { %4435 = shalt.err (!%p4432_p5)
}
  0x7e   : > { %s5091_s28 = smov 128   ;;  %s5092_s29 = smov 8  }
  0x7f   : > { %4147 = dma.hbm_to_vmem [thread:$0]  (!%p5274_p6), %s6178_s1, 512, %s5278_s26, [#allocation13], %s5091_s28, %s5091_s28, %s5092_s29  }
  0x80   : > { %s5093_s22 = smov [#allocation15]   ;;  %s5094_s25 = smov [#allocation18]  }
  0x81   : > { %s628_s23 = sshll.u32 %s5093_s22, 4  ;;  %s652_s2 = sshll.u32 %s5094_s25, 4  ;;  %s629_s23 = int_to_ptr.vmem [resolvable:$true] %s628_s23  ;;  %s653_s2 = int_to_ptr.vmem [resolvable:$true] %s652_s2 }
  0x82   : > { %s6179_s7 = sld [smem:[#allocation66_spill]] }
  0x88   : > { %s4436_s4 = scalar_lea.hbm %s6179_s7, 64 }
  0x89   : > { %p4437_p7 = scmp.ne.s32.totalorder %s6179_s7, %s4436_s4  ;;  %p4443_p1 = scmp.lt.u32.totalorder %s4436_s4, %s6179_s7 }
  0x8b   : > { %p4439_p9 = pnand %p4437_p7, %p5288_p8 }
  0x8d   : > { %p4440_p4 = pneg %p4439_p9 }
  0x8f   : > { %p4445_p3 = pnand %p4443_p1, %p4440_p4 }
  0x91   : > { %4448 = shalt.err (!%p4445_p3)
}
  0x92   : > { %s4449_s26 = scalar_lea.vmem %s629_s23, 64  ;;  %p4457_p13 = scmp.lt.s32.totalorder %s629_s23, %s629_s23 }
  0x93   : > { %p4450_p10 = scmp.ne.s32.totalorder %s629_s23, %s4449_s26  ;;  %p4458_p0 = scmp.lt.s32.totalorder %s4449_s26, %s4449_s26 }
  0x95   : > { %p4452_p11 = pnand %p4450_p10, %p5288_p8  ;;  %p4459_p2 = por %p4458_p0, %p4457_p13 }
  0x97   : > { %p4453_p12 = pneg %p4452_p11 }
  0x99   : > { %p4460_p5 = pnand %p4459_p2, %p4453_p12 }
  0x9b   : > { %4463 = shalt.err (!%p4460_p5)
}
  0x9c   : > { %4153 = dma.hbm_to_vmem [thread:$0]  (!%p5274_p6), %s6179_s7, 64, %s629_s23, [#allocation16]  }
  0x9d   : > { %s6180_s9 = sld [smem:[#allocation68_spill]] }
  0xa3   : > { %s4464_s4 = scalar_lea.hbm %s6180_s9, 16 }
  0xa4   : > { %p4465_p7 = scmp.ne.s32.totalorder %s6180_s9, %s4464_s4  ;;  %p4471_p1 = scmp.lt.u32.totalorder %s4464_s4, %s6180_s9 }
  0xa6   : > { %p4467_p9 = pnand %p4465_p7, %p5288_p8 }
  0xa8   : > { %p4468_p4 = pneg %p4467_p9 }
  0xaa   : > { %p4473_p3 = pnand %p4471_p1, %p4468_p4 }
  0xac   : > { %4476 = shalt.err (!%p4473_p3)
}
  0xad   : > { %s4477_s0 = scalar_lea.vmem %s653_s2, 16  ;;  %s4484_s23 = scalar_lea.vmem %s653_s2, 32 }
  0xae   : > { %p4478_p10 = scmp.ne.s32.totalorder %s653_s2, %s4477_s0  ;;  %p4485_p13 = scmp.lt.s32.totalorder %s653_s2, %s653_s2 }
  0xaf   : > { %p4486_p0 = scmp.lt.s32.totalorder %s4484_s23, %s4477_s0 }
  0xb0   : > { %p4480_p11 = pnand %p4478_p10, %p5288_p8 }
  0xb1   : > { %p4487_p2 = por %p4486_p0, %p4485_p13 }
  0xb2   : > { %p4481_p12 = pneg %p4480_p11 }
  0xb4   : > { %p4488_p5 = pnand %p4487_p2, %p4481_p12 }
  0xb6   : > { %4491 = shalt.err (!%p4488_p5)
}
  0xb7   : > { %4159 = dma.hbm_to_vmem [thread:$0]  (!%p5274_p6), %s6180_s9, 16, %s653_s2, [#allocation19]  }
  0xb8   : > { %s5095_s21 = smov [#allocation21]   ;;  %s5096_s18 = smov [#allocation24]  }
  0xb9   : > { %s673_s27 = sshll.u32 %s5095_s21, 4  ;;  %s699_s20 = sshll.u32 %s5096_s18, 4  ;;  %s674_s27 = int_to_ptr.vmem [resolvable:$true] %s673_s27  ;;  %s700_s20 = int_to_ptr.vmem [resolvable:$true] %s699_s20 }
  0xba   : > { %s6181_s11 = sld [smem:[#allocation70_spill]] }
  0xc0   : > { %s4492_s3 = scalar_lea.hbm %s6181_s11, 512 }
  0xc1   : > { %p4493_p7 = scmp.ne.s32.totalorder %s6181_s11, %s4492_s3  ;;  %p4499_p1 = scmp.lt.u32.totalorder %s4492_s3, %s6181_s11 }
  0xc3   : > { %p4495_p9 = pnand %p4493_p7, %p5288_p8 }
  0xc5   : > { %p4496_p4 = pneg %p4495_p9 }
  0xc7   : > { %p4501_p3 = pnand %p4499_p1, %p4496_p4 }
  0xc9   : > { %4504 = shalt.err (!%p4501_p3)
}
  0xca   : > { %s4505_s2 = scalar_lea.vmem %s674_s27, 512  ;;  %p4513_p13 = scmp.lt.s32.totalorder %s674_s27, %s674_s27 }
  0xcb   : > { %p4506_p10 = scmp.ne.s32.totalorder %s674_s27, %s4505_s2  ;;  %p4514_p0 = scmp.lt.s32.totalorder %s4505_s2, %s4505_s2 }
  0xcd   : > { %p4508_p11 = pnand %p4506_p10, %p5288_p8  ;;  %p4515_p2 = por %p4514_p0, %p4513_p13 }
  0xcf   : > { %p4509_p12 = pneg %p4508_p11 }
  0xd1   : > { %p4516_p5 = pnand %p4515_p2, %p4509_p12 }
  0xd3   : > { %4519 = shalt.err (!%p4516_p5)
}
  0xd4   : > { %4165 = dma.hbm_to_vmem [thread:$0]  (!%p5274_p6), %s6181_s11, 512, %s674_s27, [#allocation22], %s5091_s28, %s5091_s28, %s5092_s29  }
  0xd5   : > { %s6182_s13 = sld [smem:[#allocation72_spill]] }
  0xdb   : > { %s4520_s4 = scalar_lea.hbm %s6182_s13, 512 }
  0xdc   : > { %p4521_p7 = scmp.ne.s32.totalorder %s6182_s13, %s4520_s4  ;;  %p4527_p1 = scmp.lt.u32.totalorder %s4520_s4, %s6182_s13 }
  0xde   : > { %p4523_p9 = pnand %p4521_p7, %p5288_p8 }
  0xe0   : > { %p4524_p4 = pneg %p4523_p9 }
  0xe2   : > { %p4529_p3 = pnand %p4527_p1, %p4524_p4 }
  0xe4   : > { %4532 = shalt.err (!%p4529_p3)
}
  0xe5   : > { %s4533_s0 = scalar_lea.vmem %s700_s20, 512  ;;  %p4541_p13 = scmp.lt.s32.totalorder %s700_s20, %s700_s20 }
  0xe6   : > { %p4534_p10 = scmp.ne.s32.totalorder %s700_s20, %s4533_s0  ;;  %p4542_p0 = scmp.lt.s32.totalorder %s4533_s0, %s4533_s0 }
  0xe8   : > { %p4536_p11 = pnand %p4534_p10, %p5288_p8  ;;  %p4543_p2 = por %p4542_p0, %p4541_p13 }
  0xea   : > { %p4537_p12 = pneg %p4536_p11 }
  0xec   : > { %p4544_p5 = pnand %p4543_p2, %p4537_p12 }
  0xee   : > { %4547 = shalt.err (!%p4544_p5)
}
  0xef   : > { %4171 = dma.hbm_to_vmem [thread:$0]  (!%p5274_p6), %s6182_s13, 512, %s700_s20, [#allocation25], %s5091_s28, %s5091_s28, %s5092_s29  }
  0xf0   : > { %s5097_s2 = smov [#allocation27]   ;;  %s5098_s26 = smov [#allocation30]  }
  0xf1   : > { %s723_s24 = sshll.u32 %s5097_s2, 4  ;;  %s748_s21 = sshll.u32 %s5098_s26, 4  ;;  %s724_s24 = int_to_ptr.vmem [resolvable:$true] %s723_s24  ;;  %s749_s21 = int_to_ptr.vmem [resolvable:$true] %s748_s21 }
  0xf2   : > { %s6183_s15 = sld [smem:[#allocation74_spill]] }
  0xf8   : > { %s4548_s30 = scalar_lea.hbm %s6183_s15, 512 }
  0xf9   : > { %p4549_p7 = scmp.ne.s32.totalorder %s6183_s15, %s4548_s30  ;;  %p4555_p1 = scmp.lt.u32.totalorder %s4548_s30, %s6183_s15 }
  0xfb   : > { %p4551_p9 = pnand %p4549_p7, %p5288_p8 }
  0xfd   : > { %p4552_p4 = pneg %p4551_p9 }
  0xff   : > { %p4557_p3 = pnand %p4555_p1, %p4552_p4 }
 0x101   : > { %4560 = shalt.err (!%p4557_p3)
}
 0x102   : > { %s4561_s20 = scalar_lea.vmem %s724_s24, 512  ;;  %p4569_p13 = scmp.lt.s32.totalorder %s724_s24, %s724_s24 }
 0x103   : > { %p4562_p10 = scmp.ne.s32.totalorder %s724_s24, %s4561_s20  ;;  %p4570_p0 = scmp.lt.s32.totalorder %s4561_s20, %s4561_s20 }
 0x105   : > { %p4564_p11 = pnand %p4562_p10, %p5288_p8  ;;  %p4571_p2 = por %p4570_p0, %p4569_p13 }
 0x107   : > { %p4565_p12 = pneg %p4564_p11 }
 0x109   : > { %p4572_p5 = pnand %p4571_p2, %p4565_p12 }
 0x10b   : > { %4575 = shalt.err (!%p4572_p5)
}
 0x10c   : > { %4177 = dma.hbm_to_vmem [thread:$0]  (!%p5274_p6), %s6183_s15, 512, %s724_s24, [#allocation28], %s5091_s28, %s5091_s28, %s5092_s29  }
 0x10d   : > { %s4576_s18 = scalar_lea.hbm %s6114_s17, 64 }
 0x10e   : > { %p4577_p7 = scmp.ne.s32.totalorder %s6114_s17, %s4576_s18  ;;  %p4583_p1 = scmp.lt.u32.totalorder %s4576_s18, %s6114_s17 }
 0x110   : > { %p4579_p9 = pnand %p4577_p7, %p5288_p8 }
 0x112   : > { %p4580_p4 = pneg %p4579_p9 }
 0x114   : > { %p4585_p3 = pnand %p4583_p1, %p4580_p4 }
 0x116   : > { %4588 = shalt.err (!%p4585_p3)
}
 0x117   : > { %s4589_s25 = scalar_lea.vmem %s749_s21, 64  ;;  %p4597_p13 = scmp.lt.s32.totalorder %s749_s21, %s749_s21 }
 0x118   : > { %p4590_p10 = scmp.ne.s32.totalorder %s749_s21, %s4589_s25  ;;  %p4598_p0 = scmp.lt.s32.totalorder %s4589_s25, %s4589_s25 }
 0x11a   : > { %p4592_p11 = pnand %p4590_p10, %p5288_p8  ;;  %p4599_p2 = por %p4598_p0, %p4597_p13 }
 0x11c   : > { %p4593_p12 = pneg %p4592_p11 }
 0x11e   : > { %p4600_p5 = pnand %p4599_p2, %p4593_p12 }
 0x120   : > { %4603 = shalt.err (!%p4600_p5)
}
 0x121   : > { %4183 = dma.hbm_to_vmem [thread:$0]  (!%p5274_p6), %s6114_s17, 64, %s749_s21, [#allocation31]  }
 0x122   : > { %s5099_s20 = smov [#allocation33]   ;;  %s5100_s23 = smov [#allocation11]  }
 0x123   : > { %s772_s27 = sshll.u32 %s5099_s20, 4  ;;  %s588_s2 = sshll.u32 %s5100_s23, 4  ;;  %s773_s27 = int_to_ptr.vmem [resolvable:$true] %s772_s27  ;;  %s589_s2 = int_to_ptr.vmem [resolvable:$true] %s588_s2 }
 0x124   : > { %s4604_s4 = scalar_lea.hbm %s6116_s19, 16 }
 0x125   : > { %p4605_p7 = scmp.ne.s32.totalorder %s6116_s19, %s4604_s4  ;;  %p4611_p1 = scmp.lt.u32.totalorder %s4604_s4, %s6116_s19 }
 0x127   : > { %p4607_p9 = pnand %p4605_p7, %p5288_p8 }
 0x129   : > { %p4608_p4 = pneg %p4607_p9 }
 0x12b   : > { %p4613_p3 = pnand %p4611_p1, %p4608_p4 }
 0x12d   : > { %4616 = shalt.err (!%p4613_p3)
}
 0x12e   : > { %s4617_s21 = scalar_lea.vmem %s773_s27, 16  ;;  %s4624_s24 = scalar_lea.vmem %s773_s27, 32 }
 0x12f   : > { %p4618_p10 = scmp.ne.s32.totalorder %s773_s27, %s4617_s21  ;;  %p4625_p13 = scmp.lt.s32.totalorder %s773_s27, %s773_s27 }
 0x130   : > { %p4626_p0 = scmp.lt.s32.totalorder %s4624_s24, %s4617_s21 }
 0x131   : > { %p4620_p11 = pnand %p4618_p10, %p5288_p8 }
 0x132   : > { %p4627_p2 = por %p4626_p0, %p4625_p13 }
 0x133   : > { %p4621_p12 = pneg %p4620_p11 }
 0x135   : > { %p4628_p5 = pnand %p4627_p2, %p4621_p12 }
 0x137   : > { %4631 = shalt.err (!%p4628_p5)
}
 0x138   : > { %4189 = dma.hbm_to_vmem [thread:$0]  (!%p5274_p6), %s6116_s19, 16, %s773_s27, [#allocation34]  }
 0x139   : > { %s6184_s18 = sld [smem:[#allocation63_spill]] }
 0x13f   : > { %s4632_s4 = scalar_lea.hbm %s6184_s18, 512 }
 0x140   : > { %p4633_p7 = scmp.ne.s32.totalorder %s6184_s18, %s4632_s4  ;;  %p4639_p1 = scmp.lt.u32.totalorder %s4632_s4, %s6184_s18 }
 0x142   : > { %p4635_p9 = pnand %p4633_p7, %p5288_p8 }
 0x144   : > { %p4636_p4 = pneg %p4635_p9 }
 0x146   : > { %p4641_p3 = pnand %p4639_p1, %p4636_p4 }
 0x148   : > { %4644 = shalt.err (!%p4641_p3)
}
 0x149   : > { %s4645_s21 = scalar_lea.vmem %s589_s2, 512  ;;  %p4653_p13 = scmp.lt.s32.totalorder %s589_s2, %s589_s2 }
 0x14a   : > { %p4646_p10 = scmp.ne.s32.totalorder %s589_s2, %s4645_s21  ;;  %p4654_p0 = scmp.lt.s32.totalorder %s4645_s21, %s4645_s21 }
 0x14c   : > { %p4648_p11 = pnand %p4646_p10, %p5288_p8  ;;  %p4655_p2 = por %p4654_p0, %p4653_p13 }
 0x14e   : > { %p4649_p12 = pneg %p4648_p11 }
 0x150   : > { %p4656_p5 = pnand %p4655_p2, %p4649_p12 }
 0x152   : > { %4659 = shalt.err (!%p4656_p5)
}
 0x153   : > { %4144 = dma.hbm_to_vmem [thread:$0]  (!%p5274_p6), %s6184_s18, 512, %s589_s2, [#allocation10], %s5091_s28, %s5091_s28, %s5092_s29  }
 0x154   : > { %s5101_s0 = smov [#allocation14]   ;;  %s5102_s23 = smov [#allocation17]  }
 0x155   : > { %s614_s20 = sshll.u32 %s5101_s0, 4  ;;  %s638_s26 = sshll.u32 %s5102_s23, 4  ;;  %s615_s20 = int_to_ptr.vmem [resolvable:$true] %s614_s20  ;;  %s639_s26 = int_to_ptr.vmem [resolvable:$true] %s638_s26 }
 0x156   : > { %s6185_s3 = sld [smem:[#allocation65_spill]] }
 0x15c   : > { %s6186_s22 = smov %s6185_s3  ;;  %s4660_s25 = scalar_lea.hbm %s6185_s3, 512 }
 0x15d   : > { %p4661_p7 = scmp.ne.s32.totalorder %s6186_s22, %s4660_s25  ;;  %p4667_p1 = scmp.lt.u32.totalorder %s4660_s25, %s6186_s22 }
 0x15f   : > { %p4663_p9 = pnand %p4661_p7, %p5288_p8 }
 0x161   : > { %p4664_p4 = pneg %p4663_p9 }
 0x163   : > { %p4669_p3 = pnand %p4667_p1, %p4664_p4 }
 0x165   : > { %4672 = shalt.err (!%p4669_p3)
}
 0x166   : > { %s4673_s2 = scalar_lea.vmem %s615_s20, 512  ;;  %p4681_p13 = scmp.lt.s32.totalorder %s615_s20, %s615_s20 }
 0x167   : > { %p4674_p10 = scmp.ne.s32.totalorder %s615_s20, %s4673_s2  ;;  %p4682_p0 = scmp.lt.s32.totalorder %s4673_s2, %s4673_s2 }
 0x169   : > { %p4676_p11 = pnand %p4674_p10, %p5288_p8  ;;  %p4683_p2 = por %p4682_p0, %p4681_p13 }
 0x16b   : > { %p4677_p12 = pneg %p4676_p11 }
 0x16d   : > { %p4684_p5 = pnand %p4683_p2, %p4677_p12 }
 0x16f   : > { %4687 = shalt.err (!%p4684_p5)
}
 0x170   : > { %4150 = dma.hbm_to_vmem [thread:$0]  (!%p5274_p6), %s6186_s22, 512, %s615_s20, [#allocation13], %s5091_s28, %s5091_s28, %s5092_s29  }
 0x171   : > { %s6187_s8 = sld [smem:[#allocation67_spill]] }
 0x177   : > { %s4688_s23 = scalar_lea.hbm %s6187_s8, 512 }
 0x178   : > { %p4689_p7 = scmp.ne.s32.totalorder %s6187_s8, %s4688_s23  ;;  %p4695_p1 = scmp.lt.u32.totalorder %s4688_s23, %s6187_s8 }
 0x17a   : > { %p4691_p9 = pnand %p4689_p7, %p5288_p8 }
 0x17c   : > { %p4692_p4 = pneg %p4691_p9 }
 0x17e   : > { %p4697_p3 = pnand %p4695_p1, %p4692_p4 }
 0x180   : > { %4700 = shalt.err (!%p4697_p3)
}
 0x181   : > { %s4701_s21 = scalar_lea.vmem %s639_s26, 512  ;;  %p4709_p13 = scmp.lt.s32.totalorder %s639_s26, %s639_s26 }
 0x182   : > { %p4702_p10 = scmp.ne.s32.totalorder %s639_s26, %s4701_s21  ;;  %p4710_p0 = scmp.lt.s32.totalorder %s4701_s21, %s4701_s21 }
 0x184   : > { %p4704_p11 = pnand %p4702_p10, %p5288_p8  ;;  %p4711_p2 = por %p4710_p0, %p4709_p13 }
 0x186   : > { %p4705_p12 = pneg %p4704_p11 }
 0x188   : > { %p4712_p5 = pnand %p4711_p2, %p4705_p12 }
 0x18a   : > { %4715 = shalt.err (!%p4712_p5)
}
 0x18b   : > { %4156 = dma.hbm_to_vmem [thread:$0]  (!%p5274_p6), %s6187_s8, 512, %s639_s26, [#allocation16], %s5091_s28, %s5091_s28, %s5092_s29  }
 0x18c   : > { %s5103_s2 = smov [#allocation20]   ;;  %s5104_s1 = smov [#allocation23]  }
 0x18d   : > { %s663_s7 = sshll.u32 %s5103_s2, 4  ;;  %s686_s24 = sshll.u32 %s5104_s1, 4  ;;  %s664_s7 = int_to_ptr.vmem [resolvable:$true] %s663_s7  ;;  %s687_s24 = int_to_ptr.vmem [resolvable:$true] %s686_s24 }
 0x18e   : > { %s6188_s10 = sld [smem:[#allocation69_spill]] }
 0x194   : > { %s4716_s4 = scalar_lea.hbm %s6188_s10, 64 }
 0x195   : > { %p4717_p7 = scmp.ne.s32.totalorder %s6188_s10, %s4716_s4  ;;  %p4723_p1 = scmp.lt.u32.totalorder %s4716_s4, %s6188_s10 }
 0x197   : > { %p4719_p9 = pnand %p4717_p7, %p5288_p8 }
 0x199   : > { %p4720_p4 = pneg %p4719_p9 }
 0x19b   : > { %p4725_p3 = pnand %p4723_p1, %p4720_p4 }
 0x19d   : > { %4728 = shalt.err (!%p4725_p3)
}
 0x19e   : > { %s4729_s26 = scalar_lea.vmem %s664_s7, 64  ;;  %p4737_p13 = scmp.lt.s32.totalorder %s664_s7, %s664_s7 }
 0x19f   : > { %p4730_p10 = scmp.ne.s32.totalorder %s664_s7, %s4729_s26  ;;  %p4738_p0 = scmp.lt.s32.totalorder %s4729_s26, %s4729_s26 }
 0x1a1   : > { %p4732_p11 = pnand %p4730_p10, %p5288_p8  ;;  %p4739_p2 = por %p4738_p0, %p4737_p13 }
 0x1a3   : > { %p4733_p12 = pneg %p4732_p11 }
 0x1a5   : > { %p4740_p5 = pnand %p4739_p2, %p4733_p12 }
 0x1a7   : > { %4743 = shalt.err (!%p4740_p5)
}
 0x1a8   : > { %4162 = dma.hbm_to_vmem [thread:$0]  (!%p5274_p6), %s6188_s10, 64, %s664_s7, [#allocation19]  }
 0x1a9   : > { %s6189_s12 = sld [smem:[#allocation71_spill]] }
 0x1af   : > { %s4744_s0 = scalar_lea.hbm %s6189_s12, 512 }
 0x1b0   : > { %p4745_p7 = scmp.ne.s32.totalorder %s6189_s12, %s4744_s0  ;;  %p4751_p1 = scmp.lt.u32.totalorder %s4744_s0, %s6189_s12 }
 0x1b2   : > { %p4747_p9 = pnand %p4745_p7, %p5288_p8 }
 0x1b4   : > { %p4748_p4 = pneg %p4747_p9 }
 0x1b6   : > { %p4753_p3 = pnand %p4751_p1, %p4748_p4 }
 0x1b8   : > { %4756 = shalt.err (!%p4753_p3)
}
 0x1b9   : > { %s4757_s25 = scalar_lea.vmem %s687_s24, 512  ;;  %p4765_p13 = scmp.lt.s32.totalorder %s687_s24, %s687_s24 }
 0x1ba   : > { %p4758_p10 = scmp.ne.s32.totalorder %s687_s24, %s4757_s25  ;;  %p4766_p0 = scmp.lt.s32.totalorder %s4757_s25, %s4757_s25 }
 0x1bc   : > { %p4760_p11 = pnand %p4758_p10, %p5288_p8  ;;  %p4767_p2 = por %p4766_p0, %p4765_p13 }
 0x1be   : > { %p4761_p12 = pneg %p4760_p11 }
 0x1c0   : > { %p4768_p5 = pnand %p4767_p2, %p4761_p12 }
 0x1c2   : > { %4771 = shalt.err (!%p4768_p5)
}
 0x1c3   : > { %4168 = dma.hbm_to_vmem [thread:$0]  (!%p5274_p6), %s6189_s12, 512, %s687_s24, [#allocation22], %s5091_s28, %s5091_s28, %s5092_s29  }
 0x1c4   : > { %s5105_s26 = smov [#allocation26]   ;;  %s5106_s27 = smov [#allocation29]  }
 0x1c5   : > { %s713_s20 = sshll.u32 %s5105_s26, 4  ;;  %s737_s2 = sshll.u32 %s5106_s27, 4  ;;  %s714_s20 = int_to_ptr.vmem [resolvable:$true] %s713_s20  ;;  %s738_s2 = int_to_ptr.vmem [resolvable:$true] %s737_s2 }
 0x1c6   : > { %s6190_s14 = sld [smem:[#allocation73_spill]] }
 0x1cc   : > { %s4772_s23 = scalar_lea.hbm %s6190_s14, 64 }
 0x1cd   : > { %p4773_p7 = scmp.ne.s32.totalorder %s6190_s14, %s4772_s23  ;;  %p4779_p1 = scmp.lt.u32.totalorder %s4772_s23, %s6190_s14 }
 0x1cf   : > { %p4775_p9 = pnand %p4773_p7, %p5288_p8 }
 0x1d1   : > { %p4776_p4 = pneg %p4775_p9 }
 0x1d3   : > { %p4781_p3 = pnand %p4779_p1, %p4776_p4 }
 0x1d5   : > { %4784 = shalt.err (!%p4781_p3)
}
 0x1d6   : > { %s4785_s24 = scalar_lea.vmem %s714_s20, 64  ;;  %p4793_p13 = scmp.lt.s32.totalorder %s714_s20, %s714_s20 }
 0x1d7   : > { %p4786_p10 = scmp.ne.s32.totalorder %s714_s20, %s4785_s24  ;;  %p4794_p0 = scmp.lt.s32.totalorder %s4785_s24, %s4785_s24 }
 0x1d9   : > { %p4788_p11 = pnand %p4786_p10, %p5288_p8  ;;  %p4795_p2 = por %p4794_p0, %p4793_p13 }
 0x1db   : > { %p4789_p12 = pneg %p4788_p11 }
 0x1dd   : > { %p4796_p5 = pnand %p4795_p2, %p4789_p12 }
 0x1df   : > { %4799 = shalt.err (!%p4796_p5)
}
 0x1e0   : > { %4174 = dma.hbm_to_vmem [thread:$0]  (!%p5274_p6), %s6190_s14, 64, %s714_s20, [#allocation25]  }
 0x1e1   : > { %s4800_s1 = scalar_lea.hbm %s6113_s16, 16 }
 0x1e2   : > { %p4801_p7 = scmp.ne.s32.totalorder %s6113_s16, %s4800_s1  ;;  %p4807_p1 = scmp.lt.u32.totalorder %s4800_s1, %s6113_s16 }
 0x1e4   : > { %p4803_p9 = pnand %p4801_p7, %p5288_p8 }
 0x1e6   : > { %p4804_p4 = pneg %p4803_p9 }
 0x1e8   : > { %p4809_p3 = pnand %p4807_p1, %p4804_p4 }
 0x1ea   : > { %4812 = shalt.err (!%p4809_p3)
}
 0x1eb   : > { %s4813_s3 = scalar_lea.vmem %s738_s2, 16  ;;  %s4820_s20 = scalar_lea.vmem %s738_s2, 32 }
 0x1ec   : > { %p4814_p10 = scmp.ne.s32.totalorder %s738_s2, %s4813_s3  ;;  %p4821_p13 = scmp.lt.s32.totalorder %s738_s2, %s738_s2 }
 0x1ed   : > { %p4822_p0 = scmp.lt.s32.totalorder %s4820_s20, %s4813_s3 }
 0x1ee   : > { %p4816_p11 = pnand %p4814_p10, %p5288_p8 }
 0x1ef   : > { %p4823_p2 = por %p4822_p0, %p4821_p13 }
 0x1f0   : > { %p4817_p12 = pneg %p4816_p11 }
 0x1f2   : > { %p4824_p5 = pnand %p4823_p2, %p4817_p12 }
 0x1f4   : > { %4827 = shalt.err (!%p4824_p5)
}
 0x1f5   : > { %4180 = dma.hbm_to_vmem [thread:$0]  (!%p5274_p6), %s6113_s16, 16, %s738_s2, [#allocation28]  }
 0x1f6   : > { %s5107_s7 = smov [#allocation32]   ;;  %s5108_s26 = smov [#allocation35]  }
 0x1f7   : > { %s758_s21 = sshll.u32 %s5107_s7, 4  ;;  %s782_s27 = sshll.u32 %s5108_s26, 4  ;;  %s759_s21 = int_to_ptr.vmem [resolvable:$true] %s758_s21  ;;  %s783_s27 = int_to_ptr.vmem [resolvable:$true] %s782_s27 }
 0x1f8   : > { %s6191_s23 = sld [smem:[#allocation75_spill]] }
 0x1fe   : > { %s4828_s4 = scalar_lea.hbm %s6191_s23, 512 }
 0x1ff   : > { %p4829_p7 = scmp.ne.s32.totalorder %s6191_s23, %s4828_s4  ;;  %p4835_p1 = scmp.lt.u32.totalorder %s4828_s4, %s6191_s23 }
 0x201   : > { %p4831_p9 = pnand %p4829_p7, %p5288_p8 }
 0x203   : > { %p4832_p4 = pneg %p4831_p9 }
 0x205   : > { %p4837_p3 = pnand %p4835_p1, %p4832_p4 }
 0x207   : > { %4840 = shalt.err (!%p4837_p3)
}
 0x208   : > { %s4841_s2 = scalar_lea.vmem %s759_s21, 512  ;;  %p4849_p13 = scmp.lt.s32.totalorder %s759_s21, %s759_s21 }
 0x209   : > { %p4842_p10 = scmp.ne.s32.totalorder %s759_s21, %s4841_s2  ;;  %p4850_p0 = scmp.lt.s32.totalorder %s4841_s2, %s4841_s2 }
 0x20b   : > { %p4844_p11 = pnand %p4842_p10, %p5288_p8  ;;  %p4851_p2 = por %p4850_p0, %p4849_p13 }
 0x20d   : > { %p4845_p12 = pneg %p4844_p11 }
 0x20f   : > { %p4852_p5 = pnand %p4851_p2, %p4845_p12 }
 0x211   : > { %4855 = shalt.err (!%p4852_p5)
}
 0x212   : > { %4186 = dma.hbm_to_vmem [thread:$0]  (!%p5274_p6), %s6191_s23, 512, %s759_s21, [#allocation31], %s5091_s28, %s5091_s28, %s5092_s29  }
 0x213   : > { %s6192_s0 = sld [smem:[#allocation76_spill]] }
 0x219   : > { %s4856_s4 = scalar_lea.hbm %s6192_s0, 2048 }
 0x21a   : > { %p4857_p7 = scmp.ne.s32.totalorder %s6192_s0, %s4856_s4  ;;  %p4863_p1 = scmp.lt.u32.totalorder %s4856_s4, %s6192_s0 }
 0x21c   : > { %p4859_p9 = pnand %p4857_p7, %p5288_p8 }
 0x21e   : > { %p4860_p4 = pneg %p4859_p9 }
 0x220   : > { %p4865_p3 = pnand %p4863_p1, %p4860_p4 }
 0x222   : > { %4868 = shalt.err (!%p4865_p3)
}
 0x223   : > { %s4869_s2 = scalar_lea.vmem %s783_s27, 2048  ;;  %p4877_p13 = scmp.lt.s32.totalorder %s783_s27, %s783_s27 }
 0x224   : > { %p4870_p10 = scmp.ne.s32.totalorder %s783_s27, %s4869_s2  ;;  %p4878_p0 = scmp.lt.s32.totalorder %s4869_s2, %s4869_s2 }
 0x226   : > { %p4872_p11 = pnand %p4870_p10, %p5288_p8  ;;  %p4879_p2 = por %p4878_p0, %p4877_p13 }
 0x228   : > { %p4873_p12 = pneg %p4872_p11 }
 0x22a   : > { %p4880_p5 = pnand %p4879_p2, %p4873_p12 }
 0x22c   : > { %4883 = shalt.err (!%p4880_p5)
}
 0x22d   : > { %4192 = dma.hbm_to_vmem [thread:$0]  (!%p5274_p6), %s6192_s0, 2048, %s783_s27, [#allocation34], %s5091_s28, %s5091_s28, %s5092_s29  }
 0x22e   : > { %s5109_s7 = smov [#allocation36]   ;;  %s6193_s30 = sld [smem:[#allocation77_spill]] }
 0x22f   : > { %s796_s26 = sshll.u32 %s5109_s7, 4  ;;  %s797_s26 = int_to_ptr.vmem [resolvable:$true] %s796_s26 }
 0x234   : > { %s6194_s20 = smov %s6193_s30  ;;  %s4884_s3 = scalar_lea.hbm %s6193_s30, 16 }
 0x235   : > { %p4885_p7 = scmp.ne.s32.totalorder %s6194_s20, %s4884_s3  ;;  %p4891_p1 = scmp.lt.u32.totalorder %s4884_s3, %s6194_s20 }
 0x237   : > { %p4887_p9 = pnand %p4885_p7, %p5288_p8 }
 0x239   : > { %p4888_p4 = pneg %p4887_p9 }
 0x23b   : > { %p4893_p3 = pnand %p4891_p1, %p4888_p4 }
 0x23d   : > { %4896 = shalt.err (!%p4893_p3)
}
 0x23e   : > { %s4897_s28 = scalar_lea.vmem %s797_s26, 16  ;;  %s4904_s29 = scalar_lea.vmem %s797_s26, 32 }
 0x23f   : > { %p4898_p10 = scmp.ne.s32.totalorder %s797_s26, %s4897_s28  ;;  %p4905_p13 = scmp.lt.s32.totalorder %s797_s26, %s797_s26 }
 0x240   : > { %p4906_p0 = scmp.lt.s32.totalorder %s4904_s29, %s4897_s28 }
 0x241   : > { %p4900_p11 = pnand %p4898_p10, %p5288_p8 }
 0x242   : > { %p4907_p2 = por %p4906_p0, %p4905_p13 }
 0x243   : > { %p4901_p12 = pneg %p4900_p11 }
 0x245   : > { %p4908_p5 = pnand %p4907_p2, %p4901_p12 }
 0x247   : > { %4911 = shalt.err (!%p4908_p5)
}
 0x248   : > { %s6195_s8 = sld [smem:[#allocation56_spill]]  ;;  %s6196_s9 = sld [smem:[#allocation55_spill]] }
 0x249   : > { %s6197_s24 = sld [smem:[#allocation54_spill]]  ;;  %s6198_s5 = sld [smem:[#allocation53_spill]] }
 0x24a   : > { %s6199_s7 = sld [smem:[#allocation57_spill]]  ;;  %s6207_s11 = sld [smem:[#allocation60_spill]] }
 0x24b   : > { %4195 = dma.hbm_to_vmem [thread:$0]  (!%p5274_p6), %s6194_s20, 16, %s797_s26, [#allocation37]  }
 0x24e   : > { %s3556_s1 = sadd.s32 4294967294, %s6195_s8   ;;  %s5688_s30 = sadd.s32 1, %s6195_s8  }
 0x24f   : > { %s55_s6 = ssub.s32 %s6195_s8, %s5688_s30  ;;  %s58_s4 = sadd.s32 1, %s6196_s9 }
 0x250   : > { %p56_p8 = scmp.eq.s32.totalorder %s55_s6, 0  ;;  %p65_p7 = scmp.ne.s32.totalorder %s6196_s9, %s6197_s24 }
 0x251   : > { %p66_p9 = scmp.eq.s32.totalorder %s6195_s8, 0  ;;  %p71_p4 = scmp.ne.s32.totalorder %s6197_s24, %s6198_s5 }
 0x252   : > { %s5699_s3 = scalar_select %p56_p8, %s6196_s9, %s58_s4  }
 0x253   : > { %p5701_p1 = por %p66_p9, %p65_p7  ;;  %p6201_p3 = scmp.eq.s32.totalorder %s6199_s7, 0 }
 0x254   : > { %p541_p10 = scmp.eq.s32.totalorder %s6199_s7, 1  ;;  %p547_p11 = scmp.eq.s32.totalorder %s3556_s1, 1 }
 0x255   : > { %p5707_p6 = por %p6201_p3, %p71_p4  ;;  %p4227_p12 = scmp.lt.s32.totalorder %s6195_s8, 2 }
 0x256   : > { %s807_s2 = sand.u32 1, %s6196_s9   ;;  %p5714_p13 = por %p541_p10, %p65_p7 }
 0x257   : > { %s6202_s26 = scalar_select %p5707_p6, 1, 0 }
 0x258   : > { %s6203_s28 = scalar_select %p5714_p13, 1, 0 }
 0x259   : > { %p5718_p0 = por %p547_p11, %p71_p4  ;;  %s5722_s27 = sshll.u32 %s807_s2, 3 }
 0x25a   : > { %s3580_s21 = sshll.u32 %s6195_s8, 7  ;;  %s6205_s6 = sld [smem:[#allocation59_spill]] }
 0x25b   : > { %s6204_s29 = scalar_select %p5718_p0, 1, 0 }
 0x25c   : > { %s811_s9 = scalar_lea.vmem [#allocation3], %s5722_s27  ;;  %p5735_p2 = pnand %p4227_p12, %p5701_p1 }
 0x25d   : > { %s818_s7 = sshll.u32 %s811_s9, 4  ;;  %s5742_s24 = scalar_lea.hbm %s6207_s11, %s3580_s21  ;;  %s5731_s7 = int_to_ptr.vmem [resolvable:$true] %s818_s7 }
 0x25e   : > { %s825_s5 = sand.u32 1, %s6195_s8   ;;  %s808_s12 = scalar_lea.sflag [#allocation4], %s807_s2 }
 0x25f   : > { %p4914_p8 = pneg %p5735_p2 }
 0x260   : > { %s5728_s4 = scalar_lea.hbm %s6205_s6, %s3580_s21  ;;  %s4917_s14 = scalar_lea.hbm %s6205_s6, 256 }
 0x261   : > { %s4912_s13 = scalar_lea.hbm %s5728_s4, 128  ;;  %p4918_p4 = scmp.lt.u32.totalorder %s5728_s4, %s6205_s6 }
 0x262   : > { %p4913_p5 = scmp.ne.s32.totalorder %s5728_s4, %s4912_s13  ;;  %p4919_p1 = scmp.lt.u32.totalorder %s4917_s14, %s4912_s13 }
 0x263   : > { %p4921_p10 = scmp.lt.u32.totalorder %s4912_s13, %s5728_s4 }
 0x264   : > { %p4915_p7 = pnand %p4914_p8, %p4913_p5  ;;  %p4920_p3 = por %p4919_p1, %p4918_p4 }
 0x266   : > { %p4916_p9 = pneg %p4915_p7  ;;  %p4922_p11 = por %p4921_p10, %p4920_p3 }
 0x268   : > { %p4923_p12 = pnand %p4922_p11, %p4916_p9 }
 0x26a   : > { %4926 = shalt.err (!%p4923_p12)
}
 0x26b   : > { %s4927_s0 = scalar_lea.vmem %s5731_s7, 128  ;;  %s5110_s2 = smov [#allocation3]  }
 0x26c   : > { %p4928_p5 = scmp.ne.s32.totalorder %s5731_s7, %s4927_s0  ;;  %s4932_s21 = sshll.u32 %s5110_s2, 4  ;;  %s4933_s21 = int_to_ptr.vmem [resolvable:$false] %s4932_s21 }
 0x26d   : > { %s4934_s15 = scalar_lea.vmem %s4933_s21, 256  ;;  %p4935_p13 = scmp.lt.s32.totalorder %s5731_s7, %s4933_s21 }
 0x26e   : > { %p4930_p7 = pnand %p4928_p5, %p4914_p8  ;;  %p4936_p4 = scmp.lt.s32.totalorder %s4934_s15, %s4927_s0 }
 0x270   : > { %p4931_p0 = pneg %p4930_p7  ;;  %p4937_p1 = por %p4936_p4, %p4935_p13 }
 0x272   : > { %p4938_p3 = pnand %p4937_p1, %p4931_p0 }
 0x274   : > { %4941 = shalt.err (!%p4938_p3)
}
 0x275   : > { %4199 = dma.hbm_to_vmem [thread:$0]  (!%p5735_p2), %s5728_s4, 128, %s5731_s7, %s808_s12  }
 0x276   : > { %s829_s13 = scalar_lea.vmem [#allocation6], %s5722_s27  ;;  %s826_s25 = scalar_lea.sflag [#allocation7], %s825_s5 }
 0x277   : > { %s836_s14 = sshll.u32 %s829_s13, 4  ;;  %s4942_s9 = scalar_lea.hbm %s5742_s24, 128  ;;  %s837_s14 = int_to_ptr.vmem [resolvable:$true] %s836_s14 }
 0x278   : > { %p4943_p13 = scmp.ne.s32.totalorder %s5742_s24, %s4942_s9  ;;  %s4947_s2 = scalar_lea.hbm %s6207_s11, 256 }
 0x279   : > { %p4948_p10 = scmp.lt.u32.totalorder %s5742_s24, %s6207_s11  ;;  %p4949_p11 = scmp.lt.u32.totalorder %s4947_s2, %s4942_s9 }
 0x27a   : > { %p4945_p0 = pnand %p4943_p13, %p4914_p8  ;;  %p4951_p5 = scmp.lt.u32.totalorder %s4942_s9, %s5742_s24 }
 0x27b   : > { %p4950_p12 = por %p4949_p11, %p4948_p10 }
 0x27c   : > { %p4946_p9 = pneg %p4945_p0 }
 0x27d   : > { %p4952_p7 = por %p4951_p5, %p4950_p12 }
 0x27f   : > { %p4953_p4 = pnand %p4952_p7, %p4946_p9 }
 0x281   : > { %4956 = shalt.err (!%p4953_p4)
}
 0x282   : > { %s4957_s12 = scalar_lea.vmem %s837_s14, 128  ;;  %s5111_s8 = smov [#allocation6]  }
 0x283   : > { %p4958_p1 = scmp.ne.s32.totalorder %s837_s14, %s4957_s12  ;;  %s4962_s27 = sshll.u32 %s5111_s8, 4  ;;  %s4963_s27 = int_to_ptr.vmem [resolvable:$false] %s4962_s27 }
 0x284   : > { %s4964_s4 = scalar_lea.vmem %s4963_s27, 256  ;;  %p4965_p0 = scmp.lt.s32.totalorder %s837_s14, %s4963_s27 }
 0x285   : > { %p4960_p3 = pnand %p4958_p1, %p4914_p8  ;;  %p4966_p6 = scmp.lt.s32.totalorder %s4964_s4, %s4957_s12 }
 0x287   : > { %p4961_p13 = pneg %p4960_p3  ;;  %p4967_p10 = por %p4966_p6, %p4965_p0 }
 0x289   : > { %p4968_p11 = pnand %p4967_p10, %p4961_p13 }
 0x28b   : > { %4971 = shalt.err (!%p4968_p11)
}
 0x28c   : > { %4202 = dma.hbm_to_vmem [thread:$0]  (!%p5735_p2), %s5742_s24, 128, %s837_s14, %s826_s25  }
 0x28d   : > { %s6208_s7 = sld [smem:[#allocation58_spill]] }
 0x293   : > { %p6209_p9 = scmp.ne.s32.totalorder %s6208_s7, 0 }
 0x294   : > { %s6210_s5 = sld [smem:[#allocation54_spill]] (!%p6209_p9)  ;;  %p6211_p6 = scmp.ne.s32.totalorder (!%p6209_p9), %s6202_s26, 0 }
 0x295   : > { %845 = sbr.rel (%p6209_p9) target bundleno = 3772 (0xebc), region = 108 }
 0x29a   : > { %s5795_s13 = sand.u32 (!%p6209_p9), 1, %s6210_s5  }
 0x29b   : > { %s5798_s9 = sshll.u32 (!%p6209_p9), %s5795_s13, 3  ;;  %s848_s10 = scalar_lea.sflag (!%p6209_p9), [#allocation4], %s5795_s13 }
 0x29c   : > { %s851_s0 = scalar_lea.vmem [#allocation3], %s5798_s9 }
 0x29d   : > { %5017 = dma.done.wait (%p6211_p6), %s848_s10, 128  }
 0x29e   : > { %5019 = vsyncadd (%p6211_p6), %s848_s10, 4294967168  ;;  %s6212_s1 = sld [smem:[#allocation57_spill]]  ;;  %s860_s25 = scalar_lea.vmem [#allocation6], %s5798_s9 }
 0x2a4   : > { %s856_s24 = sand.u32 1, %s6212_s1  }
 0x2a5   : > { %s857_s14 = scalar_lea.sflag [#allocation7], %s856_s24 }
 0x2a6   : > { %5021 = dma.done.wait (%p6211_p6), %s857_s14, 128  }
 0x2a7   : > { %5023 = vsyncadd (%p6211_p6), %s857_s14, 4294967168  ;;  %p6213_p2 = scmp.eq.s32.totalorder %s6212_s1, 0 }
 0x2a9   : > { %5025 = dma.done.wait (%p6213_p2), [#allocation7], 128   ;;  %p6214_p8 = pmov %p6213_p2 }
 0x2aa   : > { %p6215_p12 = pmov %p6213_p2 }
 0x2ab   : > { %5027 = vsyncadd (%p6214_p8), [#allocation7], 4294967168 }
 0x2ac   : > { %5029 = dma.done.wait (%p6215_p12), [#allocation10], 576   ;;  %p6216_p5 = pmov %p6213_p2 }
 0x2ad   : > { %p6217_p7 = pmov %p6213_p2 }
 0x2ae   : > { %5031 = vsyncadd (%p6216_p5), [#allocation10], 4294966720 }
 0x2af   : > { %5033 = dma.done.wait (%p6217_p7), [#allocation13], 1024   ;;  %p6218_p4 = pmov %p6213_p2 }
 0x2b0   : > { %p6219_p1 = pmov %p6213_p2 }
 0x2b1   : > { %5035 = vsyncadd (%p6218_p4), [#allocation13], 4294966272 }
 0x2b2   : > { %5037 = dma.done.wait (%p6219_p1), [#allocation16], 576   ;;  %p6220_p3 = pmov %p6219_p1 }
 0x2b3   : > { %p6221_p13 = pmov %p6219_p1 }
 0x2b4   : > { %5039 = vsyncadd (%p6220_p3), [#allocation16], 4294966720 }
 0x2b5   : > { %5041 = dma.done.wait (%p6221_p13), [#allocation19], 80   ;;  %p6222_p0 = pmov %p6219_p1 }
 0x2b7   : > { %5043 = vsyncadd (%p6222_p0), [#allocation19], 4294967216  ;;  %p6223_p10 = pmov %p6222_p0 }
 0x2b8   : > { %p6224_p11 = pmov %p6222_p0 }
 0x2b9   : > { %5045 = dma.done.wait (%p6223_p10), [#allocation22], 1024  }
 0x2ba   : > { %5047 = vsyncadd (%p6224_p11), [#allocation22], 4294966272  ;;  %p6225_p9 = pmov %p6222_p0 }
 0x2bb   : > { %p6226_p6 = pmov %p6222_p0 }
 0x2bc   : > { %5049 = dma.done.wait (%p6225_p9), [#allocation25], 576  }
 0x2bd   : > { %5051 = vsyncadd (%p6226_p6), [#allocation25], 4294966720  ;;  %p6227_p2 = pmov %p6222_p0 }
 0x2be   : > { %p6228_p8 = pmov %p6222_p0 }
 0x2bf   : > { %5053 = dma.done.wait (%p6227_p2), [#allocation28], 528  }
 0x2c0   : > { %5055 = vsyncadd (%p6228_p8), [#allocation28], 4294966768  ;;  %p6229_p12 = pmov %p6222_p0 }
 0x2c1   : > { %p6230_p5 = pmov %p6222_p0 }
 0x2c2   : > { %5057 = dma.done.wait (%p6229_p12), [#allocation31], 576  }
 0x2c3   : > { %5059 = vsyncadd (%p6230_p5), [#allocation31], 4294966720  ;;  %p6231_p7 = pmov %p6222_p0 }
 0x2c4   : > { %p6232_p4 = pmov %p6222_p0 }
 0x2c5   : > { %5061 = dma.done.wait (%p6231_p7), [#allocation34], 2064  }
 0x2c6   : > { %5063 = vsyncadd (%p6232_p4), [#allocation34], 4294965232  ;;  %p6233_p1 = pmov %p6222_p0 }
 0x2c7   : > { %p6234_p3 = pmov %p6222_p0 }
 0x2c8   : > { %5065 = dma.done.wait (%p6233_p1), [#allocation37], 16  }
 0x2c9   : > { %5067 = vsyncadd (%p6234_p3), [#allocation37], 4294967280  ;;  %v5112_v0 = vmov 0.0|0.0   ;;  %vm5113_vm0 = vmmov 0   ;;  %v5114_v1 = vmov 0.0   ;;  %v1029_v2 = vld [vmem:[#allocation11] sm:$0xff] }
 0x2ca   : > { %3971 = vmatprep.subr.bf16.mxu1 %v5112_v0  ;;  %3765 = vmatprep.mubr.msk.f32.mxu1 %vm5113_vm0, %v5114_v1  ;;  %v1030_v3 = vld [vmem:[#allocation11 + $0x8] sm:$0xff]  ;;  %v1031_v4 = vld [vmem:[#allocation11 + $0x10] sm:$0xff]  ;;  %v1032_v6 = vld [vmem:[#allocation11 + $0x18] sm:$0xff]  ;;  %vm1037_vm1 = vcmask 261120   ;;  %vm1269_vm2 = vcmask 64512   ;;  %s5115_s26 = smov 112  }
 0x2cb   : > { %3800 = vmatprep.subr.mxu0 %v5114_v1  ;;  %3802 = vmatprep.mubr.msk.f32.mxu0 %vm5113_vm0, %v5114_v1  ;;  %v3972_v5 = vpack.c.bf16 %v1030_v3, %v1029_v2  ;;  %v1006_v7 = vld [vmem:[%s851_s0] sm:$0xff]  ;;  %v3975_v11 = vpack.c.bf16 %v1032_v6, %v1031_v4  ;;  %v1113_v15 = vld [vmem:[#allocation12 + $0x8] sm:$0xff]  ;;  %s5116_s2 = smov 120   ;;  %s5117_s21 = smov 104   ;;  %vm1601_vm3 = vcmask 130112   ;;  %vm1772_vm4 = vcmask 195712  }
 0x2cc   : > { %v1007_v8 = vld [vmem:[#allocation8] sm:$0xff]  ;;  %v3607_v10 = vld [vmem:[#allocation9 + $0x2] ss:$0 sm:$0xff]  ;;  %v3608_v13 = vld [vmem:[#allocation9] ss:$0 sm:$0xff]  ;;  %s5118_s15 = smov 8  }
 0x2cd   : > { %v5864_v9 = vadd.f32 %v1007_v8, %v1006_v7  ;;  %3973 = vmatpush3.bf16.msra.mxu1 %v3972_v5  ;;  %v1112_v14 = vld [vmem:[#allocation12] sm:$0xff]  ;;  %v3609_v17 = vld [vmem:[#allocation9 + $0x1] ss:$0 sm:$0xff]  ;;  %v1114_v21 = vld [vmem:[#allocation12 + $0x10] sm:$0xff]  ;;  %s5119_s12 = smov 16   ;;  %s5120_s8 = smov 24  }
 0x2ce   : > { %3974 = vmatprep.subr.bf16.mxu1 %v5112_v0  ;;  %v3978_v19 = vpack.c.bf16 %v1113_v15, %v1112_v14  ;;  %v1115_v22 = vld [vmem:[#allocation12 + $0x18] sm:$0xff]  ;;  %v1191_v24 = vld [vmem:[#allocation14] sm:$0xff]  ;;  %v1192_v25 = vld [vmem:[#allocation14 + $0x8] sm:$0xff]  ;;  %vm1943_vm5 = vcmask 261312   ;;  %s3660_s27 = sshll.u32 %s6212_s1, 7  ;;  %s1005_s4 = scalar_lea.vmem [#allocation38], %s5798_s9 }
 0x2cf   : > { %v1016_v12 = vmul.f32 %v3607_v10, %v5864_v9  ;;  %v3981_v23 = vpack.c.bf16 %v1115_v22, %v1114_v21  ;;  %v3984_v26 = vpack.c.bf16 %v1192_v25, %v1191_v24  ;;  %v1193_v27 = vld [vmem:[#allocation14 + $0x10] sm:$0xff]  ;;  %v1194_v28 = vld [vmem:[#allocation14 + $0x18] sm:$0xff]  ;;  %v3612_v32 = vld [vmem:[#allocation15 + $0x1] ss:$0 sm:$0xff]  ;;  %s3273_s7 = sshll.u32 %s1005_s4, 4  ;;  %s6235_s0 = sld [smem:[#allocation78_spill]]  ;;  %s6054_s7 = int_to_ptr.vmem [resolvable:$true] %s3273_s7 }
 0x2d0   : > { %v3987_v29 = vpack.c.bf16 %v1194_v28, %v1193_v27  ;;  %v3610_v36 = vld [vmem:[#allocation15] ss:$0 sm:$0xff]  ;;  %v3614_v38 = vld [vmem:[#allocation15 + $0x2] ss:$0 sm:$0xff]  ;;  %s3260_s14 = scalar_lea.sflag [#allocation5], %s5795_s13  ;;  %s4972_s1 = scalar_lea.vmem %s6054_s7, 128 }
 0x2d1   : > { %4312 = vtanh.f32 %v1016_v12  ;;  %3976 = vmatpush3.bf16.msra.mxu1 %v3975_v11  ;;  %p4973_p13 = scmp.ne.s32.totalorder %s6054_s7, %s4972_s1  ;;  %p6236_p0 = scmp.ne.s32.totalorder %s6203_s28, 0 }
 0x2d2   : > { %3977 = vmatprep.subr.bf16.mxu1 %v5112_v0  ;;  %s5121_s9 = smov [#allocation38]  }
 0x2d3   : > { %p4974_p10 = pnand %p4973_p13, %p6236_p0 }
 0x2d5   : > { %s6052_s24 = scalar_lea.hbm %s6235_s0, %s3660_s27  ;;  %p4975_p11 = pneg %p4974_p10 }
 0x2db   : > { %v4313_v16 = vpop.eup %4312 }
 0x2dc   : > { %v1022_v18 = vmul.f32 %v4313_v16, %v3608_v13 }
 0x2de   : > { %v1027_v20 = vadd.f32 %v3609_v17, %v1022_v18 }
 0x2e0   : > { %3766 = vmatmul.mubr.msk.f32.vlgmr.msra.gmra.mrb[0].mxu1 %vm1037_vm1, %v1027_v20 }
 0x2e1   : > { %3979 = vmatpush3.bf16.msra.mxu1 %v3978_v19  ;;  %3776 = vmatprep.mubr.msk.f32.mxu1 %vm5113_vm0, %v5114_v1 }
 0x2e2   : > { %3980 = vmatprep.subr.bf16.mxu1 %v5112_v0 }
 0x2e5   : > { %3982 = vmatpush3.bf16.msra.mxu1 %v3981_v23 }
 0x2e6   : > { %3983 = vmatprep.subr.bf16.mxu1 %v5112_v0 }
 0x2e8   : > { %3777 = vmatmul.mubr.msk.f32.vlgmr.msra.gmra.mrb[2].mxu1 %vm1037_vm1, %v1027_v20 }
 0x2e9   : > { %3985 = vmatpush3.bf16.msra.mxu1 %v3984_v26  ;;  %3787 = vmatprep.mubr.msk.f32.mxu1 %vm5113_vm0, %v5114_v1 }
 0x2ea   : > { %3986 = vmatprep.subr.bf16.mxu1 %v5112_v0 }
 0x2ed   : > { %3988 = vmatpush3.bf16.msra.mxu1 %v3987_v29 }
 0x2ee   : > { %3790 = vmatprep.subr.mxu1 %v5114_v1 }
 0x2f0   : > { %3788 = vmatmul.mubr.msk.f32.vlgmr.msra.gmra.mrb[4].mxu1 %vm1037_vm1, %v1027_v20 }
 0x2f1   : > { %3792 = vmatprep.mubr.msk.f32.mxu1 %vm5113_vm0, %v5114_v1 }
 0x3b3   : > { %v1107_v30 = vpop.f32.mrb[0].mxu1 }
 0x3b4   : > { %v3767_v31 = vpop.f32.mrb[1].mxu1  ;;  %v1108_v37 = vadd.f32 %v3610_v36, %v1107_v30  ;;  %v1946_v30 = vld [vmem:[#allocation17] sm:$0xff] }
 0x3b5   : > { %v1947_v31 = vld [vmem:[#allocation17 + $0x8] sm:$0xff] }
 0x3bb   : > { %v1186_v33 = vpop.f32.mrb[2].mxu1 }
 0x3bc   : > { %v1187_v34 = vadd.f32 %v3612_v32, %v1186_v33  ;;  %v3778_v35 = vpop.f32.mrb[3].mxu1  ;;  %v3990_v32 = vpack.c.bf16 %v1947_v31, %v1946_v30  ;;  %v1948_v33 = vld [vmem:[#allocation17 + $0x10] sm:$0xff]  ;;  %v3637_v30 = vld [vmem:[#allocation26 + $0x2] ss:$0 sm:$0xff] }
 0x3be   : > { %1605 = vrot.lane.b32.xlu1 %v1187_v34, %s5115_s26  ;;  %1433 = vrot.lane.b32.xlu0 %v1187_v34, %s5116_s2 }
 0x3bf   : > { %3791 = vmatpush3.xpose.msk.msra.mxu1 %vm1269_vm2, %v1187_v34 }
 0x3c0   : > { %3795 = vmatprep.subr.mxu1 %v5114_v1 }
 0x3c2   : > { %3793 = vmatmul.mubr.msk.f32.vlgmr.msra.gmra.mrb[6].mxu1 %vm1269_vm2, %v1108_v37  ;;  %1603 = vrot.lane.b32.xlu1 %v1108_v37, %s5115_s26 }
 0x3c3   : > { %1431 = vrot.lane.b32.xlu0 %v1108_v37, %s5116_s2  ;;  %3797 = vmatprep.mubr.msk.f32.mxu1 %vm5113_vm0, %v5114_v1  ;;  %v1265_v39 = vpop.f32.mrb[4].mxu1 }
 0x3c4   : > { %v1266_v40 = vadd.f32 %v3614_v38, %v1265_v39  ;;  %v3789_v41 = vpop.f32.mrb[5].mxu1 }
 0x3c6   : > { %1774 = vrot.lane.b32.xlu1 %v1108_v37, %s5117_s21  ;;  %3796 = vmatpush3.msra.mxu1 %v1266_v40 }
 0x3c7   : > { %1776 = vrot.lane.b32.xlu0 %v1187_v34, %s5117_s21  ;;  %3805 = vmatprep.subr.mxu1 %v5114_v1  ;;  %v1949_v34 = vld [vmem:[#allocation17 + $0x18] sm:$0xff] }
 0x3c8   : > { %v3993_v37 = vpack.c.bf16 %v1949_v34, %v1948_v33 }
 0x3ca   : > { %1519 = vrot.lane.b32.xlu1 %v1266_v40, %s5116_s2 }
 0x430   : > { %v1434_v42 = vpop.permute.xlu0 %1433  ;;  %v1606_v43 = vpop.permute.xlu1 %1605 }
 0x431   : > { %3801 = vmatpush3.xpose.msk.msra.mxu0 %vm1269_vm2, %v1434_v42 }
 0x432   : > { %3810 = vmatprep.subr.mxu0 %v5114_v1 }
 0x434   : > { %v1604_v45 = vpop.permute.xlu1 %1603 }
 0x435   : > { %v1432_v44 = vpop.permute.xlu0 %1431 }
 0x436   : > { %3803 = vmatmul.mubr.msk.f32.vlgmr.msra.gmra.mrb[0].mxu0 %vm1269_vm2, %v1432_v44 }
 0x437   : > { %3811 = vmatpush3.xpose.msk.msra.mxu0 %vm1269_vm2, %v1606_v43  ;;  %3812 = vmatprep.mubr.msk.f32.mxu0 %vm5113_vm0, %v5114_v1 }
 0x438   : > { %3820 = vmatprep.subr.mxu0 %v5114_v1  ;;  %v1775_v47 = vpop.permute.xlu1 %1774 }
 0x439   : > { %v1777_v46 = vpop.permute.xlu0 %1776 }
 0x43a   : > { %3813 = vmatmul.mubr.msk.f32.vlgmr.msra.gmra.mrb[2].mxu0 %vm1269_vm2, %v1604_v45 }
 0x43b   : > { %3821 = vmatpush3.xpose.msk.msra.mxu0 %vm1269_vm2, %v1777_v46  ;;  %3822 = vmatprep.mubr.msk.f32.mxu0 %vm5113_vm0, %v5114_v1 }
 0x43c   : > { %3989 = vmatprep.subr.bf16.mxu0 %v5112_v0  ;;  %v1520_v63 = vpop.permute.xlu1 %1519 }
 0x43e   : > { %3823 = vmatmul.mubr.msk.f32.vlgmr.msra.gmra.mrb[4].mxu0 %vm1269_vm2, %v1775_v47 }
 0x43f   : > { %3838 = vmatprep.mubr.msk.f32.mxu0 %vm5113_vm0, %v5114_v1  ;;  %3991 = vmatpush3.bf16.msra.mxu0 %v3990_v32 }
 0x440   : > { %3992 = vmatprep.subr.bf16.mxu0 %v5112_v0 }
 0x443   : > { %3994 = vmatpush3.bf16.msra.mxu0 %v3993_v37 }
 0x444   : > { %4001 = vmatprep.subr.bf16.mxu0 %v5112_v0 }
 0x495   : > { %v1342_v48 = vpop.f32.mrb[6].mxu1 }
 0x496   : > { %v3794_v49 = vpop.f32.mrb[7].mxu1  ;;  %v1346_v50 = vsel %vm1269_vm2, %v1342_v48, -inf }
 0x497   : > { %1347 = vmax.xlane.f32.xlu0 %v1346_v50 }
 0x509   : > { %v1505_v51 = vpop.f32.mrb[0].mxu0 }
 0x50a   : > { %v3804_v52 = vpop.f32.mrb[1].mxu0  ;;  %v1509_v53 = vsel %vm1269_vm2, %v1505_v51, -inf }
 0x50b   : > { %1510 = vmax.xlane.f32.xlu1 %v1509_v53  ;;  %v2134_v52 = vld [vmem:[#allocation23] sm:$0xff]  ;;  %v2135_v53 = vld [vmem:[#allocation23 + $0x8] sm:$0xff] }
 0x50d   : > { %v1677_v54 = vpop.f32.mrb[2].mxu0 }
 0x50e   : > { %v3814_v55 = vpop.f32.mrb[3].mxu0  ;;  %v1681_v56 = vsel %vm1269_vm2, %v1677_v54, -inf }
 0x50f   : > { %1682 = vmax.xlane.f32.xlu0 %v1681_v56  ;;  %v2136_v55 = vld [vmem:[#allocation23 + $0x10] sm:$0xff]  ;;  %v2137_v56 = vld [vmem:[#allocation23 + $0x18] sm:$0xff] }
 0x511   : > { %v1848_v57 = vpop.f32.mrb[4].mxu0 }
 0x512   : > { %v3824_v58 = vpop.f32.mrb[5].mxu0  ;;  %v1852_v59 = vsel %vm1269_vm2, %v1848_v57, -inf }
 0x513   : > { %1853 = vmax.xlane.f32.xlu0 %v1852_v59  ;;  %v2052_v58 = vld [vmem:[#allocation21] sm:$0xff]  ;;  %v2053_v59 = vld [vmem:[#allocation21 + $0x8] sm:$0xff] }
 0x51c   : > { %1861 = vrot.lane.b32.xlu1 %v1266_v40, %s5117_s21 }
 0x524   : > { %v1348_v60 = vpop.xlane.xlu0 %1347 }
 0x525   : > { %v1349_v61 = vsub.f32 %v1342_v48, %v1348_v60  ;;  %v3996_v60 = vpack.c.bf16 %v2053_v59, %v2052_v58 }
 0x527   : > { %v1350_v62 = vmul.f32 1.442695, %v1349_v61  ;;  %v2054_v61 = vld [vmem:[#allocation21 + $0x10] sm:$0xff] }
 0x529   : > { %4314 = vpow2.f32 %v1350_v62  ;;  %1690 = vrot.lane.b32.xlu0 %v1266_v40, %s5115_s26  ;;  %v2055_v62 = vld [vmem:[#allocation21 + $0x18] sm:$0xff] }
 0x533   : > { %v4315_v2 = vpop.eup %4314 }
 0x534   : > { %3798 = vmatmul.mubr.msk.f32.vlgmr.msra.gmra.mrb[8].mxu1 %vm1269_vm2, %v4315_v2  ;;  %v1352_v18 = vsel %vm1269_vm2, %v4315_v2, 0.0  ;;  %v3999_v2 = vpack.c.bf16 %v2055_v62, %v2054_v61 }
 0x535   : > { %3806 = vmatpush3.msra.mxu1 %v1520_v63  ;;  %3807 = vmatprep.mubr.msk.f32.mxu1 %vm5113_vm0, %v5114_v1  ;;  %v2050_v63 = vld [vmem:[%s860_s25] sm:$0xff]  ;;  %s4976_s25 = sshll.u32 %s5121_s9, 4  ;;  %s4977_s25 = int_to_ptr.vmem [resolvable:$false] %s4976_s25 }
 0x536   : > { %3815 = vmatprep.subr.mxu1 %v5114_v1  ;;  %p4979_p9 = scmp.lt.s32.totalorder %s6054_s7, %s4977_s25 }
 0x598   : > { %v1511_v3 = vpop.xlane.xlu1 %1510 }
 0x599   : > { %v1512_v4 = vsub.f32 %v1505_v51, %v1511_v3  ;;  %v3628_v3 = vld [vmem:[#allocation18] ss:$0 sm:$0xff] }
 0x59b   : > { %v1513_v5 = vmul.f32 1.442695, %v1512_v4 }
 0x59c   : > { %v1683_v6 = vpop.xlane.xlu0 %1682  ;;  %v1862_v17 = vpop.permute.xlu1 %1861 }
 0x59d   : > { %4316 = vpow2.f32 %v1513_v5  ;;  %v1684_v7 = vsub.f32 %v1677_v54, %v1683_v6  ;;  %v4002_v54 = vpack.c.bf16 %v2135_v53, %v2134_v52 }
 0x59f   : > { %v1685_v8 = vmul.f32 1.442695, %v1684_v7  ;;  %v3630_v7 = vld [vmem:[#allocation20 + $0x2] ss:$0 sm:$0xff] }
 0x5a0   : > { %v1854_v10 = vpop.xlane.xlu0 %1853 }
 0x5a1   : > { %4318 = vpow2.f32 %v1685_v8  ;;  %v1855_v11 = vsub.f32 %v1848_v57, %v1854_v10  ;;  %v4005_v57 = vpack.c.bf16 %v2137_v56, %v2136_v55 }
 0x5a3   : > { %v1856_v12 = vmul.f32 1.442695, %v1855_v11  ;;  %v3631_v11 = vld [vmem:[#allocation20] ss:$0 sm:$0xff] }
 0x5a4   : > { %v1691_v14 = vpop.permute.xlu0 %1690 }
 0x5a5   : > { %4320 = vpow2.f32 %v1856_v12 }
 0x5a7   : > { %v4317_v13 = vpop.eup %4316 }
 0x5a8   : > { %3808 = vmatmul.mubr.msk.f32.vlgmr.msra.gmra.mrb[10].mxu1 %vm1269_vm2, %v4317_v13  ;;  %v1515_v15 = vsel %vm1269_vm2, %v4317_v13, 0.0  ;;  %v3632_v13 = vld [vmem:[#allocation20 + $0x1] ss:$0 sm:$0xff] }
 0x5a9   : > { %3816 = vmatpush3.msra.mxu1 %v1691_v14  ;;  %1516 = vadd.xlane.f32.xlu1 %v1515_v15 }
 0x5aa   : > { %3817 = vmatprep.mubr.msk.f32.mxu1 %vm5113_vm0, %v5114_v1  ;;  %3825 = vmatprep.subr.mxu1 %v5114_v1 }
 0x5ab   : > { %v4319_v16 = vpop.eup %4318 }
 0x5ac   : > { %3818 = vmatmul.mubr.msk.f32.vlgmr.msra.gmra.mrb[12].mxu1 %vm1269_vm2, %v4319_v16  ;;  %v1687_v19 = vsel %vm1269_vm2, %v4319_v16, 0.0  ;;  %v3635_v16 = vld [vmem:[#allocation26 + $0x1] ss:$0 sm:$0xff] }
 0x5ad   : > { %3826 = vmatpush3.msra.mxu1 %v1862_v17  ;;  %1353 = vadd.xlane.f32.xlu1 %v1352_v18 }
 0x5ae   : > { %1688 = vadd.xlane.f32.xlu0 %v1687_v19  ;;  %3827 = vmatprep.mubr.msk.f32.mxu1 %vm5113_vm0, %v5114_v1 }
 0x5af   : > { %v4321_v20 = vpop.eup %4320  ;;  %3995 = vmatprep.subr.bf16.mxu1 %v5112_v0 }
 0x5b0   : > { %3828 = vmatmul.mubr.msk.f32.vlgmr.msra.gmra.mrb[14].mxu1 %vm1269_vm2, %v4321_v20  ;;  %v1858_v21 = vsel %vm1269_vm2, %v4321_v20, 0.0  ;;  %v2217_v20 = vld [vmem:[#allocation24 + $0x8] sm:$0xff] }
 0x5b1   : > { %3849 = vmatprep.mubr.msk.f32.mxu1 %vm5113_vm0, %v5114_v1  ;;  %3997 = vmatpush3.bf16.msra.mxu1 %v3996_v60 }
 0x5b2   : > { %1859 = vadd.xlane.f32.xlu0 %v1858_v21  ;;  %3998 = vmatprep.subr.bf16.mxu1 %v5112_v0  ;;  %v2218_v21 = vld [vmem:[#allocation24 + $0x10] sm:$0xff] }
 0x5b5   : > { %4000 = vmatpush3.bf16.msra.mxu1 %v3999_v2 }
 0x5b6   : > { %4007 = vmatprep.subr.bf16.mxu1 %v5112_v0 }
 0x607   : > { %v1424_v22 = vpop.f32.mrb[8].mxu1 }
 0x608   : > { %v3799_v23 = vpop.f32.mrb[9].mxu1 }
 0x609   : > { %v2219_v23 = vld [vmem:[#allocation24 + $0x18] sm:$0xff] }
 0x636   : > { %v1517_v24 = vpop.xlane.xlu1 %1516 }
 0x63a   : > { %v1354_v25 = vpop.xlane.xlu1 %1353 }
 0x63b   : > { %4322 = vrcp.f32 %v1354_v25  ;;  %v1689_v28 = vpop.xlane.xlu0 %1688  ;;  %v3633_v25 = vld [vmem:[#allocation26] ss:$0 sm:$0xff] }
 0x63c   : > { %4324 = vrcp.f32 %v1517_v24  ;;  %v4011_v24 = vpack.c.bf16 %v2219_v23, %v2218_v21  ;;  %v2967_v21 = vld [vmem:[#allocation27] sm:$0xff] }
 0x63d   : > { %4326 = vrcp.f32 %v1689_v28 }
 0x63f   : > { %v1860_v29 = vpop.xlane.xlu0 %1859 }
 0x640   : > { %4328 = vrcp.f32 %v1860_v29 }
 0x645   : > { %v4323_v26 = vpop.eup %4322 }
 0x646   : > { %v1429_v27 = vmul.f32 %v4323_v26, %v1424_v22  ;;  %v4325_v35 = vpop.eup %4324 }
 0x647   : > { %v4327_v40 = vpop.eup %4326 }
 0x648   : > { %1430 = vst.msk [vmem:[#allocation2] sm:$0xff] %vm1269_vm2, %v1429_v27 }
 0x64a   : > { %v4329_v44 = vpop.eup %4328 }
 0x67b   : > { %v1591_v36 = vpop.f32.mrb[10].mxu1 }
 0x67c   : > { %v1596_v38 = vmul.f32 %v4325_v35, %v1591_v36  ;;  %v3809_v39 = vpop.f32.mrb[11].mxu1 }
 0x67e   : > { %1598 = vrot.lane.b32.xlu0 %v1596_v38, %s5118_s15 }
 0x67f   : > { %v1762_v41 = vpop.f32.mrb[12].mxu1 }
 0x680   : > { %v1767_v42 = vmul.f32 %v4327_v40, %v1762_v41  ;;  %v3819_v43 = vpop.f32.mrb[13].mxu1 }
 0x682   : > { %1769 = vrot.lane.b32.xlu1 %v1767_v42, %s5119_s12 }
 0x683   : > { %v1933_v45 = vpop.f32.mrb[14].mxu1 }
 0x684   : > { %v1938_v46 = vmul.f32 %v4329_v44, %v1933_v45  ;;  %v3829_v47 = vpop.f32.mrb[15].mxu1 }
 0x686   : > { %1940 = vrot.lane.b32.xlu1 %v1938_v46, %s5120_s8 }
 0x6f0   : > { %v1599_v48 = vpop.permute.xlu0 %1598 }
 0x6f1   : > { %1602 = vst.msk [vmem:[#allocation2] sm:$0xff] %vm1601_vm3, %v1599_v48 }
 0x6f4   : > { %v1770_v49 = vpop.permute.xlu1 %1769 }
 0x6f5   : > { %1773 = vst.msk [vmem:[#allocation2] sm:$0xff] %vm1772_vm4, %v1770_v49 }
 0x6f8   : > { %v1941_v50 = vpop.permute.xlu1 %1940 }
 0x6f9   : > { %1944 = vst.msk [vmem:[#allocation2] sm:$0xff] %vm1943_vm5, %v1941_v50 }
 0x700   : > { %v1945_v51 = vld [vmem:[#allocation2] sm:$0xff] }
 0x701   : > { %3839 = vmatmul.mubr.msk.f32.vlgmr.msra.gmra.mrb[6].mxu0 %vm1037_vm1, %v1945_v51 }
 0x702   : > { %3860 = vmatprep.mubr.msk.f32.mxu0 %vm5113_vm0, %v5114_v1  ;;  %4003 = vmatpush3.bf16.msra.mxu0 %v4002_v54 }
 0x703   : > { %4004 = vmatprep.subr.bf16.mxu0 %v5112_v0 }
 0x706   : > { %4006 = vmatpush3.bf16.msra.mxu0 %v4005_v57 }
 0x707   : > { %3874 = vmatprep.subr.mxu0 %v5114_v1 }
 0x709   : > { %3861 = vmatmul.mubr.msk.f32.vlgmr.msra.gmra.mrb[8].mxu0 %vm1037_vm1, %v2050_v63 }
 0x70a   : > { %3876 = vmatprep.mubr.msk.f32.mxu0 %vm5113_vm0, %v5114_v1 }
 0x7d4   : > { %v2026_v4 = vpop.f32.mrb[6].mxu0 }
 0x7d5   : > { %v2027_v5 = vadd.f32 %v3628_v3, %v2026_v4  ;;  %v3840_v6 = vpop.f32.mrb[7].mxu0 }
 0x7d7   : > { %v5957_v8 = vadd.f32 %v2027_v5, %v5864_v9  ;;  %v2216_v9 = vld [vmem:[#allocation24] sm:$0xff] }
 0x7d8   : > { %v4008_v22 = vpack.c.bf16 %v2217_v20, %v2216_v9 }
 0x7d9   : > { %v2038_v10 = vmul.f32 %v3630_v7, %v5957_v8 }
 0x7db   : > { %4330 = vtanh.f32 %v2038_v10 }
 0x7dc   : > { %v2211_v17 = vpop.f32.mrb[8].mxu0 }
 0x7dd   : > { %v2212_v18 = vadd.f32 %v3635_v16, %v2211_v17  ;;  %v3862_v19 = vpop.f32.mrb[9].mxu0 }
 0x7df   : > { %2457 = vrot.lane.b32.xlu0 %v2212_v18, %s5116_s2  ;;  %3875 = vmatpush3.xpose.msk.msra.mxu0 %vm1269_vm2, %v2212_v18 }
 0x7e0   : > { %3884 = vmatprep.subr.mxu0 %v5114_v1 }
 0x7e3   : > { %2628 = vrot.lane.b32.xlu0 %v2212_v18, %s5115_s26 }
 0x7e5   : > { %v4331_v12 = vpop.eup %4330 }
 0x7e6   : > { %v2044_v14 = vmul.f32 %v4331_v12, %v3631_v11 }
 0x7e7   : > { %2798 = vrot.lane.b32.xlu0 %v2212_v18, %s5117_s21 }
 0x7e8   : > { %v2049_v15 = vadd.f32 %v3632_v13, %v2044_v14 }
 0x7ea   : > { %3850 = vmatmul.mubr.msk.f32.vlgmr.msra.gmra.mrb[16].mxu1 %vm1037_vm1, %v2049_v15 }
 0x7eb   : > { %3871 = vmatprep.mubr.msk.f32.mxu1 %vm5113_vm0, %v5114_v1  ;;  %4009 = vmatpush3.bf16.msra.mxu1 %v4008_v22  ;;  %v2968_v22 = vld [vmem:[#allocation27 + $0x8] sm:$0xff] }
 0x7ec   : > { %4010 = vmatprep.subr.bf16.mxu1 %v5112_v0  ;;  %v4014_v23 = vpack.c.bf16 %v2968_v22, %v2967_v21  ;;  %v3656_v22 = vld [vmem:[#allocation33] ss:$0 sm:$0xff] }
 0x7ef   : > { %4012 = vmatpush3.bf16.msra.mxu1 %v4011_v24  ;;  %v2969_v24 = vld [vmem:[#allocation27 + $0x10] sm:$0xff] }
 0x7f0   : > { %3879 = vmatprep.subr.mxu1 %v5114_v1 }
 0x7f2   : > { %3872 = vmatmul.mubr.msk.f32.vlgmr.msra.gmra.mrb[18].mxu1 %vm1037_vm1, %v2050_v63 }
 0x7f3   : > { %3881 = vmatprep.mubr.msk.f32.mxu1 %vm5113_vm0, %v5114_v1 }
 0x851   : > { %v2458_v29 = vpop.permute.xlu0 %2457 }
 0x855   : > { %v2629_v34 = vpop.permute.xlu0 %2628 }
 0x859   : > { %v2799_v37 = vpop.permute.xlu0 %2798 }
 0x8bd   : > { %v2129_v26 = vpop.f32.mrb[16].mxu1 }
 0x8be   : > { %v2130_v27 = vadd.f32 %v3633_v25, %v2129_v26  ;;  %v3851_v28 = vpop.f32.mrb[17].mxu1  ;;  %v2970_v25 = vld [vmem:[#allocation27 + $0x18] sm:$0xff] }
 0x8bf   : > { %v4017_v28 = vpack.c.bf16 %v2970_v25, %v2969_v24 }
 0x8c0   : > { %2455 = vrot.lane.b32.xlu1 %v2130_v27, %s5116_s2  ;;  %3877 = vmatmul.mubr.msk.f32.vlgmr.msra.gmra.mrb[10].mxu0 %vm1269_vm2, %v2130_v27 }
 0x8c1   : > { %3885 = vmatpush3.xpose.msk.msra.mxu0 %vm1269_vm2, %v2458_v29  ;;  %3886 = vmatprep.mubr.msk.f32.mxu0 %vm5113_vm0, %v5114_v1 }
 0x8c2   : > { %3894 = vmatprep.subr.mxu0 %v5114_v1 }
 0x8c4   : > { %2626 = vrot.lane.b32.xlu1 %v2130_v27, %s5115_s26 }
 0x8c5   : > { %v2290_v31 = vpop.f32.mrb[18].mxu1 }
 0x8c6   : > { %v2291_v32 = vadd.f32 %v3637_v30, %v2290_v31  ;;  %v3873_v33 = vpop.f32.mrb[19].mxu1 }
 0x8c8   : > { %2796 = vrot.lane.b32.xlu1 %v2130_v27, %s5117_s21  ;;  %3880 = vmatpush3.msra.mxu1 %v2291_v32 }
 0x8c9   : > { %3889 = vmatprep.subr.mxu1 %v5114_v1 }
 0x8cc   : > { %2543 = vrot.lane.b32.xlu1 %v2291_v32, %s5116_s2 }
 0x932   : > { %v2456_v35 = vpop.permute.xlu1 %2455 }
 0x933   : > { %3887 = vmatmul.mubr.msk.f32.vlgmr.msra.gmra.mrb[12].mxu0 %vm1269_vm2, %v2456_v35 }
 0x934   : > { %3895 = vmatpush3.xpose.msk.msra.mxu0 %vm1269_vm2, %v2629_v34  ;;  %3896 = vmatprep.mubr.msk.f32.mxu0 %vm5113_vm0, %v5114_v1 }
 0x935   : > { %3904 = vmatprep.subr.mxu0 %v5114_v1 }
 0x936   : > { %v2627_v36 = vpop.permute.xlu1 %2626 }
 0x937   : > { %3897 = vmatmul.mubr.msk.f32.vlgmr.msra.gmra.mrb[14].mxu0 %vm1269_vm2, %v2627_v36 }
 0x938   : > { %3905 = vmatpush3.xpose.msk.msra.mxu0 %vm1269_vm2, %v2799_v37  ;;  %3906 = vmatprep.mubr.msk.f32.mxu0 %vm5113_vm0, %v5114_v1 }
 0x939   : > { %4013 = vmatprep.subr.bf16.mxu0 %v5112_v0 }
 0x93a   : > { %v2797_v38 = vpop.permute.xlu1 %2796 }
 0x93b   : > { %3907 = vmatmul.mubr.msk.f32.vlgmr.msra.gmra.mrb[16].mxu0 %vm1269_vm2, %v2797_v38 }
 0x93c   : > { %3922 = vmatprep.mubr.msk.f32.mxu0 %vm5113_vm0, %v5114_v1  ;;  %4015 = vmatpush3.bf16.msra.mxu0 %v4014_v23 }
 0x93d   : > { %4016 = vmatprep.subr.bf16.mxu0 %v5112_v0 }
 0x93e   : > { %v2544_v54 = vpop.permute.xlu1 %2543 }
 0x940   : > { %4018 = vmatpush3.bf16.msra.mxu0 %v4017_v28 }
 0x941   : > { %4025 = vmatprep.subr.bf16.mxu0 %v5112_v0 }
 0x993   : > { %v2366_v39 = vpop.f32.mrb[10].mxu0 }
 0x994   : > { %v3878_v40 = vpop.f32.mrb[11].mxu0  ;;  %v2370_v41 = vsel %vm1269_vm2, %v2366_v39, -inf }
 0x995   : > { %2371 = vmax.xlane.f32.xlu0 %v2370_v41 }
 0xa06   : > { %v2529_v42 = vpop.f32.mrb[12].mxu0 }
 0xa07   : > { %v3888_v43 = vpop.f32.mrb[13].mxu0  ;;  %v2533_v44 = vsel %vm1269_vm2, %v2529_v42, -inf }
 0xa08   : > { %2534 = vmax.xlane.f32.xlu1 %v2533_v44  ;;  %v3071_v43 = vld [vmem:[#allocation32] sm:$0xff]  ;;  %v3072_v44 = vld [vmem:[#allocation32 + $0x8] sm:$0xff] }
 0xa0a   : > { %v2700_v45 = vpop.f32.mrb[14].mxu0 }
 0xa0b   : > { %v3898_v46 = vpop.f32.mrb[15].mxu0  ;;  %v2704_v47 = vsel %vm1269_vm2, %v2700_v45, -inf }
 0xa0c   : > { %2705 = vmax.xlane.f32.xlu0 %v2704_v47  ;;  %v4020_v46 = vpack.c.bf16 %v3072_v44, %v3071_v43  ;;  %v3074_v47 = vld [vmem:[#allocation32 + $0x18] sm:$0xff] }
 0xa0e   : > { %v2870_v48 = vpop.f32.mrb[16].mxu0 }
 0xa0f   : > { %v3908_v49 = vpop.f32.mrb[17].mxu0  ;;  %v2874_v50 = vsel %vm1269_vm2, %v2870_v48, -inf }
 0xa10   : > { %2875 = vmax.xlane.f32.xlu0 %v2874_v50  ;;  %v3164_v49 = vld [vmem:[#allocation35] sm:$0xff]  ;;  %v3165_v50 = vld [vmem:[#allocation35 + $0x8] sm:$0xff] }
 0xa19   : > { %2883 = vrot.lane.b32.xlu1 %v2291_v32, %s5117_s21 }
 0xa22   : > { %v2372_v51 = vpop.xlane.xlu0 %2371 }
 0xa23   : > { %v2373_v52 = vsub.f32 %v2366_v39, %v2372_v51  ;;  %v4026_v51 = vpack.c.bf16 %v3165_v50, %v3164_v49 }
 0xa25   : > { %v2374_v53 = vmul.f32 1.442695, %v2373_v52  ;;  %v3651_v52 = vld [vmem:[#allocation29] ss:$0 sm:$0xff] }
 0xa26   : > { %2713 = vrot.lane.b32.xlu0 %v2291_v32, %s5115_s26  ;;  %s4978_s26 = scalar_lea.vmem %s4977_s25, 256 }
 0xa27   : > { %4332 = vpow2.f32 %v2374_v53  ;;  %p4980_p6 = scmp.lt.s32.totalorder %s4978_s26, %s4972_s1 }
 0xa29   : > { %p4981_p2 = por %p4980_p6, %p4979_p9 }
 0xa2b   : > { %p4982_p8 = pnand %p4981_p2, %p4975_p11 }
 0xa31   : > { %v4333_v55 = vpop.eup %4332 }
 0xa32   : > { %3882 = vmatmul.mubr.msk.f32.vlgmr.msra.gmra.mrb[20].mxu1 %vm1269_vm2, %v4333_v55  ;;  %v2376_v11 = vsel %vm1269_vm2, %v4333_v55, 0.0  ;;  %v3653_v55 = vld [vmem:[#allocation30 + $0x2] ss:$0 sm:$0xff] }
 0xa33   : > { %3890 = vmatpush3.msra.mxu1 %v2544_v54  ;;  %3891 = vmatprep.mubr.msk.f32.mxu1 %vm5113_vm0, %v5114_v1 }
 0xa34   : > { %3899 = vmatprep.subr.mxu1 %v5114_v1 }
 0xa95   : > { %v2535_v56 = vpop.xlane.xlu1 %2534 }
 0xa96   : > { %v2536_v57 = vsub.f32 %v2529_v42, %v2535_v56 }
 0xa98   : > { %v2537_v58 = vmul.f32 1.442695, %v2536_v57 }
 0xa99   : > { %v2706_v59 = vpop.xlane.xlu0 %2705  ;;  %v2884_v7 = vpop.permute.xlu1 %2883 }
 0xa9a   : > { %4334 = vpow2.f32 %v2537_v58  ;;  %v2707_v60 = vsub.f32 %v2700_v45, %v2706_v59  ;;  %v3073_v45 = vld [vmem:[#allocation32 + $0x10] sm:$0xff]  ;;  %v3654_v58 = vld [vmem:[#allocation30] ss:$0 sm:$0xff] }
 0xa9c   : > { %v2708_v61 = vmul.f32 1.442695, %v2707_v60  ;;  %v3655_v60 = vld [vmem:[#allocation30 + $0x1] ss:$0 sm:$0xff] }
 0xa9d   : > { %v2876_v62 = vpop.xlane.xlu0 %2875 }
 0xa9e   : > { %4336 = vpow2.f32 %v2708_v61  ;;  %v2877_v63 = vsub.f32 %v2870_v48, %v2876_v62  ;;  %v4023_v48 = vpack.c.bf16 %v3074_v47, %v3073_v45 }
 0xaa0   : > { %v2878_v2 = vmul.f32 1.442695, %v2877_v63  ;;  %v3166_v63 = vld [vmem:[#allocation35 + $0x10] sm:$0xff] }
 0xaa1   : > { %v2714_v4 = vpop.permute.xlu0 %2713 }
 0xaa2   : > { %4338 = vpow2.f32 %v2878_v2  ;;  %v3167_v2 = vld [vmem:[#allocation35 + $0x18] sm:$0xff] }
 0xaa4   : > { %v4335_v3 = vpop.eup %4334 }
 0xaa5   : > { %3892 = vmatmul.mubr.msk.f32.vlgmr.msra.gmra.mrb[22].mxu1 %vm1269_vm2, %v4335_v3  ;;  %v2539_v5 = vsel %vm1269_vm2, %v4335_v3, 0.0  ;;  %v4029_v3 = vpack.c.bf16 %v3167_v2, %v3166_v63 }
 0xaa6   : > { %3900 = vmatpush3.msra.mxu1 %v2714_v4  ;;  %2540 = vadd.xlane.f32.xlu1 %v2539_v5  ;;  %v3168_v4 = vld [vmem:[#allocation35 + $0x20] sm:$0xff]  ;;  %v3169_v5 = vld [vmem:[#allocation35 + $0x28] sm:$0xff] }
 0xaa7   : > { %3901 = vmatprep.mubr.msk.f32.mxu1 %vm5113_vm0, %v5114_v1  ;;  %3909 = vmatprep.subr.mxu1 %v5114_v1 }
 0xaa8   : > { %v4337_v6 = vpop.eup %4336 }
 0xaa9   : > { %3902 = vmatmul.mubr.msk.f32.vlgmr.msra.gmra.mrb[24].mxu1 %vm1269_vm2, %v4337_v6  ;;  %v2710_v10 = vsel %vm1269_vm2, %v4337_v6, 0.0  ;;  %v3170_v6 = vld [vmem:[#allocation35 + $0x30] sm:$0xff] }
 0xaaa   : > { %3910 = vmatpush3.msra.mxu1 %v2884_v7  ;;  %2711 = vadd.xlane.f32.xlu0 %v2710_v10  ;;  %v3171_v7 = vld [vmem:[#allocation35 + $0x38] sm:$0xff] }
 0xaab   : > { %2377 = vadd.xlane.f32.xlu1 %v2376_v11  ;;  %3911 = vmatprep.mubr.msk.f32.mxu1 %vm5113_vm0, %v5114_v1  ;;  %v4035_v10 = vpack.c.bf16 %v3171_v7, %v3170_v6  ;;  %v3172_v11 = vld [vmem:[#allocation35 + $0x40] sm:$0xff] }
 0xaac   : > { %v4339_v12 = vpop.eup %4338  ;;  %4019 = vmatprep.subr.bf16.mxu1 %v5112_v0 }
 0xaad   : > { %3912 = vmatmul.mubr.msk.f32.vlgmr.msra.gmra.mrb[26].mxu1 %vm1269_vm2, %v4339_v12  ;;  %v2880_v13 = vsel %vm1269_vm2, %v4339_v12, 0.0  ;;  %v3173_v12 = vld [vmem:[#allocation35 + $0x48] sm:$0xff] }
 0xaae   : > { %2881 = vadd.xlane.f32.xlu0 %v2880_v13  ;;  %3933 = vmatprep.mubr.msk.f32.mxu1 %vm5113_vm0, %v5114_v1  ;;  %v4038_v13 = vpack.c.bf16 %v3173_v12, %v3172_v11 }
 0xaaf   : > { %4021 = vmatpush3.bf16.msra.mxu1 %v4020_v46 }
 0xab0   : > { %4022 = vmatprep.subr.bf16.mxu1 %v5112_v0 }
 0xab3   : > { %4024 = vmatpush3.bf16.msra.mxu1 %v4023_v48 }
 0xb05   : > { %v2448_v14 = vpop.f32.mrb[20].mxu1 }
 0xb06   : > { %v3883_v15 = vpop.f32.mrb[21].mxu1 }
 0xb07   : > { %v3175_v15 = vld [vmem:[#allocation35 + $0x58] sm:$0xff] }
 0xb33   : > { %v2541_v16 = vpop.xlane.xlu1 %2540 }
 0xb37   : > { %v2712_v9 = vpop.xlane.xlu0 %2711 }
 0xb38   : > { %v2378_v17 = vpop.xlane.xlu1 %2377 }
 0xb39   : > { %4340 = vrcp.f32 %v2378_v17  ;;  %v3176_v17 = vld [vmem:[#allocation35 + $0x60] sm:$0xff] }
 0xb3a   : > { %4342 = vrcp.f32 %v2541_v16 }
 0xb3b   : > { %4344 = vrcp.f32 %v2712_v9  ;;  %v2882_v20 = vpop.xlane.xlu0 %2881  ;;  %v3178_v9 = vld [vmem:[#allocation35 + $0x70] sm:$0xff] }
 0xb3c   : > { %4346 = vrcp.f32 %v2882_v20  ;;  %v3179_v20 = vld [vmem:[#allocation35 + $0x78] sm:$0xff] }
 0xb3d   : > { %v4047_v21 = vpack.c.bf16 %v3179_v20, %v3178_v9 }
 0xb43   : > { %v4341_v18 = vpop.eup %4340 }
 0xb44   : > { %v2453_v19 = vmul.f32 %v4341_v18, %v2448_v14  ;;  %v4343_v26 = vpop.eup %4342  ;;  %v3174_v14 = vld [vmem:[#allocation35 + $0x50] sm:$0xff]  ;;  %v3177_v18 = vld [vmem:[#allocation35 + $0x68] sm:$0xff] }
 0xb45   : > { %v4345_v31 = vpop.eup %4344  ;;  %v4041_v16 = vpack.c.bf16 %v3175_v15, %v3174_v14 }
 0xb46   : > { %2454 = vst.msk [vmem:[#allocation2] sm:$0xff] %vm1269_vm2, %v2453_v19  ;;  %v4347_v35 = vpop.eup %4346  ;;  %v4044_v19 = vpack.c.bf16 %v3177_v18, %v3176_v17 }
 0xb78   : > { %v2615_v27 = vpop.f32.mrb[22].mxu1 }
 0xb79   : > { %v2620_v29 = vmul.f32 %v4343_v26, %v2615_v27  ;;  %v3893_v30 = vpop.f32.mrb[23].mxu1 }
 0xb7b   : > { %2622 = vrot.lane.b32.xlu0 %v2620_v29, %s5118_s15 }
 0xb7c   : > { %v2785_v32 = vpop.f32.mrb[24].mxu1 }
 0xb7d   : > { %v2790_v33 = vmul.f32 %v4345_v31, %v2785_v32  ;;  %v3903_v34 = vpop.f32.mrb[25].mxu1 }
 0xb7f   : > { %2792 = vrot.lane.b32.xlu1 %v2790_v33, %s5119_s12 }
 0xb80   : > { %v2955_v36 = vpop.f32.mrb[26].mxu1 }
 0xb81   : > { %v2960_v37 = vmul.f32 %v4347_v35, %v2955_v36  ;;  %v3913_v38 = vpop.f32.mrb[27].mxu1 }
 0xb83   : > { %2962 = vrot.lane.b32.xlu1 %v2960_v37, %s5120_s8 }
 0xbed   : > { %v2623_v39 = vpop.permute.xlu0 %2622 }
 0xbee   : > { %2625 = vst.msk [vmem:[#allocation2] sm:$0xff] %vm1601_vm3, %v2623_v39 }
 0xbf1   : > { %v2793_v40 = vpop.permute.xlu1 %2792 }
 0xbf2   : > { %2795 = vst.msk [vmem:[#allocation2] sm:$0xff] %vm1772_vm4, %v2793_v40 }
 0xbf5   : > { %v2963_v41 = vpop.permute.xlu1 %2962 }
 0xbf6   : > { %2965 = vst.msk [vmem:[#allocation2] sm:$0xff] %vm1943_vm5, %v2963_v41 }
 0xbfd   : > { %v2966_v42 = vld [vmem:[#allocation2] sm:$0xff] }
 0xbfe   : > { %3923 = vmatmul.mubr.msk.f32.vlgmr.msra.gmra.mrb[18].mxu0 %vm1037_vm1, %v2966_v42 }
 0xbff   : > { %3968 = vmatprep.mubr.msk.f32.mxu0 %vm5113_vm0, %v5114_v1  ;;  %4027 = vmatpush3.bf16.msra.mxu0 %v4026_v51 }
 0xc00   : > { %4028 = vmatprep.subr.bf16.mxu0 %v5112_v0 }
 0xc03   : > { %4030 = vmatpush3.bf16.msra.mxu0 %v4029_v3 }
 0xc04   : > { %4031 = vmatprep.subr.bf16.mxu0 %v5112_v0 }
 0xcd1   : > { %v3047_v53 = vpop.f32.mrb[18].mxu0 }
 0xcd2   : > { %v3048_v54 = vadd.f32 %v3651_v52, %v3047_v53  ;;  %v3924_v1 = vpop.f32.mrb[19].mxu0 }
 0xcd4   : > { %v6036_v56 = vadd.f32 %v3048_v54, %v5957_v8  ;;  %v4032_v8 = vpack.c.bf16 %v3169_v5, %v3168_v4 }
 0xcd6   : > { %v3059_v57 = vmul.f32 %v3653_v55, %v6036_v56  ;;  %4033 = vmatpush3.bf16.msra.mxu0 %v4032_v8 }
 0xcd7   : > { %4034 = vmatprep.subr.bf16.mxu0 %v5112_v0 }
 0xcd8   : > { %4348 = vtanh.f32 %v3059_v57 }
 0xcda   : > { %4036 = vmatpush3.bf16.msra.mxu0 %v4035_v10 }
 0xcdb   : > { %4037 = vmatprep.subr.bf16.mxu0 %v5112_v0 }
 0xcde   : > { %4039 = vmatpush3.bf16.msra.mxu0 %v4038_v13 }
 0xcdf   : > { %4040 = vmatprep.subr.bf16.mxu0 %v5112_v0 }
 0xce2   : > { %v4349_v59 = vpop.eup %4348  ;;  %4042 = vmatpush3.bf16.msra.mxu0 %v4041_v16 }
 0xce3   : > { %v3065_v61 = vmul.f32 %v4349_v59, %v3654_v58  ;;  %4043 = vmatprep.subr.bf16.mxu0 %v5112_v0 }
 0xce5   : > { %v3070_v62 = vadd.f32 %v3655_v60, %v3065_v61 }
 0xce6   : > { %4045 = vmatpush3.bf16.msra.mxu0 %v4044_v19 }
 0xce7   : > { %3934 = vmatmul.mubr.msk.f32.vlgmr.msra.gmra.mrb[28].mxu1 %vm1037_vm1, %v3070_v62  ;;  %4046 = vmatprep.subr.bf16.mxu0 %v5112_v0  ;;  %v3658_v0 = vld [vmem:[#allocation36] ss:$0 sm:$0xff] }
 0xcea   : > { %4048 = vmatpush3.bf16.msra.mxu0 %v4047_v21 }
 0xdba   : > { %v3151_v23 = vpop.f32.mrb[28].mxu1 }
 0xdbb   : > { %v3152_v24 = vadd.f32 %v3656_v22, %v3151_v23  ;;  %v3935_v25 = vpop.f32.mrb[29].mxu1 }
 0xdbd   : > { %v3156_v26 = vmul.f32 0.044715, %v3152_v24  ;;  %v3155_v32 = vmul.f32 0.5, %v3152_v24 }
 0xdbf   : > { %v3157_v27 = vmul.f32 %v3156_v26, %v3152_v24 }
 0xdc1   : > { %v3158_v28 = vmul.f32 %v3157_v27, %v3152_v24 }
 0xdc3   : > { %v3159_v29 = vadd.f32 %v3158_v28, %v3152_v24 }
 0xdc5   : > { %v3160_v30 = vmul.f32 0.7978846, %v3159_v29 }
 0xdc7   : > { %4350 = vtanh.f32 %v3160_v30 }
 0xdd1   : > { %v4351_v31 = vpop.eup %4350 }
 0xdd2   : > { %v3162_v33 = vadd.f32 1.0, %v4351_v31 }
 0xdd4   : > { %v3163_v34 = vmul.f32 %v3162_v33, %v3155_v32 }
 0xdd6   : > { %3969 = vmatmul.mubr.f32.vlgmr.msra.gmra.mrb[20].mxu0 %v3163_v34 }
 0xea9   : > { %v3253_v35 = vpop.f32.mrb[20].mxu0 }
 0xeaa   : > { %v3254_v36 = vadd.f32 %v3658_v0, %v3253_v35  ;;  %v3970_v37 = vpop.f32.mrb[21].mxu0 }
 0xeac   : > { %v3257_v38 = vadd.f32 %v3254_v36, %v6036_v56 }
 0xeae   : > { %3258 = vst.msk [vmem:[%s1005_s4] sm:$0xff] %vm1037_vm1, %v3257_v38 }
 0xeaf   : > { %4985 = shalt.err (!%p4982_p8)
}
 0xeb0   : > { %s4986_s13 = scalar_lea.hbm %s6052_s24, 128  ;;  %s4990_s15 = scalar_lea.hbm %s6235_s0, 256 }
 0xeb1   : > { %p4987_p12 = scmp.ne.s32.totalorder %s6052_s24, %s4986_s13  ;;  %p4991_p4 = scmp.lt.u32.totalorder %s6052_s24, %s6235_s0 }
 0xeb2   : > { %p4992_p1 = scmp.lt.u32.totalorder %s4990_s15, %s4986_s13  ;;  %p4994_p13 = scmp.lt.u32.totalorder %s4986_s13, %s6052_s24 }
 0xeb3   : > { %p4988_p5 = pnand %p4987_p12, %p6236_p0 }
 0xeb4   : > { %p4993_p3 = por %p4992_p1, %p4991_p4 }
 0xeb5   : > { %p4989_p7 = pneg %p4988_p5 }
 0xeb6   : > { %p4995_p10 = por %p4994_p13, %p4993_p3 }
 0xeb8   : > { %p4996_p11 = pnand %p4995_p10, %p4989_p7 }
 0xeba   : > { %4999 = shalt.err (!%p4996_p11)
}
 0xebb   : > { %4133 = dma.vmem_to_hbm [thread:$0]  (%p6236_p0), %s6054_s7, 128, %s6052_s24, %s3260_s14  }
 0xebc PF: > { %s6237_s27 = sld [smem:[#allocation53_spill]]  ;;  %s6238_s4 = sld [smem:[#allocation56_spill]] }
 0xebd   : > { %p6239_p9 = scmp.ne.s32.totalorder %s6204_s29, 0 }
 0xec2   : > { %s3285_s5 = sand.u32 1, %s6237_s27   ;;  %p6240_p6 = scmp.ge.s32.totalorder %s6238_s4, 2 }
 0xec3   : > { %s3286_s10 = scalar_lea.sflag [#allocation5], %s3285_s5 }
 0xec4   : > { %p4204_p2 = pnand %p6240_p6, %p6239_p9 }
 0xec6   : > { %5069 = dma.done.wait (!%p4204_p2), %s3286_s10, 128  }
 0xec7   : > { %5071 = vsyncadd (!%p4204_p2), %s3286_s10, 4294967168  ;;  %s6241_s1 = sld [smem:[#allocation54_spill]]  ;;  %s6242_s28 = sld [smem:[#allocation55_spill]] }
 0xec8   : > { %s6243_s9 = smov %s5699_s3  ;;  %p48_p8 = scmp.ge.s32.totalorder %s5688_s30, 4  }
 0xec9   : > { %s6245_s29 = smov %s6243_s9 }
 0xeca   :  { %50 = sbr.rel (!%p48_p8) target bundleno = 38 (0x26), region = 246 }
 0xecd   : > { %s6244_s3 = smov %s6241_s1 }
 0xed1   :  { %3291 = vsyncpa [#allocation4], 1 }
 0xed2   :  { %3293 = vsyncpa [#allocation4 + $0x1], 1 }
 0xed3   :  { %3294 = vsyncpa [#allocation7], 1 }
 0xed4   :  { %3296 = vsyncpa [#allocation7 + $0x1], 1 }
 0xed5   :  { %3297 = vsyncpa [#allocation10], 1 }
 0xed6   :  { %3298 = vsyncpa [#allocation13], 1 }
 0xed7   :  { %3299 = vsyncpa [#allocation16], 1 }
 0xed8   :  { %3300 = vsyncpa [#allocation19], 1 }
 0xed9   :  { %3301 = vsyncpa [#allocation22], 1 }
 0xeda   :  { %3302 = vsyncpa [#allocation25], 1 }
 0xedb   :  { %3303 = vsyncpa [#allocation28], 1 }
 0xedc   :  { %3304 = vsyncpa [#allocation31], 1 }
 0xedd   :  { %3305 = vsyncpa [#allocation34], 1 }
 0xede   :  { %3306 = vsyncpa [#allocation37], 1 }
 0xedf   :  { %3307 = vsyncpa [#allocation5], 1 }
 0xee0   :  { %3309 = vsyncpa [#allocation5 + $0x1], 1 }

// kernel: tpu_custom_call.1
= control target key start
LH: loop header
LB: loop body
LE: loop exit
PB: predicated region body
PF: predicated region fallthrough
CT: control target
= control target key end

     0   :  { %s6097_s0 = inlined_call_operand.hbm [shape: f32[2,8,32], index: 0, kind: input, shape index: {}]   ;;  %s6098_s1 = inlined_call_operand.hbm [shape: f32[2,8,32], index: 1, kind: input, shape index: {}]   ;;  %s6099_s2 = inlined_call_operand.hbm [shape: f32[1,8,32], index: 2, kind: input, shape index: {}]   ;;  %s6100_s3 = inlined_call_operand.hbm [shape: f32[3,32], index: 3, kind: input, shape index: {}]   ;;  %s6101_s4 = inlined_call_operand.hbm [shape: f32[32,32], index: 4, kind: input, shape index: {}]   ;;  %s6102_s5 = inlined_call_operand.hbm [shape: f32[32,32], index: 5, kind: input, shape index: {}]   ;;  %s6103_s6 = inlined_call_operand.hbm [shape: f32[32,32], index: 6, kind: input, shape index: {}]   ;;  %s6104_s7 = inlined_call_operand.hbm [shape: f32[3,32], index: 7, kind: input, shape index: {}]   ;;  %s6105_s8 = inlined_call_operand.hbm [shape: f32[32,32], index: 8, kind: input, shape index: {}]   ;;  %s6106_s9 = inlined_call_operand.hbm [shape: f32[1,32], index: 9, kind: input, shape index: {}]   ;;  %s6107_s10 = inlined_call_operand.hbm [shape: f32[3,32], index: 10, kind: input, shape index: {}]   ;;  %s6108_s11 = inlined_call_operand.hbm [shape: f32[32,32], index: 11, kind: input, shape index: {}]   ;;  %s6109_s12 = inlined_call_operand.hbm [shape: f32[32,32], index: 12, kind: input, shape index: {}]   ;;  %s6110_s13 = inlined_call_operand.hbm [shape: f32[32,32], index: 13, kind: input, shape index: {}]   ;;  %s6111_s14 = inlined_call_operand.hbm [shape: f32[3,32], index: 14, kind: input, shape index: {}]   ;;  %s6112_s15 = inlined_call_operand.hbm [shape: f32[32,32], index: 15, kind: input, shape index: {}]   ;;  %s6113_s16 = inlined_call_operand.hbm [shape: f32[1,32], index: 16, kind: input, shape index: {}]   ;;  %s6114_s17 = inlined_call_operand.hbm [shape: f32[3,32], index: 17, kind: input, shape index: {}]   ;;  %s6115_s18 = inlined_call_operand.hbm [shape: f32[32,128], index: 18, kind: input, shape index: {}]   ;;  %s6116_s19 = inlined_call_operand.hbm [shape: f32[1,128], index: 19, kind: input, shape index: {}]   ;;  %s6117_s20 = inlined_call_operand.hbm [shape: f32[128,32], index: 20, kind: input, shape index: {}]   ;;  %s6118_s21 = inlined_call_operand.hbm [shape: f32[1,32], index: 21, kind: input, shape index: {}]   ;;  %s6119_s22 = inlined_call_operand.hbm [shape: f32[2,8,32], index: 22, kind: output, shape index: {}]  }
   0x1   :  { %6147 = sst [smem:[#allocation59_spill]] %s6097_s0 }
   0x2   :  { %6148 = sst [smem:[#allocation60_spill]] %s6098_s1 }
   0x3   :  { %6149 = sst [smem:[#allocation61_spill]] %s6099_s2 }
   0x4   :  { %6150 = sst [smem:[#allocation62_spill]] %s6100_s3 }
   0x5   :  { %6151 = sst [smem:[#allocation63_spill]] %s6101_s4 }
   0x6   :  { %6152 = sst [smem:[#allocation64_spill]] %s6102_s5 }
   0x7   :  { %6153 = sst [smem:[#allocation65_spill]] %s6103_s6 }
   0x8   :  { %6154 = sst [smem:[#allocation66_spill]] %s6104_s7 }
   0x9   :  { %6155 = sst [smem:[#allocation67_spill]] %s6105_s8 }
   0xa   :  { %6156 = sst [smem:[#allocation68_spill]] %s6106_s9 }
   0xb   :  { %6157 = sst [smem:[#allocation69_spill]] %s6107_s10 }
   0xc   :  { %6158 = sst [smem:[#allocation70_spill]] %s6108_s11 }
   0xd   :  { %6159 = sst [smem:[#allocation71_spill]] %s6109_s12 }
   0xe   :  { %6160 = sst [smem:[#allocation72_spill]] %s6110_s13 }
   0xf   :  { %6161 = sst [smem:[#allocation73_spill]] %s6111_s14 }
  0x10   :  { %6162 = sst [smem:[#allocation74_spill]] %s6112_s15 }
  0x11   :  { %6163 = sst [smem:[#allocation75_spill]] %s6115_s18 }
  0x12   :  { %6164 = sst [smem:[#allocation76_spill]] %s6117_s20 }
  0x13   :  { %6165 = sst [smem:[#allocation77_spill]] %s6118_s21 }
  0x14   :  { %6166 = sst [smem:[#allocation78_spill]] %s6119_s22 }
  0x15   :  { %27 = vsyncpa [#allocation4], 0 }
  0x16   :  { %29 = vsyncpa [#allocation4 + $0x1], 0 }
  0x17   :  { %30 = vsyncpa [#allocation7], 0 }
  0x18   :  { %32 = vsyncpa [#allocation7 + $0x1], 0 }
  0x19   :  { %33 = vsyncpa [#allocation10], 0 }
  0x1a   :  { %34 = vsyncpa [#allocation13], 0 }
  0x1b   :  { %35 = vsyncpa [#allocation16], 0 }
  0x1c   :  { %36 = vsyncpa [#allocation19], 0 }
  0x1d   :  { %37 = vsyncpa [#allocation22], 0 }
  0x1e   :  { %38 = vsyncpa [#allocation25], 0 }
  0x1f   :  { %39 = vsyncpa [#allocation28], 0 }
  0x20   :  { %40 = vsyncpa [#allocation31], 0 }
  0x21   :  { %41 = vsyncpa [#allocation34], 0 }
  0x22   :  { %42 = vsyncpa [#allocation37], 0 }
  0x23   :  { %43 = vsyncpa [#allocation5], 0 }
  0x24   :  { %45 = vsyncpa [#allocation5 + $0x1], 0  ;;  %s5237_s3 = smov 0   ;;  %s5239_s28 = smov 0  }
  0x25   :  { %s5241_s29 = smov 0   ;;  %s5243_s30 = smov 0  }
  0x26 LB: > { %6167 = sst [smem:[#allocation53_spill]] %s5074_s3  ;;  %s5088_s4 = smov [#allocation8]   ;;  %s5086_s30 = sphi %s5243_s30, %s5688_s30   ;;  %s5082_s29 = sphi %s5241_s29, %s6245_s29   ;;  %s5078_s28 = sphi %s5239_s28, %s6242_s28   ;;  %s5074_s3 = sphi %s5237_s3, %s6244_s3  }
  0x27   : > { %6168 = sst [smem:[#allocation54_spill]] %s5078_s28  ;;  %s567_s0 = sshll.u32 %s5088_s4, 4  ;;  %s568_s0 = int_to_ptr.vmem [resolvable:$true] %s567_s0 }
  0x28   : > { %6169 = sst [smem:[#allocation55_spill]] %s5082_s29  ;;  %s5258_s23 = sadd.s32 4294967295, %s5086_s30  }
  0x29   : > { %6170 = sst [smem:[#allocation56_spill]] %s5086_s30  ;;  %p3557_p0 = scmp.ge.s32.totalorder %s5086_s30, 1 }
  0x2a   : > { %6171 = sst [smem:[#allocation57_spill]] %s5258_s23  ;;  %p6132_p1 = scmp.eq.s32.totalorder %s5258_s23, 0 }
  0x2b   : > { %p554_p2 = scmp.lt.s32.totalorder %s5086_s30, 3  ;;  %s5089_s5 = smov [#allocation9]  }
  0x2c   : > { %s578_s24 = sshll.u32 %s5089_s5, 4  ;;  %s5090_s25 = smov [#allocation12]   ;;  %s5270_s24 = int_to_ptr.vmem [resolvable:$true] %s578_s24 }
  0x2d   : > { %p5263_p3 = pnand %p3557_p0, %p554_p2  ;;  %s601_s26 = sshll.u32 %s5090_s25, 4  ;;  %s5278_s26 = int_to_ptr.vmem [resolvable:$true] %s601_s26 }
  0x2e   : > { %s6175_s4 = sld [smem:[#allocation61_spill]] }
  0x2f   : > { %s6172_s1 = scalar_select %p5263_p3, 1, 0 }
  0x30   : > { %p4135_p5 = pneg %p5263_p3 }
  0x31   : > { %6173 = sst [smem:[#allocation58_spill]] %s6172_s1 }
  0x32   : > { %p5274_p6 = pnand %p4135_p5, %p6132_p1 }
  0x34   : > { %s4352_s22 = scalar_lea.hbm %s6175_s4, 128  ;;  %p5288_p8 = pneg %p5274_p6 }
  0x35   : > { %p4353_p7 = scmp.ne.s32.totalorder %s6175_s4, %s4352_s22  ;;  %p4359_p11 = scmp.lt.u32.totalorder %s4352_s22, %s6175_s4 }
  0x37   : > { %p4355_p9 = pnand %p5288_p8, %p4353_p7 }
  0x39   : > { %p4356_p10 = pneg %p4355_p9 }
  0x3b   : > { %p4361_p12 = pnand %p4359_p11, %p4356_p10 }
  0x3d   : > { %4364 = shalt.err (!%p4361_p12)
}
  0x3e   : > { %s4365_s2 = scalar_lea.vmem %s568_s0, 128  ;;  %p4373_p5 = scmp.lt.s32.totalorder %s568_s0, %s568_s0 }
  0x3f   : > { %p4366_p13 = scmp.ne.s32.totalorder %s568_s0, %s4365_s2  ;;  %p4374_p4 = scmp.lt.s32.totalorder %s4365_s2, %s4365_s2 }
  0x41   : > { %p4368_p0 = pnand %p4366_p13, %p5288_p8  ;;  %p4375_p1 = por %p4374_p4, %p4373_p5 }
  0x43   : > { %p4369_p2 = pneg %p4368_p0 }
  0x45   : > { %p4376_p3 = pnand %p4375_p1, %p4369_p2 }
  0x47   : > { %4379 = shalt.err (!%p4376_p3)
}
  0x48   : > { %4138 = dma.hbm_to_vmem [thread:$0]  (!%p5274_p6), %s6175_s4, 128, %s568_s0, [#allocation7]  }
  0x49   : > { %s6177_s27 = sld [smem:[#allocation62_spill]] }
  0x4f   : > { %s4380_s25 = scalar_lea.hbm %s6177_s27, 64 }
  0x50   : > { %p4381_p7 = scmp.ne.s32.totalorder %s6177_s27, %s4380_s25  ;;  %p4387_p1 = scmp.lt.u32.totalorder %s4380_s25, %s6177_s27 }
  0x52   : > { %p4383_p9 = pnand %p4381_p7, %p5288_p8 }
  0x54   : > { %p4384_p4 = pneg %p4383_p9 }
  0x56   : > { %p4389_p3 = pnand %p4387_p1, %p4384_p4 }
  0x58   : > { %4392 = shalt.err (!%p4389_p3)
}
  0x59   : > { %s4393_s0 = scalar_lea.vmem %s5270_s24, 64  ;;  %p4401_p13 = scmp.lt.s32.totalorder %s5270_s24, %s5270_s24 }
  0x5a   : > { %p4394_p10 = scmp.ne.s32.totalorder %s5270_s24, %s4393_s0  ;;  %p4402_p0 = scmp.lt.s32.totalorder %s4393_s0, %s4393_s0 }
  0x5c   : > { %p4396_p11 = pnand %p4394_p10, %p5288_p8  ;;  %p4403_p2 = por %p4402_p0, %p4401_p13 }
  0x5e   : > { %p4397_p12 = pneg %p4396_p11 }
  0x60   : > { %p4404_p5 = pnand %p4403_p2, %p4397_p12 }
  0x62   : > { %4407 = shalt.err (!%p4404_p5)
}
  0x63   : > { %4141 = dma.hbm_to_vmem [thread:$0]  (!%p5274_p6), %s6177_s27, 64, %s5270_s24, [#allocation10]  }
  0x64   : > { %s6178_s1 = sld [smem:[#allocation64_spill]] }
  0x6a   : > { %s4408_s22 = scalar_lea.hbm %s6178_s1, 512 }
  0x6b   : > { %p4409_p7 = scmp.ne.s32.totalorder %s6178_s1, %s4408_s22  ;;  %p4415_p1 = scmp.lt.u32.totalorder %s4408_s22, %s6178_s1 }
  0x6d   : > { %p4411_p9 = pnand %p4409_p7, %p5288_p8 }
  0x6f   : > { %p4412_p4 = pneg %p4411_p9 }
  0x71   : > { %p4417_p3 = pnand %p4415_p1, %p4412_p4 }
  0x73   : > { %4420 = shalt.err (!%p4417_p3)
}
  0x74   : > { %s4421_s24 = scalar_lea.vmem %s5278_s26, 512  ;;  %p4429_p13 = scmp.lt.s32.totalorder %s5278_s26, %s5278_s26 }
  0x75   : > { %p4422_p10 = scmp.ne.s32.totalorder %s5278_s26, %s4421_s24  ;;  %p4430_p0 = scmp.lt.s32.totalorder %s4421_s24, %s4421_s24 }
  0x77   : > { %p4424_p11 = pnand %p4422_p10, %p5288_p8  ;;  %p4431_p2 = por %p4430_p0, %p4429_p13 }
  0x79   : > { %p4425_p12 = pneg %p4424_p11 }
  0x7b   : > { %p4432_p5 = pnand %p4431_p2, %p4425_p12 }
  0x7d   : > { %4435 = shalt.err (!%p4432_p5)
}
  0x7e   : > { %s5091_s28 = smov 128   ;;  %s5092_s29 = smov 8  }
  0x7f   : > { %4147 = dma.hbm_to_vmem [thread:$0]  (!%p5274_p6), %s6178_s1, 512, %s5278_s26, [#allocation13], %s5091_s28, %s5091_s28, %s5092_s29  }
  0x80   : > { %s5093_s22 = smov [#allocation15]   ;;  %s5094_s25 = smov [#allocation18]  }
  0x81   : > { %s628_s23 = sshll.u32 %s5093_s22, 4  ;;  %s652_s2 = sshll.u32 %s5094_s25, 4  ;;  %s629_s23 = int_to_ptr.vmem [resolvable:$true] %s628_s23  ;;  %s653_s2 = int_to_ptr.vmem [resolvable:$true] %s652_s2 }
  0x82   : > { %s6179_s7 = sld [smem:[#allocation66_spill]] }
  0x88   : > { %s4436_s4 = scalar_lea.hbm %s6179_s7, 64 }
  0x89   : > { %p4437_p7 = scmp.ne.s32.totalorder %s6179_s7, %s4436_s4  ;;  %p4443_p1 = scmp.lt.u32.totalorder %s4436_s4, %s6179_s7 }
  0x8b   : > { %p4439_p9 = pnand %p4437_p7, %p5288_p8 }
  0x8d   : > { %p4440_p4 = pneg %p4439_p9 }
  0x8f   : > { %p4445_p3 = pnand %p4443_p1, %p4440_p4 }
  0x91   : > { %4448 = shalt.err (!%p4445_p3)
}
  0x92   : > { %s4449_s26 = scalar_lea.vmem %s629_s23, 64  ;;  %p4457_p13 = scmp.lt.s32.totalorder %s629_s23, %s629_s23 }
  0x93   : > { %p4450_p10 = scmp.ne.s32.totalorder %s629_s23, %s4449_s26  ;;  %p4458_p0 = scmp.lt.s32.totalorder %s4449_s26, %s4449_s26 }
  0x95   : > { %p4452_p11 = pnand %p4450_p10, %p5288_p8  ;;  %p4459_p2 = por %p4458_p0, %p4457_p13 }
  0x97   : > { %p4453_p12 = pneg %p4452_p11 }
  0x99   : > { %p4460_p5 = pnand %p4459_p2, %p4453_p12 }
  0x9b   : > { %4463 = shalt.err (!%p4460_p5)
}
  0x9c   : > { %4153 = dma.hbm_to_vmem [thread:$0]  (!%p5274_p6), %s6179_s7, 64, %s629_s23, [#allocation16]  }
  0x9d   : > { %s6180_s9 = sld [smem:[#allocation68_spill]] }
  0xa3   : > { %s4464_s4 = scalar_lea.hbm %s6180_s9, 16 }
  0xa4   : > { %p4465_p7 = scmp.ne.s32.totalorder %s6180_s9, %s4464_s4  ;;  %p4471_p1 = scmp.lt.u32.totalorder %s4464_s4, %s6180_s9 }
  0xa6   : > { %p4467_p9 = pnand %p4465_p7, %p5288_p8 }
  0xa8   : > { %p4468_p4 = pneg %p4467_p9 }
  0xaa   : > { %p4473_p3 = pnand %p4471_p1, %p4468_p4 }
  0xac   : > { %4476 = shalt.err (!%p4473_p3)
}
  0xad   : > { %s4477_s0 = scalar_lea.vmem %s653_s2, 16  ;;  %s4484_s23 = scalar_lea.vmem %s653_s2, 32 }
  0xae   : > { %p4478_p10 = scmp.ne.s32.totalorder %s653_s2, %s4477_s0  ;;  %p4485_p13 = scmp.lt.s32.totalorder %s653_s2, %s653_s2 }
  0xaf   : > { %p4486_p0 = scmp.lt.s32.totalorder %s4484_s23, %s4477_s0 }
  0xb0   : > { %p4480_p11 = pnand %p4478_p10, %p5288_p8 }
  0xb1   : > { %p4487_p2 = por %p4486_p0, %p4485_p13 }
  0xb2   : > { %p4481_p12 = pneg %p4480_p11 }
  0xb4   : > { %p4488_p5 = pnand %p4487_p2, %p4481_p12 }
  0xb6   : > { %4491 = shalt.err (!%p4488_p5)
}
  0xb7   : > { %4159 = dma.hbm_to_vmem [thread:$0]  (!%p5274_p6), %s6180_s9, 16, %s653_s2, [#allocation19]  }
  0xb8   : > { %s5095_s21 = smov [#allocation21]   ;;  %s5096_s18 = smov [#allocation24]  }
  0xb9   : > { %s673_s27 = sshll.u32 %s5095_s21, 4  ;;  %s699_s20 = sshll.u32 %s5096_s18, 4  ;;  %s674_s27 = int_to_ptr.vmem [resolvable:$true] %s673_s27  ;;  %s700_s20 = int_to_ptr.vmem [resolvable:$true] %s699_s20 }
  0xba   : > { %s6181_s11 = sld [smem:[#allocation70_spill]] }
  0xc0   : > { %s4492_s3 = scalar_lea.hbm %s6181_s11, 512 }
  0xc1   : > { %p4493_p7 = scmp.ne.s32.totalorder %s6181_s11, %s4492_s3  ;;  %p4499_p1 = scmp.lt.u32.totalorder %s4492_s3, %s6181_s11 }
  0xc3   : > { %p4495_p9 = pnand %p4493_p7, %p5288_p8 }
  0xc5   : > { %p4496_p4 = pneg %p4495_p9 }
  0xc7   : > { %p4501_p3 = pnand %p4499_p1, %p4496_p4 }
  0xc9   : > { %4504 = shalt.err (!%p4501_p3)
}
  0xca   : > { %s4505_s2 = scalar_lea.vmem %s674_s27, 512  ;;  %p4513_p13 = scmp.lt.s32.totalorder %s674_s27, %s674_s27 }
  0xcb   : > { %p4506_p10 = scmp.ne.s32.totalorder %s674_s27, %s4505_s2  ;;  %p4514_p0 = scmp.lt.s32.totalorder %s4505_s2, %s4505_s2 }
  0xcd   : > { %p4508_p11 = pnand %p4506_p10, %p5288_p8  ;;  %p4515_p2 = por %p4514_p0, %p4513_p13 }
  0xcf   : > { %p4509_p12 = pneg %p4508_p11 }
  0xd1   : > { %p4516_p5 = pnand %p4515_p2, %p4509_p12 }
  0xd3   : > { %4519 = shalt.err (!%p4516_p5)
}
  0xd4   : > { %4165 = dma.hbm_to_vmem [thread:$0]  (!%p5274_p6), %s6181_s11, 512, %s674_s27, [#allocation22], %s5091_s28, %s5091_s28, %s5092_s29  }
  0xd5   : > { %s6182_s13 = sld [smem:[#allocation72_spill]] }
  0xdb   : > { %s4520_s4 = scalar_lea.hbm %s6182_s13, 512 }
  0xdc   : > { %p4521_p7 = scmp.ne.s32.totalorder %s6182_s13, %s4520_s4  ;;  %p4527_p1 = scmp.lt.u32.totalorder %s4520_s4, %s6182_s13 }
  0xde   : > { %p4523_p9 = pnand %p4521_p7, %p5288_p8 }
  0xe0   : > { %p4524_p4 = pneg %p4523_p9 }
  0xe2   : > { %p4529_p3 = pnand %p4527_p1, %p4524_p4 }
  0xe4   : > { %4532 = shalt.err (!%p4529_p3)
}
  0xe5   : > { %s4533_s0 = scalar_lea.vmem %s700_s20, 512  ;;  %p4541_p13 = scmp.lt.s32.totalorder %s700_s20, %s700_s20 }
  0xe6   : > { %p4534_p10 = scmp.ne.s32.totalorder %s700_s20, %s4533_s0  ;;  %p4542_p0 = scmp.lt.s32.totalorder %s4533_s0, %s4533_s0 }
  0xe8   : > { %p4536_p11 = pnand %p4534_p10, %p5288_p8  ;;  %p4543_p2 = por %p4542_p0, %p4541_p13 }
  0xea   : > { %p4537_p12 = pneg %p4536_p11 }
  0xec   : > { %p4544_p5 = pnand %p4543_p2, %p4537_p12 }
  0xee   : > { %4547 = shalt.err (!%p4544_p5)
}
  0xef   : > { %4171 = dma.hbm_to_vmem [thread:$0]  (!%p5274_p6), %s6182_s13, 512, %s700_s20, [#allocation25], %s5091_s28, %s5091_s28, %s5092_s29  }
  0xf0   : > { %s5097_s2 = smov [#allocation27]   ;;  %s5098_s26 = smov [#allocation30]  }
  0xf1   : > { %s723_s24 = sshll.u32 %s5097_s2, 4  ;;  %s748_s21 = sshll.u32 %s5098_s26, 4  ;;  %s724_s24 = int_to_ptr.vmem [resolvable:$true] %s723_s24  ;;  %s749_s21 = int_to_ptr.vmem [resolvable:$true] %s748_s21 }
  0xf2   : > { %s6183_s15 = sld [smem:[#allocation74_spill]] }
  0xf8   : > { %s4548_s30 = scalar_lea.hbm %s6183_s15, 512 }
  0xf9   : > { %p4549_p7 = scmp.ne.s32.totalorder %s6183_s15, %s4548_s30  ;;  %p4555_p1 = scmp.lt.u32.totalorder %s4548_s30, %s6183_s15 }
  0xfb   : > { %p4551_p9 = pnand %p4549_p7, %p5288_p8 }
  0xfd   : > { %p4552_p4 = pneg %p4551_p9 }
  0xff   : > { %p4557_p3 = pnand %p4555_p1, %p4552_p4 }
 0x101   : > { %4560 = shalt.err (!%p4557_p3)
}
 0x102   : > { %s4561_s20 = scalar_lea.vmem %s724_s24, 512  ;;  %p4569_p13 = scmp.lt.s32.totalorder %s724_s24, %s724_s24 }
 0x103   : > { %p4562_p10 = scmp.ne.s32.totalorder %s724_s24, %s4561_s20  ;;  %p4570_p0 = scmp.lt.s32.totalorder %s4561_s20, %s4561_s20 }
 0x105   : > { %p4564_p11 = pnand %p4562_p10, %p5288_p8  ;;  %p4571_p2 = por %p4570_p0, %p4569_p13 }
 0x107   : > { %p4565_p12 = pneg %p4564_p11 }
 0x109   : > { %p4572_p5 = pnand %p4571_p2, %p4565_p12 }
 0x10b   : > { %4575 = shalt.err (!%p4572_p5)
}
 0x10c   : > { %4177 = dma.hbm_to_vmem [thread:$0]  (!%p5274_p6), %s6183_s15, 512, %s724_s24, [#allocation28], %s5091_s28, %s5091_s28, %s5092_s29  }
 0x10d   : > { %s4576_s18 = scalar_lea.hbm %s6114_s17, 64 }
 0x10e   : > { %p4577_p7 = scmp.ne.s32.totalorder %s6114_s17, %s4576_s18  ;;  %p4583_p1 = scmp.lt.u32.totalorder %s4576_s18, %s6114_s17 }
 0x110   : > { %p4579_p9 = pnand %p4577_p7, %p5288_p8 }
 0x112   : > { %p4580_p4 = pneg %p4579_p9 }
 0x114   : > { %p4585_p3 = pnand %p4583_p1, %p4580_p4 }
 0x116   : > { %4588 = shalt.err (!%p4585_p3)
}
 0x117   : > { %s4589_s25 = scalar_lea.vmem %s749_s21, 64  ;;  %p4597_p13 = scmp.lt.s32.totalorder %s749_s21, %s749_s21 }
 0x118   : > { %p4590_p10 = scmp.ne.s32.totalorder %s749_s21, %s4589_s25  ;;  %p4598_p0 = scmp.lt.s32.totalorder %s4589_s25, %s4589_s25 }
 0x11a   : > { %p4592_p11 = pnand %p4590_p10, %p5288_p8  ;;  %p4599_p2 = por %p4598_p0, %p4597_p13 }
 0x11c   : > { %p4593_p12 = pneg %p4592_p11 }
 0x11e   : > { %p4600_p5 = pnand %p4599_p2, %p4593_p12 }
 0x120   : > { %4603 = shalt.err (!%p4600_p5)
}
 0x121   : > { %4183 = dma.hbm_to_vmem [thread:$0]  (!%p5274_p6), %s6114_s17, 64, %s749_s21, [#allocation31]  }
 0x122   : > { %s5099_s20 = smov [#allocation33]   ;;  %s5100_s23 = smov [#allocation11]  }
 0x123   : > { %s772_s27 = sshll.u32 %s5099_s20, 4  ;;  %s588_s2 = sshll.u32 %s5100_s23, 4  ;;  %s773_s27 = int_to_ptr.vmem [resolvable:$true] %s772_s27  ;;  %s589_s2 = int_to_ptr.vmem [resolvable:$true] %s588_s2 }
 0x124   : > { %s4604_s4 = scalar_lea.hbm %s6116_s19, 16 }
 0x125   : > { %p4605_p7 = scmp.ne.s32.totalorder %s6116_s19, %s4604_s4  ;;  %p4611_p1 = scmp.lt.u32.totalorder %s4604_s4, %s6116_s19 }
 0x127   : > { %p4607_p9 = pnand %p4605_p7, %p5288_p8 }
 0x129   : > { %p4608_p4 = pneg %p4607_p9 }
 0x12b   : > { %p4613_p3 = pnand %p4611_p1, %p4608_p4 }
 0x12d   : > { %4616 = shalt.err (!%p4613_p3)
}
 0x12e   : > { %s4617_s21 = scalar_lea.vmem %s773_s27, 16  ;;  %s4624_s24 = scalar_lea.vmem %s773_s27, 32 }
 0x12f   : > { %p4618_p10 = scmp.ne.s32.totalorder %s773_s27, %s4617_s21  ;;  %p4625_p13 = scmp.lt.s32.totalorder %s773_s27, %s773_s27 }
 0x130   : > { %p4626_p0 = scmp.lt.s32.totalorder %s4624_s24, %s4617_s21 }
 0x131   : > { %p4620_p11 = pnand %p4618_p10, %p5288_p8 }
 0x132   : > { %p4627_p2 = por %p4626_p0, %p4625_p13 }
 0x133   : > { %p4621_p12 = pneg %p4620_p11 }
 0x135   : > { %p4628_p5 = pnand %p4627_p2, %p4621_p12 }
 0x137   : > { %4631 = shalt.err (!%p4628_p5)
}
 0x138   : > { %4189 = dma.hbm_to_vmem [thread:$0]  (!%p5274_p6), %s6116_s19, 16, %s773_s27, [#allocation34]  }
 0x139   : > { %s6184_s18 = sld [smem:[#allocation63_spill]] }
 0x13f   : > { %s4632_s4 = scalar_lea.hbm %s6184_s18, 512 }
 0x140   : > { %p4633_p7 = scmp.ne.s32.totalorder %s6184_s18, %s4632_s4  ;;  %p4639_p1 = scmp.lt.u32.totalorder %s4632_s4, %s6184_s18 }
 0x142   : > { %p4635_p9 = pnand %p4633_p7, %p5288_p8 }
 0x144   : > { %p4636_p4 = pneg %p4635_p9 }
 0x146   : > { %p4641_p3 = pnand %p4639_p1, %p4636_p4 }
 0x148   : > { %4644 = shalt.err (!%p4641_p3)
}
 0x149   : > { %s4645_s21 = scalar_lea.vmem %s589_s2, 512  ;;  %p4653_p13 = scmp.lt.s32.totalorder %s589_s2, %s589_s2 }
 0x14a   : > { %p4646_p10 = scmp.ne.s32.totalorder %s589_s2, %s4645_s21  ;;  %p4654_p0 = scmp.lt.s32.totalorder %s4645_s21, %s4645_s21 }
 0x14c   : > { %p4648_p11 = pnand %p4646_p10, %p5288_p8  ;;  %p4655_p2 = por %p4654_p0, %p4653_p13 }
 0x14e   : > { %p4649_p12 = pneg %p4648_p11 }
 0x150   : > { %p4656_p5 = pnand %p4655_p2, %p4649_p12 }
 0x152   : > { %4659 = shalt.err (!%p4656_p5)
}
 0x153   : > { %4144 = dma.hbm_to_vmem [thread:$0]  (!%p5274_p6), %s6184_s18, 512, %s589_s2, [#allocation10], %s5091_s28, %s5091_s28, %s5092_s29  }
 0x154   : > { %s5101_s0 = smov [#allocation14]   ;;  %s5102_s23 = smov [#allocation17]  }
 0x155   : > { %s614_s20 = sshll.u32 %s5101_s0, 4  ;;  %s638_s26 = sshll.u32 %s5102_s23, 4  ;;  %s615_s20 = int_to_ptr.vmem [resolvable:$true] %s614_s20  ;;  %s639_s26 = int_to_ptr.vmem [resolvable:$true] %s638_s26 }
 0x156   : > { %s6185_s3 = sld [smem:[#allocation65_spill]] }
 0x15c   : > { %s6186_s22 = smov %s6185_s3  ;;  %s4660_s25 = scalar_lea.hbm %s6185_s3, 512 }
 0x15d   : > { %p4661_p7 = scmp.ne.s32.totalorder %s6186_s22, %s4660_s25  ;;  %p4667_p1 = scmp.lt.u32.totalorder %s4660_s25, %s6186_s22 }
 0x15f   : > { %p4663_p9 = pnand %p4661_p7, %p5288_p8 }
 0x161   : > { %p4664_p4 = pneg %p4663_p9 }
 0x163   : > { %p4669_p3 = pnand %p4667_p1, %p4664_p4 }
 0x165   : > { %4672 = shalt.err (!%p4669_p3)
}
 0x166   : > { %s4673_s2 = scalar_lea.vmem %s615_s20, 512  ;;  %p4681_p13 = scmp.lt.s32.totalorder %s615_s20, %s615_s20 }
 0x167   : > { %p4674_p10 = scmp.ne.s32.totalorder %s615_s20, %s4673_s2  ;;  %p4682_p0 = scmp.lt.s32.totalorder %s4673_s2, %s4673_s2 }
 0x169   : > { %p4676_p11 = pnand %p4674_p10, %p5288_p8  ;;  %p4683_p2 = por %p4682_p0, %p4681_p13 }
 0x16b   : > { %p4677_p12 = pneg %p4676_p11 }
 0x16d   : > { %p4684_p5 = pnand %p4683_p2, %p4677_p12 }
 0x16f   : > { %4687 = shalt.err (!%p4684_p5)
}
 0x170   : > { %4150 = dma.hbm_to_vmem [thread:$0]  (!%p5274_p6), %s6186_s22, 512, %s615_s20, [#allocation13], %s5091_s28, %s5091_s28, %s5092_s29  }
 0x171   : > { %s6187_s8 = sld [smem:[#allocation67_spill]] }
 0x177   : > { %s4688_s23 = scalar_lea.hbm %s6187_s8, 512 }
 0x178   : > { %p4689_p7 = scmp.ne.s32.totalorder %s6187_s8, %s4688_s23  ;;  %p4695_p1 = scmp.lt.u32.totalorder %s4688_s23, %s6187_s8 }
 0x17a   : > { %p4691_p9 = pnand %p4689_p7, %p5288_p8 }
 0x17c   : > { %p4692_p4 = pneg %p4691_p9 }
 0x17e   : > { %p4697_p3 = pnand %p4695_p1, %p4692_p4 }
 0x180   : > { %4700 = shalt.err (!%p4697_p3)
}
 0x181   : > { %s4701_s21 = scalar_lea.vmem %s639_s26, 512  ;;  %p4709_p13 = scmp.lt.s32.totalorder %s639_s26, %s639_s26 }
 0x182   : > { %p4702_p10 = scmp.ne.s32.totalorder %s639_s26, %s4701_s21  ;;  %p4710_p0 = scmp.lt.s32.totalorder %s4701_s21, %s4701_s21 }
 0x184   : > { %p4704_p11 = pnand %p4702_p10, %p5288_p8  ;;  %p4711_p2 = por %p4710_p0, %p4709_p13 }
 0x186   : > { %p4705_p12 = pneg %p4704_p11 }
 0x188   : > { %p4712_p5 = pnand %p4711_p2, %p4705_p12 }
 0x18a   : > { %4715 = shalt.err (!%p4712_p5)
}
 0x18b   : > { %4156 = dma.hbm_to_vmem [thread:$0]  (!%p5274_p6), %s6187_s8, 512, %s639_s26, [#allocation16], %s5091_s28, %s5091_s28, %s5092_s29  }
 0x18c   : > { %s5103_s2 = smov [#allocation20]   ;;  %s5104_s1 = smov [#allocation23]  }
 0x18d   : > { %s663_s7 = sshll.u32 %s5103_s2, 4  ;;  %s686_s24 = sshll.u32 %s5104_s1, 4  ;;  %s664_s7 = int_to_ptr.vmem [resolvable:$true] %s663_s7  ;;  %s687_s24 = int_to_ptr.vmem [resolvable:$true] %s686_s24 }
 0x18e   : > { %s6188_s10 = sld [smem:[#allocation69_spill]] }
 0x194   : > { %s4716_s4 = scalar_lea.hbm %s6188_s10, 64 }
 0x195   : > { %p4717_p7 = scmp.ne.s32.totalorder %s6188_s10, %s4716_s4  ;;  %p4723_p1 = scmp.lt.u32.totalorder %s4716_s4, %s6188_s10 }
 0x197   : > { %p4719_p9 = pnand %p4717_p7, %p5288_p8 }
 0x199   : > { %p4720_p4 = pneg %p4719_p9 }
 0x19b   : > { %p4725_p3 = pnand %p4723_p1, %p4720_p4 }
 0x19d   : > { %4728 = shalt.err (!%p4725_p3)
}
 0x19e   : > { %s4729_s26 = scalar_lea.vmem %s664_s7, 64  ;;  %p4737_p13 = scmp.lt.s32.totalorder %s664_s7, %s664_s7 }
 0x19f   : > { %p4730_p10 = scmp.ne.s32.totalorder %s664_s7, %s4729_s26  ;;  %p4738_p0 = scmp.lt.s32.totalorder %s4729_s26, %s4729_s26 }
 0x1a1   : > { %p4732_p11 = pnand %p4730_p10, %p5288_p8  ;;  %p4739_p2 = por %p4738_p0, %p4737_p13 }
 0x1a3   : > { %p4733_p12 = pneg %p4732_p11 }
 0x1a5   : > { %p4740_p5 = pnand %p4739_p2, %p4733_p12 }
 0x1a7   : > { %4743 = shalt.err (!%p4740_p5)
}
 0x1a8   : > { %4162 = dma.hbm_to_vmem [thread:$0]  (!%p5274_p6), %s6188_s10, 64, %s664_s7, [#allocation19]  }
 0x1a9   : > { %s6189_s12 = sld [smem:[#allocation71_spill]] }
 0x1af   : > { %s4744_s0 = scalar_lea.hbm %s6189_s12, 512 }
 0x1b0   : > { %p4745_p7 = scmp.ne.s32.totalorder %s6189_s12, %s4744_s0  ;;  %p4751_p1 = scmp.lt.u32.totalorder %s4744_s0, %s6189_s12 }
 0x1b2   : > { %p4747_p9 = pnand %p4745_p7, %p5288_p8 }
 0x1b4   : > { %p4748_p4 = pneg %p4747_p9 }
 0x1b6   : > { %p4753_p3 = pnand %p4751_p1, %p4748_p4 }
 0x1b8   : > { %4756 = shalt.err (!%p4753_p3)
}
 0x1b9   : > { %s4757_s25 = scalar_lea.vmem %s687_s24, 512  ;;  %p4765_p13 = scmp.lt.s32.totalorder %s687_s24, %s687_s24 }
 0x1ba   : > { %p4758_p10 = scmp.ne.s32.totalorder %s687_s24, %s4757_s25  ;;  %p4766_p0 = scmp.lt.s32.totalorder %s4757_s25, %s4757_s25 }
 0x1bc   : > { %p4760_p11 = pnand %p4758_p10, %p5288_p8  ;;  %p4767_p2 = por %p4766_p0, %p4765_p13 }
 0x1be   : > { %p4761_p12 = pneg %p4760_p11 }
 0x1c0   : > { %p4768_p5 = pnand %p4767_p2, %p4761_p12 }
 0x1c2   : > { %4771 = shalt.err (!%p4768_p5)
}
 0x1c3   : > { %4168 = dma.hbm_to_vmem [thread:$0]  (!%p5274_p6), %s6189_s12, 512, %s687_s24, [#allocation22], %s5091_s28, %s5091_s28, %s5092_s29  }
 0x1c4   : > { %s5105_s26 = smov [#allocation26]   ;;  %s5106_s27 = smov [#allocation29]  }
 0x1c5   : > { %s713_s20 = sshll.u32 %s5105_s26, 4  ;;  %s737_s2 = sshll.u32 %s5106_s27, 4  ;;  %s714_s20 = int_to_ptr.vmem [resolvable:$true] %s713_s20  ;;  %s738_s2 = int_to_ptr.vmem [resolvable:$true] %s737_s2 }
 0x1c6   : > { %s6190_s14 = sld [smem:[#allocation73_spill]] }
 0x1cc   : > { %s4772_s23 = scalar_lea.hbm %s6190_s14, 64 }
 0x1cd   : > { %p4773_p7 = scmp.ne.s32.totalorder %s6190_s14, %s4772_s23  ;;  %p4779_p1 = scmp.lt.u32.totalorder %s4772_s23, %s6190_s14 }
 0x1cf   : > { %p4775_p9 = pnand %p4773_p7, %p5288_p8 }
 0x1d1   : > { %p4776_p4 = pneg %p4775_p9 }
 0x1d3   : > { %p4781_p3 = pnand %p4779_p1, %p4776_p4 }
 0x1d5   : > { %4784 = shalt.err (!%p4781_p3)
}
 0x1d6   : > { %s4785_s24 = scalar_lea.vmem %s714_s20, 64  ;;  %p4793_p13 = scmp.lt.s32.totalorder %s714_s20, %s714_s20 }
 0x1d7   : > { %p4786_p10 = scmp.ne.s32.totalorder %s714_s20, %s4785_s24  ;;  %p4794_p0 = scmp.lt.s32.totalorder %s4785_s24, %s4785_s24 }
 0x1d9   : > { %p4788_p11 = pnand %p4786_p10, %p5288_p8  ;;  %p4795_p2 = por %p4794_p0, %p4793_p13 }
 0x1db   : > { %p4789_p12 = pneg %p4788_p11 }
 0x1dd   : > { %p4796_p5 = pnand %p4795_p2, %p4789_p12 }
 0x1df   : > { %4799 = shalt.err (!%p4796_p5)
}
 0x1e0   : > { %4174 = dma.hbm_to_vmem [thread:$0]  (!%p5274_p6), %s6190_s14, 64, %s714_s20, [#allocation25]  }
 0x1e1   : > { %s4800_s1 = scalar_lea.hbm %s6113_s16, 16 }
 0x1e2   : > { %p4801_p7 = scmp.ne.s32.totalorder %s6113_s16, %s4800_s1  ;;  %p4807_p1 = scmp.lt.u32.totalorder %s4800_s1, %s6113_s16 }
 0x1e4   : > { %p4803_p9 = pnand %p4801_p7, %p5288_p8 }
 0x1e6   : > { %p4804_p4 = pneg %p4803_p9 }
 0x1e8   : > { %p4809_p3 = pnand %p4807_p1, %p4804_p4 }
 0x1ea   : > { %4812 = shalt.err (!%p4809_p3)
}
 0x1eb   : > { %s4813_s3 = scalar_lea.vmem %s738_s2, 16  ;;  %s4820_s20 = scalar_lea.vmem %s738_s2, 32 }
 0x1ec   : > { %p4814_p10 = scmp.ne.s32.totalorder %s738_s2, %s4813_s3  ;;  %p4821_p13 = scmp.lt.s32.totalorder %s738_s2, %s738_s2 }
 0x1ed   : > { %p4822_p0 = scmp.lt.s32.totalorder %s4820_s20, %s4813_s3 }
 0x1ee   : > { %p4816_p11 = pnand %p4814_p10, %p5288_p8 }
 0x1ef   : > { %p4823_p2 = por %p4822_p0, %p4821_p13 }
 0x1f0   : > { %p4817_p12 = pneg %p4816_p11 }
 0x1f2   : > { %p4824_p5 = pnand %p4823_p2, %p4817_p12 }
 0x1f4   : > { %4827 = shalt.err (!%p4824_p5)
}
 0x1f5   : > { %4180 = dma.hbm_to_vmem [thread:$0]  (!%p5274_p6), %s6113_s16, 16, %s738_s2, [#allocation28]  }
 0x1f6   : > { %s5107_s7 = smov [#allocation32]   ;;  %s5108_s26 = smov [#allocation35]  }
 0x1f7   : > { %s758_s21 = sshll.u32 %s5107_s7, 4  ;;  %s782_s27 = sshll.u32 %s5108_s26, 4  ;;  %s759_s21 = int_to_ptr.vmem [resolvable:$true] %s758_s21  ;;  %s783_s27 = int_to_ptr.vmem [resolvable:$true] %s782_s27 }
 0x1f8   : > { %s6191_s23 = sld [smem:[#allocation75_spill]] }
 0x1fe   : > { %s4828_s4 = scalar_lea.hbm %s6191_s23, 512 }
 0x1ff   : > { %p4829_p7 = scmp.ne.s32.totalorder %s6191_s23, %s4828_s4  ;;  %p4835_p1 = scmp.lt.u32.totalorder %s4828_s4, %s6191_s23 }
 0x201   : > { %p4831_p9 = pnand %p4829_p7, %p5288_p8 }
 0x203   : > { %p4832_p4 = pneg %p4831_p9 }
 0x205   : > { %p4837_p3 = pnand %p4835_p1, %p4832_p4 }
 0x207   : > { %4840 = shalt.err (!%p4837_p3)
}
 0x208   : > { %s4841_s2 = scalar_lea.vmem %s759_s21, 512  ;;  %p4849_p13 = scmp.lt.s32.totalorder %s759_s21, %s759_s21 }
 0x209   : > { %p4842_p10 = scmp.ne.s32.totalorder %s759_s21, %s4841_s2  ;;  %p4850_p0 = scmp.lt.s32.totalorder %s4841_s2, %s4841_s2 }
 0x20b   : > { %p4844_p11 = pnand %p4842_p10, %p5288_p8  ;;  %p4851_p2 = por %p4850_p0, %p4849_p13 }
 0x20d   : > { %p4845_p12 = pneg %p4844_p11 }
 0x20f   : > { %p4852_p5 = pnand %p4851_p2, %p4845_p12 }
 0x211   : > { %4855 = shalt.err (!%p4852_p5)
}
 0x212   : > { %4186 = dma.hbm_to_vmem [thread:$0]  (!%p5274_p6), %s6191_s23, 512, %s759_s21, [#allocation31], %s5091_s28, %s5091_s28, %s5092_s29  }
 0x213   : > { %s6192_s0 = sld [smem:[#allocation76_spill]] }
 0x219   : > { %s4856_s4 = scalar_lea.hbm %s6192_s0, 2048 }
 0x21a   : > { %p4857_p7 = scmp.ne.s32.totalorder %s6192_s0, %s4856_s4  ;;  %p4863_p1 = scmp.lt.u32.totalorder %s4856_s4, %s6192_s0 }
 0x21c   : > { %p4859_p9 = pnand %p4857_p7, %p5288_p8 }
 0x21e   : > { %p4860_p4 = pneg %p4859_p9 }
 0x220   : > { %p4865_p3 = pnand %p4863_p1, %p4860_p4 }
 0x222   : > { %4868 = shalt.err (!%p4865_p3)
}
 0x223   : > { %s4869_s2 = scalar_lea.vmem %s783_s27, 2048  ;;  %p4877_p13 = scmp.lt.s32.totalorder %s783_s27, %s783_s27 }
 0x224   : > { %p4870_p10 = scmp.ne.s32.totalorder %s783_s27, %s4869_s2  ;;  %p4878_p0 = scmp.lt.s32.totalorder %s4869_s2, %s4869_s2 }
 0x226   : > { %p4872_p11 = pnand %p4870_p10, %p5288_p8  ;;  %p4879_p2 = por %p4878_p0, %p4877_p13 }
 0x228   : > { %p4873_p12 = pneg %p4872_p11 }
 0x22a   : > { %p4880_p5 = pnand %p4879_p2, %p4873_p12 }
 0x22c   : > { %4883 = shalt.err (!%p4880_p5)
}
 0x22d   : > { %4192 = dma.hbm_to_vmem [thread:$0]  (!%p5274_p6), %s6192_s0, 2048, %s783_s27, [#allocation34], %s5091_s28, %s5091_s28, %s5092_s29  }
 0x22e   : > { %s5109_s7 = smov [#allocation36]   ;;  %s6193_s30 = sld [smem:[#allocation77_spill]] }
 0x22f   : > { %s796_s26 = sshll.u32 %s5109_s7, 4  ;;  %s797_s26 = int_to_ptr.vmem [resolvable:$true] %s796_s26 }
 0x234   : > { %s6194_s20 = smov %s6193_s30  ;;  %s4884_s3 = scalar_lea.hbm %s6193_s30, 16 }
 0x235   : > { %p4885_p7 = scmp.ne.s32.totalorder %s6194_s20, %s4884_s3  ;;  %p4891_p1 = scmp.lt.u32.totalorder %s4884_s3, %s6194_s20 }
 0x237   : > { %p4887_p9 = pnand %p4885_p7, %p5288_p8 }
 0x239   : > { %p4888_p4 = pneg %p4887_p9 }
 0x23b   : > { %p4893_p3 = pnand %p4891_p1, %p4888_p4 }
 0x23d   : > { %4896 = shalt.err (!%p4893_p3)
}
 0x23e   : > { %s4897_s28 = scalar_lea.vmem %s797_s26, 16  ;;  %s4904_s29 = scalar_lea.vmem %s797_s26, 32 }
 0x23f   : > { %p4898_p10 = scmp.ne.s32.totalorder %s797_s26, %s4897_s28  ;;  %p4905_p13 = scmp.lt.s32.totalorder %s797_s26, %s797_s26 }
 0x240   : > { %p4906_p0 = scmp.lt.s32.totalorder %s4904_s29, %s4897_s28 }
 0x241   : > { %p4900_p11 = pnand %p4898_p10, %p5288_p8 }
 0x242   : > { %p4907_p2 = por %p4906_p0, %p4905_p13 }
 0x243   : > { %p4901_p12 = pneg %p4900_p11 }
 0x245   : > { %p4908_p5 = pnand %p4907_p2, %p4901_p12 }
 0x247   : > { %4911 = shalt.err (!%p4908_p5)
}
 0x248   : > { %s6195_s8 = sld [smem:[#allocation56_spill]]  ;;  %s6196_s9 = sld [smem:[#allocation55_spill]] }
 0x249   : > { %s6197_s24 = sld [smem:[#allocation54_spill]]  ;;  %s6198_s5 = sld [smem:[#allocation53_spill]] }
 0x24a   : > { %s6199_s7 = sld [smem:[#allocation57_spill]]  ;;  %s6207_s11 = sld [smem:[#allocation60_spill]] }
 0x24b   : > { %4195 = dma.hbm_to_vmem [thread:$0]  (!%p5274_p6), %s6194_s20, 16, %s797_s26, [#allocation37]  }
 0x24e   : > { %s3556_s1 = sadd.s32 4294967294, %s6195_s8   ;;  %s5688_s30 = sadd.s32 1, %s6195_s8  }
 0x24f   : > { %s55_s6 = ssub.s32 %s6195_s8, %s5688_s30  ;;  %s58_s4 = sadd.s32 1, %s6196_s9 }
 0x250   : > { %p56_p8 = scmp.eq.s32.totalorder %s55_s6, 0  ;;  %p65_p7 = scmp.ne.s32.totalorder %s6196_s9, %s6197_s24 }
 0x251   : > { %p66_p9 = scmp.eq.s32.totalorder %s6195_s8, 0  ;;  %p71_p4 = scmp.ne.s32.totalorder %s6197_s24, %s6198_s5 }
 0x252   : > { %s5699_s3 = scalar_select %p56_p8, %s6196_s9, %s58_s4  }
 0x253   : > { %p5701_p1 = por %p66_p9, %p65_p7  ;;  %p6201_p3 = scmp.eq.s32.totalorder %s6199_s7, 0 }
 0x254   : > { %p541_p10 = scmp.eq.s32.totalorder %s6199_s7, 1  ;;  %p547_p11 = scmp.eq.s32.totalorder %s3556_s1, 1 }
 0x255   : > { %p5707_p6 = por %p6201_p3, %p71_p4  ;;  %p4227_p12 = scmp.lt.s32.totalorder %s6195_s8, 2 }
 0x256   : > { %s807_s2 = sand.u32 1, %s6196_s9   ;;  %p5714_p13 = por %p541_p10, %p65_p7 }
 0x257   : > { %s6202_s26 = scalar_select %p5707_p6, 1, 0 }
 0x258   : > { %s6203_s28 = scalar_select %p5714_p13, 1, 0 }
 0x259   : > { %p5718_p0 = por %p547_p11, %p71_p4  ;;  %s5722_s27 = sshll.u32 %s807_s2, 3 }
 0x25a   : > { %s3580_s21 = sshll.u32 %s6195_s8, 7  ;;  %s6205_s6 = sld [smem:[#allocation59_spill]] }
 0x25b   : > { %s6204_s29 = scalar_select %p5718_p0, 1, 0 }
 0x25c   : > { %s811_s9 = scalar_lea.vmem [#allocation3], %s5722_s27  ;;  %p5735_p2 = pnand %p4227_p12, %p5701_p1 }
 0x25d   : > { %s818_s7 = sshll.u32 %s811_s9, 4  ;;  %s5742_s24 = scalar_lea.hbm %s6207_s11, %s3580_s21  ;;  %s5731_s7 = int_to_ptr.vmem [resolvable:$true] %s818_s7 }
 0x25e   : > { %s825_s5 = sand.u32 1, %s6195_s8   ;;  %s808_s12 = scalar_lea.sflag [#allocation4], %s807_s2 }
 0x25f   : > { %p4914_p8 = pneg %p5735_p2 }
 0x260   : > { %s5728_s4 = scalar_lea.hbm %s6205_s6, %s3580_s21  ;;  %s4917_s14 = scalar_lea.hbm %s6205_s6, 256 }
 0x261   : > { %s4912_s13 = scalar_lea.hbm %s5728_s4, 128  ;;  %p4918_p4 = scmp.lt.u32.totalorder %s5728_s4, %s6205_s6 }
 0x262   : > { %p4913_p5 = scmp.ne.s32.totalorder %s5728_s4, %s4912_s13  ;;  %p4919_p1 = scmp.lt.u32.totalorder %s4917_s14, %s4912_s13 }
 0x263   : > { %p4921_p10 = scmp.lt.u32.totalorder %s4912_s13, %s5728_s4 }
 0x264   : > { %p4915_p7 = pnand %p4914_p8, %p4913_p5  ;;  %p4920_p3 = por %p4919_p1, %p4918_p4 }
 0x266   : > { %p4916_p9 = pneg %p4915_p7  ;;  %p4922_p11 = por %p4921_p10, %p4920_p3 }
 0x268   : > { %p4923_p12 = pnand %p4922_p11, %p4916_p9 }
 0x26a   : > { %4926 = shalt.err (!%p4923_p12)
}
 0x26b   : > { %s4927_s0 = scalar_lea.vmem %s5731_s7, 128  ;;  %s5110_s2 = smov [#allocation3]  }
 0x26c   : > { %p4928_p5 = scmp.ne.s32.totalorder %s5731_s7, %s4927_s0  ;;  %s4932_s21 = sshll.u32 %s5110_s2, 4  ;;  %s4933_s21 = int_to_ptr.vmem [resolvable:$false] %s4932_s21 }
 0x26d   : > { %s4934_s15 = scalar_lea.vmem %s4933_s21, 256  ;;  %p4935_p13 = scmp.lt.s32.totalorder %s5731_s7, %s4933_s21 }
 0x26e   : > { %p4930_p7 = pnand %p4928_p5, %p4914_p8  ;;  %p4936_p4 = scmp.lt.s32.totalorder %s4934_s15, %s4927_s0 }
 0x270   : > { %p4931_p0 = pneg %p4930_p7  ;;  %p4937_p1 = por %p4936_p4, %p4935_p13 }
 0x272   : > { %p4938_p3 = pnand %p4937_p1, %p4931_p0 }
 0x274   : > { %4941 = shalt.err (!%p4938_p3)
}
 0x275   : > { %4199 = dma.hbm_to_vmem [thread:$0]  (!%p5735_p2), %s5728_s4, 128, %s5731_s7, %s808_s12  }
 0x276   : > { %s829_s13 = scalar_lea.vmem [#allocation6], %s5722_s27  ;;  %s826_s25 = scalar_lea.sflag [#allocation7], %s825_s5 }
 0x277   : > { %s836_s14 = sshll.u32 %s829_s13, 4  ;;  %s4942_s9 = scalar_lea.hbm %s5742_s24, 128  ;;  %s837_s14 = int_to_ptr.vmem [resolvable:$true] %s836_s14 }
 0x278   : > { %p4943_p13 = scmp.ne.s32.totalorder %s5742_s24, %s4942_s9  ;;  %s4947_s2 = scalar_lea.hbm %s6207_s11, 256 }
 0x279   : > { %p4948_p10 = scmp.lt.u32.totalorder %s5742_s24, %s6207_s11  ;;  %p4949_p11 = scmp.lt.u32.totalorder %s4947_s2, %s4942_s9 }
 0x27a   : > { %p4945_p0 = pnand %p4943_p13, %p4914_p8  ;;  %p4951_p5 = scmp.lt.u32.totalorder %s4942_s9, %s5742_s24 }
 0x27b   : > { %p4950_p12 = por %p4949_p11, %p4948_p10 }
 0x27c   : > { %p4946_p9 = pneg %p4945_p0 }
 0x27d   : > { %p4952_p7 = por %p4951_p5, %p4950_p12 }
 0x27f   : > { %p4953_p4 = pnand %p4952_p7, %p4946_p9 }
 0x281   : > { %4956 = shalt.err (!%p4953_p4)
}
 0x282   : > { %s4957_s12 = scalar_lea.vmem %s837_s14, 128  ;;  %s5111_s8 = smov [#allocation6]  }
 0x283   : > { %p4958_p1 = scmp.ne.s32.totalorder %s837_s14, %s4957_s12  ;;  %s4962_s27 = sshll.u32 %s5111_s8, 4  ;;  %s4963_s27 = int_to_ptr.vmem [resolvable:$false] %s4962_s27 }
 0x284   : > { %s4964_s4 = scalar_lea.vmem %s4963_s27, 256  ;;  %p4965_p0 = scmp.lt.s32.totalorder %s837_s14, %s4963_s27 }
 0x285   : > { %p4960_p3 = pnand %p4958_p1, %p4914_p8  ;;  %p4966_p6 = scmp.lt.s32.totalorder %s4964_s4, %s4957_s12 }
 0x287   : > { %p4961_p13 = pneg %p4960_p3  ;;  %p4967_p10 = por %p4966_p6, %p4965_p0 }
 0x289   : > { %p4968_p11 = pnand %p4967_p10, %p4961_p13 }
 0x28b   : > { %4971 = shalt.err (!%p4968_p11)
}
 0x28c   : > { %4202 = dma.hbm_to_vmem [thread:$0]  (!%p5735_p2), %s5742_s24, 128, %s837_s14, %s826_s25  }
 0x28d   : > { %s6208_s7 = sld [smem:[#allocation58_spill]] }
 0x293   : > { %p6209_p9 = scmp.ne.s32.totalorder %s6208_s7, 0 }
 0x294   : > { %s6210_s5 = sld [smem:[#allocation54_spill]] (!%p6209_p9)  ;;  %p6211_p6 = scmp.ne.s32.totalorder (!%p6209_p9), %s6202_s26, 0 }
 0x295   : > { %845 = sbr.rel (%p6209_p9) target bundleno = 3772 (0xebc), region = 108 }
 0x29a   : > { %s5795_s13 = sand.u32 (!%p6209_p9), 1, %s6210_s5  }
 0x29b   : > { %s5798_s9 = sshll.u32 (!%p6209_p9), %s5795_s13, 3  ;;  %s848_s10 = scalar_lea.sflag (!%p6209_p9), [#allocation4], %s5795_s13 }
 0x29c   : > { %s851_s0 = scalar_lea.vmem [#allocation3], %s5798_s9 }
 0x29d   : > { %5017 = dma.done.wait (%p6211_p6), %s848_s10, 128  }
 0x29e   : > { %5019 = vsyncadd (%p6211_p6), %s848_s10, 4294967168  ;;  %s6212_s1 = sld [smem:[#allocation57_spill]]  ;;  %s860_s25 = scalar_lea.vmem [#allocation6], %s5798_s9 }
 0x2a4   : > { %s856_s24 = sand.u32 1, %s6212_s1  }
 0x2a5   : > { %s857_s14 = scalar_lea.sflag [#allocation7], %s856_s24 }
 0x2a6   : > { %5021 = dma.done.wait (%p6211_p6), %s857_s14, 128  }
 0x2a7   : > { %5023 = vsyncadd (%p6211_p6), %s857_s14, 4294967168  ;;  %p6213_p2 = scmp.eq.s32.totalorder %s6212_s1, 0 }
 0x2a9   : > { %5025 = dma.done.wait (%p6213_p2), [#allocation7], 128   ;;  %p6214_p8 = pmov %p6213_p2 }
 0x2aa   : > { %p6215_p12 = pmov %p6213_p2 }
 0x2ab   : > { %5027 = vsyncadd (%p6214_p8), [#allocation7], 4294967168 }
 0x2ac   : > { %5029 = dma.done.wait (%p6215_p12), [#allocation10], 576   ;;  %p6216_p5 = pmov %p6213_p2 }
 0x2ad   : > { %p6217_p7 = pmov %p6213_p2 }
 0x2ae   : > { %5031 = vsyncadd (%p6216_p5), [#allocation10], 4294966720 }
 0x2af   : > { %5033 = dma.done.wait (%p6217_p7), [#allocation13], 1024   ;;  %p6218_p4 = pmov %p6213_p2 }
 0x2b0   : > { %p6219_p1 = pmov %p6213_p2 }
 0x2b1   : > { %5035 = vsyncadd (%p6218_p4), [#allocation13], 4294966272 }
 0x2b2   : > { %5037 = dma.done.wait (%p6219_p1), [#allocation16], 576   ;;  %p6220_p3 = pmov %p6219_p1 }
 0x2b3   : > { %p6221_p13 = pmov %p6219_p1 }
 0x2b4   : > { %5039 = vsyncadd (%p6220_p3), [#allocation16], 4294966720 }
 0x2b5   : > { %5041 = dma.done.wait (%p6221_p13), [#allocation19], 80   ;;  %p6222_p0 = pmov %p6219_p1 }
 0x2b7   : > { %5043 = vsyncadd (%p6222_p0), [#allocation19], 4294967216  ;;  %p6223_p10 = pmov %p6222_p0 }
 0x2b8   : > { %p6224_p11 = pmov %p6222_p0 }
 0x2b9   : > { %5045 = dma.done.wait (%p6223_p10), [#allocation22], 1024  }
 0x2ba   : > { %5047 = vsyncadd (%p6224_p11), [#allocation22], 4294966272  ;;  %p6225_p9 = pmov %p6222_p0 }
 0x2bb   : > { %p6226_p6 = pmov %p6222_p0 }
 0x2bc   : > { %5049 = dma.done.wait (%p6225_p9), [#allocation25], 576  }
 0x2bd   : > { %5051 = vsyncadd (%p6226_p6), [#allocation25], 4294966720  ;;  %p6227_p2 = pmov %p6222_p0 }
 0x2be   : > { %p6228_p8 = pmov %p6222_p0 }
 0x2bf   : > { %5053 = dma.done.wait (%p6227_p2), [#allocation28], 528  }
 0x2c0   : > { %5055 = vsyncadd (%p6228_p8), [#allocation28], 4294966768  ;;  %p6229_p12 = pmov %p6222_p0 }
 0x2c1   : > { %p6230_p5 = pmov %p6222_p0 }
 0x2c2   : > { %5057 = dma.done.wait (%p6229_p12), [#allocation31], 576  }
 0x2c3   : > { %5059 = vsyncadd (%p6230_p5), [#allocation31], 4294966720  ;;  %p6231_p7 = pmov %p6222_p0 }
 0x2c4   : > { %p6232_p4 = pmov %p6222_p0 }
 0x2c5   : > { %5061 = dma.done.wait (%p6231_p7), [#allocation34], 2064  }
 0x2c6   : > { %5063 = vsyncadd (%p6232_p4), [#allocation34], 4294965232  ;;  %p6233_p1 = pmov %p6222_p0 }
 0x2c7   : > { %p6234_p3 = pmov %p6222_p0 }
 0x2c8   : > { %5065 = dma.done.wait (%p6233_p1), [#allocation37], 16  }
 0x2c9   : > { %5067 = vsyncadd (%p6234_p3), [#allocation37], 4294967280  ;;  %v5112_v0 = vmov 0.0|0.0   ;;  %vm5113_vm0 = vmmov 0   ;;  %v5114_v1 = vmov 0.0   ;;  %v1029_v2 = vld [vmem:[#allocation11] sm:$0xff] }
 0x2ca   : > { %3971 = vmatprep.subr.bf16.mxu1 %v5112_v0  ;;  %3765 = vmatprep.mubr.msk.f32.mxu1 %vm5113_vm0, %v5114_v1  ;;  %v1030_v3 = vld [vmem:[#allocation11 + $0x8] sm:$0xff]  ;;  %v1031_v4 = vld [vmem:[#allocation11 + $0x10] sm:$0xff]  ;;  %v1032_v6 = vld [vmem:[#allocation11 + $0x18] sm:$0xff]  ;;  %vm1037_vm1 = vcmask 261120   ;;  %vm1269_vm2 = vcmask 64512   ;;  %s5115_s26 = smov 112  }
 0x2cb   : > { %3800 = vmatprep.subr.mxu0 %v5114_v1  ;;  %3802 = vmatprep.mubr.msk.f32.mxu0 %vm5113_vm0, %v5114_v1  ;;  %v3972_v5 = vpack.c.bf16 %v1030_v3, %v1029_v2  ;;  %v1006_v7 = vld [vmem:[%s851_s0] sm:$0xff]  ;;  %v3975_v11 = vpack.c.bf16 %v1032_v6, %v1031_v4  ;;  %v1113_v15 = vld [vmem:[#allocation12 + $0x8] sm:$0xff]  ;;  %s5116_s2 = smov 120   ;;  %s5117_s21 = smov 104   ;;  %vm1601_vm3 = vcmask 130112   ;;  %vm1772_vm4 = vcmask 195712  }
 0x2cc   : > { %v1007_v8 = vld [vmem:[#allocation8] sm:$0xff]  ;;  %v3607_v10 = vld [vmem:[#allocation9 + $0x2] ss:$0 sm:$0xff]  ;;  %v3608_v13 = vld [vmem:[#allocation9] ss:$0 sm:$0xff]  ;;  %s5118_s15 = smov 8  }
 0x2cd   : > { %v5864_v9 = vadd.f32 %v1007_v8, %v1006_v7  ;;  %3973 = vmatpush3.bf16.msra.mxu1 %v3972_v5  ;;  %v1112_v14 = vld [vmem:[#allocation12] sm:$0xff]  ;;  %v3609_v17 = vld [vmem:[#allocation9 + $0x1] ss:$0 sm:$0xff]  ;;  %v1114_v21 = vld [vmem:[#allocation12 + $0x10] sm:$0xff]  ;;  %s5119_s12 = smov 16   ;;  %s5120_s8 = smov 24  }
 0x2ce   : > { %3974 = vmatprep.subr.bf16.mxu1 %v5112_v0  ;;  %v3978_v19 = vpack.c.bf16 %v1113_v15, %v1112_v14  ;;  %v1115_v22 = vld [vmem:[#allocation12 + $0x18] sm:$0xff]  ;;  %v1191_v24 = vld [vmem:[#allocation14] sm:$0xff]  ;;  %v1192_v25 = vld [vmem:[#allocation14 + $0x8] sm:$0xff]  ;;  %vm1943_vm5 = vcmask 261312   ;;  %s3660_s27 = sshll.u32 %s6212_s1, 7  ;;  %s1005_s4 = scalar_lea.vmem [#allocation38], %s5798_s9 }
 0x2cf   : > { %v1016_v12 = vmul.f32 %v3607_v10, %v5864_v9  ;;  %v3981_v23 = vpack.c.bf16 %v1115_v22, %v1114_v21  ;;  %v3984_v26 = vpack.c.bf16 %v1192_v25, %v1191_v24  ;;  %v1193_v27 = vld [vmem:[#allocation14 + $0x10] sm:$0xff]  ;;  %v1194_v28 = vld [vmem:[#allocation14 + $0x18] sm:$0xff]  ;;  %v3612_v32 = vld [vmem:[#allocation15 + $0x1] ss:$0 sm:$0xff]  ;;  %s3273_s7 = sshll.u32 %s1005_s4, 4  ;;  %s6235_s0 = sld [smem:[#allocation78_spill]]  ;;  %s6054_s7 = int_to_ptr.vmem [resolvable:$true] %s3273_s7 }
 0x2d0   : > { %v3987_v29 = vpack.c.bf16 %v1194_v28, %v1193_v27  ;;  %v3610_v36 = vld [vmem:[#allocation15] ss:$0 sm:$0xff]  ;;  %v3614_v38 = vld [vmem:[#allocation15 + $0x2] ss:$0 sm:$0xff]  ;;  %s3260_s14 = scalar_lea.sflag [#allocation5], %s5795_s13  ;;  %s4972_s1 = scalar_lea.vmem %s6054_s7, 128 }
 0x2d1   : > { %4312 = vtanh.f32 %v1016_v12  ;;  %3976 = vmatpush3.bf16.msra.mxu1 %v3975_v11  ;;  %p4973_p13 = scmp.ne.s32.totalorder %s6054_s7, %s4972_s1  ;;  %p6236_p0 = scmp.ne.s32.totalorder %s6203_s28, 0 }
 0x2d2   : > { %3977 = vmatprep.subr.bf16.mxu1 %v5112_v0  ;;  %s5121_s9 = smov [#allocation38]  }
 0x2d3   : > { %p4974_p10 = pnand %p4973_p13, %p6236_p0 }
 0x2d5   : > { %s6052_s24 = scalar_lea.hbm %s6235_s0, %s3660_s27  ;;  %p4975_p11 = pneg %p4974_p10 }
 0x2db   : > { %v4313_v16 = vpop.eup %4312 }
 0x2dc   : > { %v1022_v18 = vmul.f32 %v4313_v16, %v3608_v13 }
 0x2de   : > { %v1027_v20 = vadd.f32 %v3609_v17, %v1022_v18 }
 0x2e0   : > { %3766 = vmatmul.mubr.msk.f32.vlgmr.msra.gmra.mrb[0].mxu1 %vm1037_vm1, %v1027_v20 }
 0x2e1   : > { %3979 = vmatpush3.bf16.msra.mxu1 %v3978_v19  ;;  %3776 = vmatprep.mubr.msk.f32.mxu1 %vm5113_vm0, %v5114_v1 }
 0x2e2   : > { %3980 = vmatprep.subr.bf16.mxu1 %v5112_v0 }
 0x2e5   : > { %3982 = vmatpush3.bf16.msra.mxu1 %v3981_v23 }
 0x2e6   : > { %3983 = vmatprep.subr.bf16.mxu1 %v5112_v0 }
 0x2e8   : > { %3777 = vmatmul.mubr.msk.f32.vlgmr.msra.gmra.mrb[2].mxu1 %vm1037_vm1, %v1027_v20 }
 0x2e9   : > { %3985 = vmatpush3.bf16.msra.mxu1 %v3984_v26  ;;  %3787 = vmatprep.mubr.msk.f32.mxu1 %vm5113_vm0, %v5114_v1 }
 0x2ea   : > { %3986 = vmatprep.subr.bf16.mxu1 %v5112_v0 }
 0x2ed   : > { %3988 = vmatpush3.bf16.msra.mxu1 %v3987_v29 }
 0x2ee   : > { %3790 = vmatprep.subr.mxu1 %v5114_v1 }
 0x2f0   : > { %3788 = vmatmul.mubr.msk.f32.vlgmr.msra.gmra.mrb[4].mxu1 %vm1037_vm1, %v1027_v20 }
 0x2f1   : > { %3792 = vmatprep.mubr.msk.f32.mxu1 %vm5113_vm0, %v5114_v1 }
 0x3b3   : > { %v1107_v30 = vpop.f32.mrb[0].mxu1 }
 0x3b4   : > { %v3767_v31 = vpop.f32.mrb[1].mxu1  ;;  %v1108_v37 = vadd.f32 %v3610_v36, %v1107_v30  ;;  %v1946_v30 = vld [vmem:[#allocation17] sm:$0xff] }
 0x3b5   : > { %v1947_v31 = vld [vmem:[#allocation17 + $0x8] sm:$0xff] }
 0x3bb   : > { %v1186_v33 = vpop.f32.mrb[2].mxu1 }
 0x3bc   : > { %v1187_v34 = vadd.f32 %v3612_v32, %v1186_v33  ;;  %v3778_v35 = vpop.f32.mrb[3].mxu1  ;;  %v3990_v32 = vpack.c.bf16 %v1947_v31, %v1946_v30  ;;  %v1948_v33 = vld [vmem:[#allocation17 + $0x10] sm:$0xff]  ;;  %v3637_v30 = vld [vmem:[#allocation26 + $0x2] ss:$0 sm:$0xff] }
 0x3be   : > { %1605 = vrot.lane.b32.xlu1 %v1187_v34, %s5115_s26  ;;  %1433 = vrot.lane.b32.xlu0 %v1187_v34, %s5116_s2 }
 0x3bf   : > { %3791 = vmatpush3.xpose.msk.msra.mxu1 %vm1269_vm2, %v1187_v34 }
 0x3c0   : > { %3795 = vmatprep.subr.mxu1 %v5114_v1 }
 0x3c2   : > { %3793 = vmatmul.mubr.msk.f32.vlgmr.msra.gmra.mrb[6].mxu1 %vm1269_vm2, %v1108_v37  ;;  %1603 = vrot.lane.b32.xlu1 %v1108_v37, %s5115_s26 }
 0x3c3   : > { %1431 = vrot.lane.b32.xlu0 %v1108_v37, %s5116_s2  ;;  %3797 = vmatprep.mubr.msk.f32.mxu1 %vm5113_vm0, %v5114_v1  ;;  %v1265_v39 = vpop.f32.mrb[4].mxu1 }
 0x3c4   : > { %v1266_v40 = vadd.f32 %v3614_v38, %v1265_v39  ;;  %v3789_v41 = vpop.f32.mrb[5].mxu1 }
 0x3c6   : > { %1774 = vrot.lane.b32.xlu1 %v1108_v37, %s5117_s21  ;;  %3796 = vmatpush3.msra.mxu1 %v1266_v40 }
 0x3c7   : > { %1776 = vrot.lane.b32.xlu0 %v1187_v34, %s5117_s21  ;;  %3805 = vmatprep.subr.mxu1 %v5114_v1  ;;  %v1949_v34 = vld [vmem:[#allocation17 + $0x18] sm:$0xff] }
 0x3c8   : > { %v3993_v37 = vpack.c.bf16 %v1949_v34, %v1948_v33 }
 0x3ca   : > { %1519 = vrot.lane.b32.xlu1 %v1266_v40, %s5116_s2 }
 0x430   : > { %v1434_v42 = vpop.permute.xlu0 %1433  ;;  %v1606_v43 = vpop.permute.xlu1 %1605 }
 0x431   : > { %3801 = vmatpush3.xpose.msk.msra.mxu0 %vm1269_vm2, %v1434_v42 }
 0x432   : > { %3810 = vmatprep.subr.mxu0 %v5114_v1 }
 0x434   : > { %v1604_v45 = vpop.permute.xlu1 %1603 }
 0x435   : > { %v1432_v44 = vpop.permute.xlu0 %1431 }
 0x436   : > { %3803 = vmatmul.mubr.msk.f32.vlgmr.msra.gmra.mrb[0].mxu0 %vm1269_vm2, %v1432_v44 }
 0x437   : > { %3811 = vmatpush3.xpose.msk.msra.mxu0 %vm1269_vm2, %v1606_v43  ;;  %3812 = vmatprep.mubr.msk.f32.mxu0 %vm5113_vm0, %v5114_v1 }
 0x438   : > { %3820 = vmatprep.subr.mxu0 %v5114_v1  ;;  %v1775_v47 = vpop.permute.xlu1 %1774 }
 0x439   : > { %v1777_v46 = vpop.permute.xlu0 %1776 }
 0x43a   : > { %3813 = vmatmul.mubr.msk.f32.vlgmr.msra.gmra.mrb[2].mxu0 %vm1269_vm2, %v1604_v45 }
 0x43b   : > { %3821 = vmatpush3.xpose.msk.msra.mxu0 %vm1269_vm2, %v1777_v46  ;;  %3822 = vmatprep.mubr.msk.f32.mxu0 %vm5113_vm0, %v5114_v1 }
 0x43c   : > { %3989 = vmatprep.subr.bf16.mxu0 %v5112_v0  ;;  %v1520_v63 = vpop.permute.xlu1 %1519 }
 0x43e   : > { %3823 = vmatmul.mubr.msk.f32.vlgmr.msra.gmra.mrb[4].mxu0 %vm1269_vm2, %v1775_v47 }
 0x43f   : > { %3838 = vmatprep.mubr.msk.f32.mxu0 %vm5113_vm0, %v5114_v1  ;;  %3991 = vmatpush3.bf16.msra.mxu0 %v3990_v32 }
 0x440   : > { %3992 = vmatprep.subr.bf16.mxu0 %v5112_v0 }
 0x443   : > { %3994 = vmatpush3.bf16.msra.mxu0 %v3993_v37 }
 0x444   : > { %4001 = vmatprep.subr.bf16.mxu0 %v5112_v0 }
 0x495   : > { %v1342_v48 = vpop.f32.mrb[6].mxu1 }
 0x496   : > { %v3794_v49 = vpop.f32.mrb[7].mxu1  ;;  %v1346_v50 = vsel %vm1269_vm2, %v1342_v48, -inf }
 0x497   : > { %1347 = vmax.xlane.f32.xlu0 %v1346_v50 }
 0x509   : > { %v1505_v51 = vpop.f32.mrb[0].mxu0 }
 0x50a   : > { %v3804_v52 = vpop.f32.mrb[1].mxu0  ;;  %v1509_v53 = vsel %vm1269_vm2, %v1505_v51, -inf }
 0x50b   : > { %1510 = vmax.xlane.f32.xlu1 %v1509_v53  ;;  %v2134_v52 = vld [vmem:[#allocation23] sm:$0xff]  ;;  %v2135_v53 = vld [vmem:[#allocation23 + $0x8] sm:$0xff] }
 0x50d   : > { %v1677_v54 = vpop.f32.mrb[2].mxu0 }
 0x50e   : > { %v3814_v55 = vpop.f32.mrb[3].mxu0  ;;  %v1681_v56 = vsel %vm1269_vm2, %v1677_v54, -inf }
 0x50f   : > { %1682 = vmax.xlane.f32.xlu0 %v1681_v56  ;;  %v2136_v55 = vld [vmem:[#allocation23 + $0x10] sm:$0xff]  ;;  %v2137_v56 = vld [vmem:[#allocation23 + $0x18] sm:$0xff] }
 0x511   : > { %v1848_v57 = vpop.f32.mrb[4].mxu0 }
 0x512   : > { %v3824_v58 = vpop.f32.mrb[5].mxu0  ;;  %v1852_v59 = vsel %vm1269_vm2, %v1848_v57, -inf }
 0x513   : > { %1853 = vmax.xlane.f32.xlu0 %v1852_v59  ;;  %v2052_v58 = vld [vmem:[#allocation21] sm:$0xff]  ;;  %v2053_v59 = vld [vmem:[#allocation21 + $0x8] sm:$0xff] }
 0x51c   : > { %1861 = vrot.lane.b32.xlu1 %v1266_v40, %s5117_s21 }
 0x524   : > { %v1348_v60 = vpop.xlane.xlu0 %1347 }
 0x525   : > { %v1349_v61 = vsub.f32 %v1342_v48, %v1348_v60  ;;  %v3996_v60 = vpack.c.bf16 %v2053_v59, %v2052_v58 }
 0x527   : > { %v1350_v62 = vmul.f32 1.442695, %v1349_v61  ;;  %v2054_v61 = vld [vmem:[#allocation21 + $0x10] sm:$0xff] }
 0x529   : > { %4314 = vpow2.f32 %v1350_v62  ;;  %1690 = vrot.lane.b32.xlu0 %v1266_v40, %s5115_s26  ;;  %v2055_v62 = vld [vmem:[#allocation21 + $0x18] sm:$0xff] }
 0x533   : > { %v4315_v2 = vpop.eup %4314 }
 0x534   : > { %3798 = vmatmul.mubr.msk.f32.vlgmr.msra.gmra.mrb[8].mxu1 %vm1269_vm2, %v4315_v2  ;;  %v1352_v18 = vsel %vm1269_vm2, %v4315_v2, 0.0  ;;  %v3999_v2 = vpack.c.bf16 %v2055_v62, %v2054_v61 }
 0x535   : > { %3806 = vmatpush3.msra.mxu1 %v1520_v63  ;;  %3807 = vmatprep.mubr.msk.f32.mxu1 %vm5113_vm0, %v5114_v1  ;;  %v2050_v63 = vld [vmem:[%s860_s25] sm:$0xff]  ;;  %s4976_s25 = sshll.u32 %s5121_s9, 4  ;;  %s4977_s25 = int_to_ptr.vmem [resolvable:$false] %s4976_s25 }
 0x536   : > { %3815 = vmatprep.subr.mxu1 %v5114_v1  ;;  %p4979_p9 = scmp.lt.s32.totalorder %s6054_s7, %s4977_s25 }
 0x598   : > { %v1511_v3 = vpop.xlane.xlu1 %1510 }
 0x599   : > { %v1512_v4 = vsub.f32 %v1505_v51, %v1511_v3  ;;  %v3628_v3 = vld [vmem:[#allocation18] ss:$0 sm:$0xff] }
 0x59b   : > { %v1513_v5 = vmul.f32 1.442695, %v1512_v4 }
 0x59c   : > { %v1683_v6 = vpop.xlane.xlu0 %1682  ;;  %v1862_v17 = vpop.permute.xlu1 %1861 }
 0x59d   : > { %4316 = vpow2.f32 %v1513_v5  ;;  %v1684_v7 = vsub.f32 %v1677_v54, %v1683_v6  ;;  %v4002_v54 = vpack.c.bf16 %v2135_v53, %v2134_v52 }
 0x59f   : > { %v1685_v8 = vmul.f32 1.442695, %v1684_v7  ;;  %v3630_v7 = vld [vmem:[#allocation20 + $0x2] ss:$0 sm:$0xff] }
 0x5a0   : > { %v1854_v10 = vpop.xlane.xlu0 %1853 }
 0x5a1   : > { %4318 = vpow2.f32 %v1685_v8  ;;  %v1855_v11 = vsub.f32 %v1848_v57, %v1854_v10  ;;  %v4005_v57 = vpack.c.bf16 %v2137_v56, %v2136_v55 }
 0x5a3   : > { %v1856_v12 = vmul.f32 1.442695, %v1855_v11  ;;  %v3631_v11 = vld [vmem:[#allocation20] ss:$0 sm:$0xff] }
 0x5a4   : > { %v1691_v14 = vpop.permute.xlu0 %1690 }
 0x5a5   : > { %4320 = vpow2.f32 %v1856_v12 }
 0x5a7   : > { %v4317_v13 = vpop.eup %4316 }
 0x5a8   : > { %3808 = vmatmul.mubr.msk.f32.vlgmr.msra.gmra.mrb[10].mxu1 %vm1269_vm2, %v4317_v13  ;;  %v1515_v15 = vsel %vm1269_vm2, %v4317_v13, 0.0  ;;  %v3632_v13 = vld [vmem:[#allocation20 + $0x1] ss:$0 sm:$0xff] }
 0x5a9   : > { %3816 = vmatpush3.msra.mxu1 %v1691_v14  ;;  %1516 = vadd.xlane.f32.xlu1 %v1515_v15 }
 0x5aa   : > { %3817 = vmatprep.mubr.msk.f32.mxu1 %vm5113_vm0, %v5114_v1  ;;  %3825 = vmatprep.subr.mxu1 %v5114_v1 }
 0x5ab   : > { %v4319_v16 = vpop.eup %4318 }
 0x5ac   : > { %3818 = vmatmul.mubr.msk.f32.vlgmr.msra.gmra.mrb[12].mxu1 %vm1269_vm2, %v4319_v16  ;;  %v1687_v19 = vsel %vm1269_vm2, %v4319_v16, 0.0  ;;  %v3635_v16 = vld [vmem:[#allocation26 + $0x1] ss:$0 sm:$0xff] }
 0x5ad   : > { %3826 = vmatpush3.msra.mxu1 %v1862_v17  ;;  %1353 = vadd.xlane.f32.xlu1 %v1352_v18 }
 0x5ae   : > { %1688 = vadd.xlane.f32.xlu0 %v1687_v19  ;;  %3827 = vmatprep.mubr.msk.f32.mxu1 %vm5113_vm0, %v5114_v1 }
 0x5af   : > { %v4321_v20 = vpop.eup %4320  ;;  %3995 = vmatprep.subr.bf16.mxu1 %v5112_v0 }
 0x5b0   : > { %3828 = vmatmul.mubr.msk.f32.vlgmr.msra.gmra.mrb[14].mxu1 %vm1269_vm2, %v4321_v20  ;;  %v1858_v21 = vsel %vm1269_vm2, %v4321_v20, 0.0  ;;  %v2217_v20 = vld [vmem:[#allocation24 + $0x8] sm:$0xff] }
 0x5b1   : > { %3849 = vmatprep.mubr.msk.f32.mxu1 %vm5113_vm0, %v5114_v1  ;;  %3997 = vmatpush3.bf16.msra.mxu1 %v3996_v60 }
 0x5b2   : > { %1859 = vadd.xlane.f32.xlu0 %v1858_v21  ;;  %3998 = vmatprep.subr.bf16.mxu1 %v5112_v0  ;;  %v2218_v21 = vld [vmem:[#allocation24 + $0x10] sm:$0xff] }
 0x5b5   : > { %4000 = vmatpush3.bf16.msra.mxu1 %v3999_v2 }
 0x5b6   : > { %4007 = vmatprep.subr.bf16.mxu1 %v5112_v0 }
 0x607   : > { %v1424_v22 = vpop.f32.mrb[8].mxu1 }
 0x608   : > { %v3799_v23 = vpop.f32.mrb[9].mxu1 }
 0x609   : > { %v2219_v23 = vld [vmem:[#allocation24 + $0x18] sm:$0xff] }
 0x636   : > { %v1517_v24 = vpop.xlane.xlu1 %1516 }
 0x63a   : > { %v1354_v25 = vpop.xlane.xlu1 %1353 }
 0x63b   : > { %4322 = vrcp.f32 %v1354_v25  ;;  %v1689_v28 = vpop.xlane.xlu0 %1688  ;;  %v3633_v25 = vld [vmem:[#allocation26] ss:$0 sm:$0xff] }
 0x63c   : > { %4324 = vrcp.f32 %v1517_v24  ;;  %v4011_v24 = vpack.c.bf16 %v2219_v23, %v2218_v21  ;;  %v2967_v21 = vld [vmem:[#allocation27] sm:$0xff] }
 0x63d   : > { %4326 = vrcp.f32 %v1689_v28 }
 0x63f   : > { %v1860_v29 = vpop.xlane.xlu0 %1859 }
 0x640   : > { %4328 = vrcp.f32 %v1860_v29 }
 0x645   : > { %v4323_v26 = vpop.eup %4322 }
 0x646   : > { %v1429_v27 = vmul.f32 %v4323_v26, %v1424_v22  ;;  %v4325_v35 = vpop.eup %4324 }
 0x647   : > { %v4327_v40 = vpop.eup %4326 }
 0x648   : > { %1430 = vst.msk [vmem:[#allocation2] sm:$0xff] %vm1269_vm2, %v1429_v27 }
 0x64a   : > { %v4329_v44 = vpop.eup %4328 }
 0x67b   : > { %v1591_v36 = vpop.f32.mrb[10].mxu1 }
 0x67c   : > { %v1596_v38 = vmul.f32 %v4325_v35, %v1591_v36  ;;  %v3809_v39 = vpop.f32.mrb[11].mxu1 }
 0x67e   : > { %1598 = vrot.lane.b32.xlu0 %v1596_v38, %s5118_s15 }
 0x67f   : > { %v1762_v41 = vpop.f32.mrb[12].mxu1 }
 0x680   : > { %v1767_v42 = vmul.f32 %v4327_v40, %v1762_v41  ;;  %v3819_v43 = vpop.f32.mrb[13].mxu1 }
 0x682   : > { %1769 = vrot.lane.b32.xlu1 %v1767_v42, %s5119_s12 }
 0x683   : > { %v1933_v45 = vpop.f32.mrb[14].mxu1 }
 0x684   : > { %v1938_v46 = vmul.f32 %v4329_v44, %v1933_v45  ;;  %v3829_v47 = vpop.f32.mrb[15].mxu1 }
 0x686   : > { %1940 = vrot.lane.b32.xlu1 %v1938_v46, %s5120_s8 }
 0x6f0   : > { %v1599_v48 = vpop.permute.xlu0 %1598 }
 0x6f1   : > { %1602 = vst.msk [vmem:[#allocation2] sm:$0xff] %vm1601_vm3, %v1599_v48 }
 0x6f4   : > { %v1770_v49 = vpop.permute.xlu1 %1769 }
 0x6f5   : > { %1773 = vst.msk [vmem:[#allocation2] sm:$0xff] %vm1772_vm4, %v1770_v49 }
 0x6f8   : > { %v1941_v50 = vpop.permute.xlu1 %1940 }
 0x6f9   : > { %1944 = vst.msk [vmem:[#allocation2] sm:$0xff] %vm1943_vm5, %v1941_v50 }
 0x700   : > { %v1945_v51 = vld [vmem:[#allocation2] sm:$0xff] }
 0x701   : > { %3839 = vmatmul.mubr.msk.f32.vlgmr.msra.gmra.mrb[6].mxu0 %vm1037_vm1, %v1945_v51 }
 0x702   : > { %3860 = vmatprep.mubr.msk.f32.mxu0 %vm5113_vm0, %v5114_v1  ;;  %4003 = vmatpush3.bf16.msra.mxu0 %v4002_v54 }
 0x703   : > { %4004 = vmatprep.subr.bf16.mxu0 %v5112_v0 }
 0x706   : > { %4006 = vmatpush3.bf16.msra.mxu0 %v4005_v57 }
 0x707   : > { %3874 = vmatprep.subr.mxu0 %v5114_v1 }
 0x709   : > { %3861 = vmatmul.mubr.msk.f32.vlgmr.msra.gmra.mrb[8].mxu0 %vm1037_vm1, %v2050_v63 }
 0x70a   : > { %3876 = vmatprep.mubr.msk.f32.mxu0 %vm5113_vm0, %v5114_v1 }
 0x7d4   : > { %v2026_v4 = vpop.f32.mrb[6].mxu0 }
 0x7d5   : > { %v2027_v5 = vadd.f32 %v3628_v3, %v2026_v4  ;;  %v3840_v6 = vpop.f32.mrb[7].mxu0 }
 0x7d7   : > { %v5957_v8 = vadd.f32 %v2027_v5, %v5864_v9  ;;  %v2216_v9 = vld [vmem:[#allocation24] sm:$0xff] }
 0x7d8   : > { %v4008_v22 = vpack.c.bf16 %v2217_v20, %v2216_v9 }
 0x7d9   : > { %v2038_v10 = vmul.f32 %v3630_v7, %v5957_v8 }
 0x7db   : > { %4330 = vtanh.f32 %v2038_v10 }
 0x7dc   : > { %v2211_v17 = vpop.f32.mrb[8].mxu0 }
 0x7dd   : > { %v2212_v18 = vadd.f32 %v3635_v16, %v2211_v17  ;;  %v3862_v19 = vpop.f32.mrb[9].mxu0 }
 0x7df   : > { %2457 = vrot.lane.b32.xlu0 %v2212_v18, %s5116_s2  ;;  %3875 = vmatpush3.xpose.msk.msra.mxu0 %vm1269_vm2, %v2212_v18 }
 0x7e0   : > { %3884 = vmatprep.subr.mxu0 %v5114_v1 }
 0x7e3   : > { %2628 = vrot.lane.b32.xlu0 %v2212_v18, %s5115_s26 }
 0x7e5   : > { %v4331_v12 = vpop.eup %4330 }
 0x7e6   : > { %v2044_v14 = vmul.f32 %v4331_v12, %v3631_v11 }
 0x7e7   : > { %2798 = vrot.lane.b32.xlu0 %v2212_v18, %s5117_s21 }
 0x7e8   : > { %v2049_v15 = vadd.f32 %v3632_v13, %v2044_v14 }
 0x7ea   : > { %3850 = vmatmul.mubr.msk.f32.vlgmr.msra.gmra.mrb[16].mxu1 %vm1037_vm1, %v2049_v15 }
 0x7eb   : > { %3871 = vmatprep.mubr.msk.f32.mxu1 %vm5113_vm0, %v5114_v1  ;;  %4009 = vmatpush3.bf16.msra.mxu1 %v4008_v22  ;;  %v2968_v22 = vld [vmem:[#allocation27 + $0x8] sm:$0xff] }
 0x7ec   : > { %4010 = vmatprep.subr.bf16.mxu1 %v5112_v0  ;;  %v4014_v23 = vpack.c.bf16 %v2968_v22, %v2967_v21  ;;  %v3656_v22 = vld [vmem:[#allocation33] ss:$0 sm:$0xff] }
 0x7ef   : > { %4012 = vmatpush3.bf16.msra.mxu1 %v4011_v24  ;;  %v2969_v24 = vld [vmem:[#allocation27 + $0x10] sm:$0xff] }
 0x7f0   : > { %3879 = vmatprep.subr.mxu1 %v5114_v1 }
 0x7f2   : > { %3872 = vmatmul.mubr.msk.f32.vlgmr.msra.gmra.mrb[18].mxu1 %vm1037_vm1, %v2050_v63 }
 0x7f3   : > { %3881 = vmatprep.mubr.msk.f32.mxu1 %vm5113_vm0, %v5114_v1 }
 0x851   : > { %v2458_v29 = vpop.permute.xlu0 %2457 }
 0x855   : > { %v2629_v34 = vpop.permute.xlu0 %2628 }
 0x859   : > { %v2799_v37 = vpop.permute.xlu0 %2798 }
 0x8bd   : > { %v2129_v26 = vpop.f32.mrb[16].mxu1 }
 0x8be   : > { %v2130_v27 = vadd.f32 %v3633_v25, %v2129_v26  ;;  %v3851_v28 = vpop.f32.mrb[17].mxu1  ;;  %v2970_v25 = vld [vmem:[#allocation27 + $0x18] sm:$0xff] }
 0x8bf   : > { %v4017_v28 = vpack.c.bf16 %v2970_v25, %v2969_v24 }
 0x8c0   : > { %2455 = vrot.lane.b32.xlu1 %v2130_v27, %s5116_s2  ;;  %3877 = vmatmul.mubr.msk.f32.vlgmr.msra.gmra.mrb[10].mxu0 %vm1269_vm2, %v2130_v27 }
 0x8c1   : > { %3885 = vmatpush3.xpose.msk.msra.mxu0 %vm1269_vm2, %v2458_v29  ;;  %3886 = vmatprep.mubr.msk.f32.mxu0 %vm5113_vm0, %v5114_v1 }
 0x8c2   : > { %3894 = vmatprep.subr.mxu0 %v5114_v1 }
 0x8c4   : > { %2626 = vrot.lane.b32.xlu1 %v2130_v27, %s5115_s26 }
 0x8c5   : > { %v2290_v31 = vpop.f32.mrb[18].mxu1 }
 0x8c6   : > { %v2291_v32 = vadd.f32 %v3637_v30, %v2290_v31  ;;  %v3873_v33 = vpop.f32.mrb[19].mxu1 }
 0x8c8   : > { %2796 = vrot.lane.b32.xlu1 %v2130_v27, %s5117_s21  ;;  %3880 = vmatpush3.msra.mxu1 %v2291_v32 }
 0x8c9   : > { %3889 = vmatprep.subr.mxu1 %v5114_v1 }
 0x8cc   : > { %2543 = vrot.lane.b32.xlu1 %v2291_v32, %s5116_s2 }
 0x932   : > { %v2456_v35 = vpop.permute.xlu1 %2455 }
 0x933   : > { %3887 = vmatmul.mubr.msk.f32.vlgmr.msra.gmra.mrb[12].mxu0 %vm1269_vm2, %v2456_v35 }
 0x934   : > { %3895 = vmatpush3.xpose.msk.msra.mxu0 %vm1269_vm2, %v2629_v34  ;;  %3896 = vmatprep.mubr.msk.f32.mxu0 %vm5113_vm0, %v5114_v1 }
 0x935   : > { %3904 = vmatprep.subr.mxu0 %v5114_v1 }
 0x936   : > { %v2627_v36 = vpop.permute.xlu1 %2626 }
 0x937   : > { %3897 = vmatmul.mubr.msk.f32.vlgmr.msra.gmra.mrb[14].mxu0 %vm1269_vm2, %v2627_v36 }
 0x938   : > { %3905 = vmatpush3.xpose.msk.msra.mxu0 %vm1269_vm2, %v2799_v37  ;;  %3906 = vmatprep.mubr.msk.f32.mxu0 %vm5113_vm0, %v5114_v1 }
 0x939   : > { %4013 = vmatprep.subr.bf16.mxu0 %v5112_v0 }
 0x93a   : > { %v2797_v38 = vpop.permute.xlu1 %2796 }
 0x93b   : > { %3907 = vmatmul.mubr.msk.f32.vlgmr.msra.gmra.mrb[16].mxu0 %vm1269_vm2, %v2797_v38 }
 0x93c   : > { %3922 = vmatprep.mubr.msk.f32.mxu0 %vm5113_vm0, %v5114_v1  ;;  %4015 = vmatpush3.bf16.msra.mxu0 %v4014_v23 }
 0x93d   : > { %4016 = vmatprep.subr.bf16.mxu0 %v5112_v0 }
 0x93e   : > { %v2544_v54 = vpop.permute.xlu1 %2543 }
 0x940   : > { %4018 = vmatpush3.bf16.msra.mxu0 %v4017_v28 }
 0x941   : > { %4025 = vmatprep.subr.bf16.mxu0 %v5112_v0 }
 0x993   : > { %v2366_v39 = vpop.f32.mrb[10].mxu0 }
 0x994   : > { %v3878_v40 = vpop.f32.mrb[11].mxu0  ;;  %v2370_v41 = vsel %vm1269_vm2, %v2366_v39, -inf }
 0x995   : > { %2371 = vmax.xlane.f32.xlu0 %v2370_v41 }
 0xa06   : > { %v2529_v42 = vpop.f32.mrb[12].mxu0 }
 0xa07   : > { %v3888_v43 = vpop.f32.mrb[13].mxu0  ;;  %v2533_v44 = vsel %vm1269_vm2, %v2529_v42, -inf }
 0xa08   : > { %2534 = vmax.xlane.f32.xlu1 %v2533_v44  ;;  %v3071_v43 = vld [vmem:[#allocation32] sm:$0xff]  ;;  %v3072_v44 = vld [vmem:[#allocation32 + $0x8] sm:$0xff] }
 0xa0a   : > { %v2700_v45 = vpop.f32.mrb[14].mxu0 }
 0xa0b   : > { %v3898_v46 = vpop.f32.mrb[15].mxu0  ;;  %v2704_v47 = vsel %vm1269_vm2, %v2700_v45, -inf }
 0xa0c   : > { %2705 = vmax.xlane.f32.xlu0 %v2704_v47  ;;  %v4020_v46 = vpack.c.bf16 %v3072_v44, %v3071_v43  ;;  %v3074_v47 = vld [vmem:[#allocation32 + $0x18] sm:$0xff] }
 0xa0e   : > { %v2870_v48 = vpop.f32.mrb[16].mxu0 }
 0xa0f   : > { %v3908_v49 = vpop.f32.mrb[17].mxu0  ;;  %v2874_v50 = vsel %vm1269_vm2, %v2870_v48, -inf }
 0xa10   : > { %2875 = vmax.xlane.f32.xlu0 %v2874_v50  ;;  %v3164_v49 = vld [vmem:[#allocation35] sm:$0xff]  ;;  %v3165_v50 = vld [vmem:[#allocation35 + $0x8] sm:$0xff] }
 0xa19   : > { %2883 = vrot.lane.b32.xlu1 %v2291_v32, %s5117_s21 }
 0xa22   : > { %v2372_v51 = vpop.xlane.xlu0 %2371 }
 0xa23   : > { %v2373_v52 = vsub.f32 %v2366_v39, %v2372_v51  ;;  %v4026_v51 = vpack.c.bf16 %v3165_v50, %v3164_v49 }
 0xa25   : > { %v2374_v53 = vmul.f32 1.442695, %v2373_v52  ;;  %v3651_v52 = vld [vmem:[#allocation29] ss:$0 sm:$0xff] }
 0xa26   : > { %2713 = vrot.lane.b32.xlu0 %v2291_v32, %s5115_s26  ;;  %s4978_s26 = scalar_lea.vmem %s4977_s25, 256 }
 0xa27   : > { %4332 = vpow2.f32 %v2374_v53  ;;  %p4980_p6 = scmp.lt.s32.totalorder %s4978_s26, %s4972_s1 }
 0xa29   : > { %p4981_p2 = por %p4980_p6, %p4979_p9 }
 0xa2b   : > { %p4982_p8 = pnand %p4981_p2, %p4975_p11 }
 0xa31   : > { %v4333_v55 = vpop.eup %4332 }
 0xa32   : > { %3882 = vmatmul.mubr.msk.f32.vlgmr.msra.gmra.mrb[20].mxu1 %vm1269_vm2, %v4333_v55  ;;  %v2376_v11 = vsel %vm1269_vm2, %v4333_v55, 0.0  ;;  %v3653_v55 = vld [vmem:[#allocation30 + $0x2] ss:$0 sm:$0xff] }
 0xa33   : > { %3890 = vmatpush3.msra.mxu1 %v2544_v54  ;;  %3891 = vmatprep.mubr.msk.f32.mxu1 %vm5113_vm0, %v5114_v1 }
 0xa34   : > { %3899 = vmatprep.subr.mxu1 %v5114_v1 }
 0xa95   : > { %v2535_v56 = vpop.xlane.xlu1 %2534 }
 0xa96   : > { %v2536_v57 = vsub.f32 %v2529_v42, %v2535_v56 }
 0xa98   : > { %v2537_v58 = vmul.f32 1.442695, %v2536_v57 }
 0xa99   : > { %v2706_v59 = vpop.xlane.xlu0 %2705  ;;  %v2884_v7 = vpop.permute.xlu1 %2883 }
 0xa9a   : > { %4334 = vpow2.f32 %v2537_v58  ;;  %v2707_v60 = vsub.f32 %v2700_v45, %v2706_v59  ;;  %v3073_v45 = vld [vmem:[#allocation32 + $0x10] sm:$0xff]  ;;  %v3654_v58 = vld [vmem:[#allocation30] ss:$0 sm:$0xff] }
 0xa9c   : > { %v2708_v61 = vmul.f32 1.442695, %v2707_v60  ;;  %v3655_v60 = vld [vmem:[#allocation30 + $0x1] ss:$0 sm:$0xff] }
 0xa9d   : > { %v2876_v62 = vpop.xlane.xlu0 %2875 }
 0xa9e   : > { %4336 = vpow2.f32 %v2708_v61  ;;  %v2877_v63 = vsub.f32 %v2870_v48, %v2876_v62  ;;  %v4023_v48 = vpack.c.bf16 %v3074_v47, %v3073_v45 }
 0xaa0   : > { %v2878_v2 = vmul.f32 1.442695, %v2877_v63  ;;  %v3166_v63 = vld [vmem:[#allocation35 + $0x10] sm:$0xff] }
 0xaa1   : > { %v2714_v4 = vpop.permute.xlu0 %2713 }
 0xaa2   : > { %4338 = vpow2.f32 %v2878_v2  ;;  %v3167_v2 = vld [vmem:[#allocation35 + $0x18] sm:$0xff] }
 0xaa4   : > { %v4335_v3 = vpop.eup %4334 }
 0xaa5   : > { %3892 = vmatmul.mubr.msk.f32.vlgmr.msra.gmra.mrb[22].mxu1 %vm1269_vm2, %v4335_v3  ;;  %v2539_v5 = vsel %vm1269_vm2, %v4335_v3, 0.0  ;;  %v4029_v3 = vpack.c.bf16 %v3167_v2, %v3166_v63 }
 0xaa6   : > { %3900 = vmatpush3.msra.mxu1 %v2714_v4  ;;  %2540 = vadd.xlane.f32.xlu1 %v2539_v5  ;;  %v3168_v4 = vld [vmem:[#allocation35 + $0x20] sm:$0xff]  ;;  %v3169_v5 = vld [vmem:[#allocation35 + $0x28] sm:$0xff] }
 0xaa7   : > { %3901 = vmatprep.mubr.msk.f32.mxu1 %vm5113_vm0, %v5114_v1  ;;  %3909 = vmatprep.subr.mxu1 %v5114_v1 }
 0xaa8   : > { %v4337_v6 = vpop.eup %4336 }
 0xaa9   : > { %3902 = vmatmul.mubr.msk.f32.vlgmr.msra.gmra.mrb[24].mxu1 %vm1269_vm2, %v4337_v6  ;;  %v2710_v10 = vsel %vm1269_vm2, %v4337_v6, 0.0  ;;  %v3170_v6 = vld [vmem:[#allocation35 + $0x30] sm:$0xff] }
 0xaaa   : > { %3910 = vmatpush3.msra.mxu1 %v2884_v7  ;;  %2711 = vadd.xlane.f32.xlu0 %v2710_v10  ;;  %v3171_v7 = vld [vmem:[#allocation35 + $0x38] sm:$0xff] }
 0xaab   : > { %2377 = vadd.xlane.f32.xlu1 %v2376_v11  ;;  %3911 = vmatprep.mubr.msk.f32.mxu1 %vm5113_vm0, %v5114_v1  ;;  %v4035_v10 = vpack.c.bf16 %v3171_v7, %v3170_v6  ;;  %v3172_v11 = vld [vmem:[#allocation35 + $0x40] sm:$0xff] }
 0xaac   : > { %v4339_v12 = vpop.eup %4338  ;;  %4019 = vmatprep.subr.bf16.mxu1 %v5112_v0 }
 0xaad   : > { %3912 = vmatmul.mubr.msk.f32.vlgmr.msra.gmra.mrb[26].mxu1 %vm1269_vm2, %v4339_v12  ;;  %v2880_v13 = vsel %vm1269_vm2, %v4339_v12, 0.0  ;;  %v3173_v12 = vld [vmem:[#allocation35 + $0x48] sm:$0xff] }
 0xaae   : > { %2881 = vadd.xlane.f32.xlu0 %v2880_v13  ;;  %3933 = vmatprep.mubr.msk.f32.mxu1 %vm5113_vm0, %v5114_v1  ;;  %v4038_v13 = vpack.c.bf16 %v3173_v12, %v3172_v11 }
 0xaaf   : > { %4021 = vmatpush3.bf16.msra.mxu1 %v4020_v46 }
 0xab0   : > { %4022 = vmatprep.subr.bf16.mxu1 %v5112_v0 }
 0xab3   : > { %4024 = vmatpush3.bf16.msra.mxu1 %v4023_v48 }
 0xb05   : > { %v2448_v14 = vpop.f32.mrb[20].mxu1 }
 0xb06   : > { %v3883_v15 = vpop.f32.mrb[21].mxu1 }
 0xb07   : > { %v3175_v15 = vld [vmem:[#allocation35 + $0x58] sm:$0xff] }
 0xb33   : > { %v2541_v16 = vpop.xlane.xlu1 %2540 }
 0xb37   : > { %v2712_v9 = vpop.xlane.xlu0 %2711 }
 0xb38   : > { %v2378_v17 = vpop.xlane.xlu1 %2377 }
 0xb39   : > { %4340 = vrcp.f32 %v2378_v17  ;;  %v3176_v17 = vld [vmem:[#allocation35 + $0x60] sm:$0xff] }
 0xb3a   : > { %4342 = vrcp.f32 %v2541_v16 }
 0xb3b   : > { %4344 = vrcp.f32 %v2712_v9  ;;  %v2882_v20 = vpop.xlane.xlu0 %2881  ;;  %v3178_v9 = vld [vmem:[#allocation35 + $0x70] sm:$0xff] }
 0xb3c   : > { %4346 = vrcp.f32 %v2882_v20  ;;  %v3179_v20 = vld [vmem:[#allocation35 + $0x78] sm:$0xff] }
 0xb3d   : > { %v4047_v21 = vpack.c.bf16 %v3179_v20, %v3178_v9 }
 0xb43   : > { %v4341_v18 = vpop.eup %4340 }
 0xb44   : > { %v2453_v19 = vmul.f32 %v4341_v18, %v2448_v14  ;;  %v4343_v26 = vpop.eup %4342  ;;  %v3174_v14 = vld [vmem:[#allocation35 + $0x50] sm:$0xff]  ;;  %v3177_v18 = vld [vmem:[#allocation35 + $0x68] sm:$0xff] }
 0xb45   : > { %v4345_v31 = vpop.eup %4344  ;;  %v4041_v16 = vpack.c.bf16 %v3175_v15, %v3174_v14 }
 0xb46   : > { %2454 = vst.msk [vmem:[#allocation2] sm:$0xff] %vm1269_vm2, %v2453_v19  ;;  %v4347_v35 = vpop.eup %4346  ;;  %v4044_v19 = vpack.c.bf16 %v3177_v18, %v3176_v17 }
 0xb78   : > { %v2615_v27 = vpop.f32.mrb[22].mxu1 }
 0xb79   : > { %v2620_v29 = vmul.f32 %v4343_v26, %v2615_v27  ;;  %v3893_v30 = vpop.f32.mrb[23].mxu1 }
 0xb7b   : > { %2622 = vrot.lane.b32.xlu0 %v2620_v29, %s5118_s15 }
 0xb7c   : > { %v2785_v32 = vpop.f32.mrb[24].mxu1 }
 0xb7d   : > { %v2790_v33 = vmul.f32 %v4345_v31, %v2785_v32  ;;  %v3903_v34 = vpop.f32.mrb[25].mxu1 }
 0xb7f   : > { %2792 = vrot.lane.b32.xlu1 %v2790_v33, %s5119_s12 }
 0xb80   : > { %v2955_v36 = vpop.f32.mrb[26].mxu1 }
 0xb81   : > { %v2960_v37 = vmul.f32 %v4347_v35, %v2955_v36  ;;  %v3913_v38 = vpop.f32.mrb[27].mxu1 }
 0xb83   : > { %2962 = vrot.lane.b32.xlu1 %v2960_v37, %s5120_s8 }
 0xbed   : > { %v2623_v39 = vpop.permute.xlu0 %2622 }
 0xbee   : > { %2625 = vst.msk [vmem:[#allocation2] sm:$0xff] %vm1601_vm3, %v2623_v39 }
 0xbf1   : > { %v2793_v40 = vpop.permute.xlu1 %2792 }
 0xbf2   : > { %2795 = vst.msk [vmem:[#allocation2] sm:$0xff] %vm1772_vm4, %v2793_v40 }
 0xbf5   : > { %v2963_v41 = vpop.permute.xlu1 %2962 }
 0xbf6   : > { %2965 = vst.msk [vmem:[#allocation2] sm:$0xff] %vm1943_vm5, %v2963_v41 }
 0xbfd   : > { %v2966_v42 = vld [vmem:[#allocation2] sm:$0xff] }
 0xbfe   : > { %3923 = vmatmul.mubr.msk.f32.vlgmr.msra.gmra.mrb[18].mxu0 %vm1037_vm1, %v2966_v42 }
 0xbff   : > { %3968 = vmatprep.mubr.msk.f32.mxu0 %vm5113_vm0, %v5114_v1  ;;  %4027 = vmatpush3.bf16.msra.mxu0 %v4026_v51 }
 0xc00   : > { %4028 = vmatprep.subr.bf16.mxu0 %v5112_v0 }
 0xc03   : > { %4030 = vmatpush3.bf16.msra.mxu0 %v4029_v3 }
 0xc04   : > { %4031 = vmatprep.subr.bf16.mxu0 %v5112_v0 }
 0xcd1   : > { %v3047_v53 = vpop.f32.mrb[18].mxu0 }
 0xcd2   : > { %v3048_v54 = vadd.f32 %v3651_v52, %v3047_v53  ;;  %v3924_v1 = vpop.f32.mrb[19].mxu0 }
 0xcd4   : > { %v6036_v56 = vadd.f32 %v3048_v54, %v5957_v8  ;;  %v4032_v8 = vpack.c.bf16 %v3169_v5, %v3168_v4 }
 0xcd6   : > { %v3059_v57 = vmul.f32 %v3653_v55, %v6036_v56  ;;  %4033 = vmatpush3.bf16.msra.mxu0 %v4032_v8 }
 0xcd7   : > { %4034 = vmatprep.subr.bf16.mxu0 %v5112_v0 }
 0xcd8   : > { %4348 = vtanh.f32 %v3059_v57 }
 0xcda   : > { %4036 = vmatpush3.bf16.msra.mxu0 %v4035_v10 }
 0xcdb   : > { %4037 = vmatprep.subr.bf16.mxu0 %v5112_v0 }
 0xcde   : > { %4039 = vmatpush3.bf16.msra.mxu0 %v4038_v13 }
 0xcdf   : > { %4040 = vmatprep.subr.bf16.mxu0 %v5112_v0 }
 0xce2   : > { %v4349_v59 = vpop.eup %4348  ;;  %4042 = vmatpush3.bf16.msra.mxu0 %v4041_v16 }
 0xce3   : > { %v3065_v61 = vmul.f32 %v4349_v59, %v3654_v58  ;;  %4043 = vmatprep.subr.bf16.mxu0 %v5112_v0 }
 0xce5   : > { %v3070_v62 = vadd.f32 %v3655_v60, %v3065_v61 }
 0xce6   : > { %4045 = vmatpush3.bf16.msra.mxu0 %v4044_v19 }
 0xce7   : > { %3934 = vmatmul.mubr.msk.f32.vlgmr.msra.gmra.mrb[28].mxu1 %vm1037_vm1, %v3070_v62  ;;  %4046 = vmatprep.subr.bf16.mxu0 %v5112_v0  ;;  %v3658_v0 = vld [vmem:[#allocation36] ss:$0 sm:$0xff] }
 0xcea   : > { %4048 = vmatpush3.bf16.msra.mxu0 %v4047_v21 }
 0xdba   : > { %v3151_v23 = vpop.f32.mrb[28].mxu1 }
 0xdbb   : > { %v3152_v24 = vadd.f32 %v3656_v22, %v3151_v23  ;;  %v3935_v25 = vpop.f32.mrb[29].mxu1 }
 0xdbd   : > { %v3156_v26 = vmul.f32 0.044715, %v3152_v24  ;;  %v3155_v32 = vmul.f32 0.5, %v3152_v24 }
 0xdbf   : > { %v3157_v27 = vmul.f32 %v3156_v26, %v3152_v24 }
 0xdc1   : > { %v3158_v28 = vmul.f32 %v3157_v27, %v3152_v24 }
 0xdc3   : > { %v3159_v29 = vadd.f32 %v3158_v28, %v3152_v24 }
 0xdc5   : > { %v3160_v30 = vmul.f32 0.7978846, %v3159_v29 }
 0xdc7   : > { %4350 = vtanh.f32 %v3160_v30 }
 0xdd1   : > { %v4351_v31 = vpop.eup %4350 }
 0xdd2   : > { %v3162_v33 = vadd.f32 1.0, %v4351_v31 }
 0xdd4   : > { %v3163_v34 = vmul.f32 %v3162_v33, %v3155_v32 }
 0xdd6   : > { %3969 = vmatmul.mubr.f32.vlgmr.msra.gmra.mrb[20].mxu0 %v3163_v34 }
 0xea9   : > { %v3253_v35 = vpop.f32.mrb[20].mxu0 }
 0xeaa   : > { %v3254_v36 = vadd.f32 %v3658_v0, %v3253_v35  ;;  %v3970_v37 = vpop.f32.mrb[21].mxu0 }
 0xeac   : > { %v3257_v38 = vadd.f32 %v3254_v36, %v6036_v56 }
 0xeae   : > { %3258 = vst.msk [vmem:[%s1005_s4] sm:$0xff] %vm1037_vm1, %v3257_v38 }
 0xeaf   : > { %4985 = shalt.err (!%p4982_p8)
}
 0xeb0   : > { %s4986_s13 = scalar_lea.hbm %s6052_s24, 128  ;;  %s4990_s15 = scalar_lea.hbm %s6235_s0, 256 }
 0xeb1   : > { %p4987_p12 = scmp.ne.s32.totalorder %s6052_s24, %s4986_s13  ;;  %p4991_p4 = scmp.lt.u32.totalorder %s6052_s24, %s6235_s0 }
 0xeb2   : > { %p4992_p1 = scmp.lt.u32.totalorder %s4990_s15, %s4986_s13  ;;  %p4994_p13 = scmp.lt.u32.totalorder %s4986_s13, %s6052_s24 }
 0xeb3   : > { %p4988_p5 = pnand %p4987_p12, %p6236_p0 }
 0xeb4   : > { %p4993_p3 = por %p4992_p1, %p4991_p4 }
 0xeb5   : > { %p4989_p7 = pneg %p4988_p5 }
 0xeb6   : > { %p4995_p10 = por %p4994_p13, %p4993_p3 }
 0xeb8   : > { %p4996_p11 = pnand %p4995_p10, %p4989_p7 }
 0xeba   : > { %4999 = shalt.err (!%p4996_p11)
}
 0xebb   : > { %4133 = dma.vmem_to_hbm [thread:$0]  (%p6236_p0), %s6054_s7, 128, %s6052_s24, %s3260_s14  }
 0xebc PF: > { %s6237_s27 = sld [smem:[#allocation53_spill]]  ;;  %s6238_s4 = sld [smem:[#allocation56_spill]] }
 0xebd   : > { %p6239_p9 = scmp.ne.s32.totalorder %s6204_s29, 0 }
 0xec2   : > { %s3285_s5 = sand.u32 1, %s6237_s27   ;;  %p6240_p6 = scmp.ge.s32.totalorder %s6238_s4, 2 }
 0xec3   : > { %s3286_s10 = scalar_lea.sflag [#allocation5], %s3285_s5 }
 0xec4   : > { %p4204_p2 = pnand %p6240_p6, %p6239_p9 }
 0xec6   : > { %5069 = dma.done.wait (!%p4204_p2), %s3286_s10, 128  }
 0xec7   : > { %5071 = vsyncadd (!%p4204_p2), %s3286_s10, 4294967168  ;;  %s6241_s1 = sld [smem:[#allocation54_spill]]  ;;  %s6242_s28 = sld [smem:[#allocation55_spill]] }
 0xec8   : > { %s6243_s9 = smov %s5699_s3  ;;  %p48_p8 = scmp.ge.s32.totalorder %s5688_s30, 4  }
 0xec9   : > { %s6245_s29 = smov %s6243_s9 }
 0xeca   :  { %50 = sbr.rel (!%p48_p8) target bundleno = 38 (0x26), region = 246 }
 0xecd   : > { %s6244_s3 = smov %s6241_s1 }
 0xed1   :  { %3291 = vsyncpa [#allocation4], 1 }
 0xed2   :  { %3293 = vsyncpa [#allocation4 + $0x1], 1 }
 0xed3   :  { %3294 = vsyncpa [#allocation7], 1 }
 0xed4   :  { %3296 = vsyncpa [#allocation7 + $0x1], 1 }
 0xed5   :  { %3297 = vsyncpa [#allocation10], 1 }
 0xed6   :  { %3298 = vsyncpa [#allocation13], 1 }
 0xed7   :  { %3299 = vsyncpa [#allocation16], 1 }
 0xed8   :  { %3300 = vsyncpa [#allocation19], 1 }
 0xed9   :  { %3301 = vsyncpa [#allocation22], 1 }
 0xeda   :  { %3302 = vsyncpa [#allocation25], 1 }
 0xedb   :  { %3303 = vsyncpa [#allocation28], 1 }
 0xedc   :  { %3304 = vsyncpa [#allocation31], 1 }
 0xedd   :  { %3305 = vsyncpa [#allocation34], 1 }
 0xede   :  { %3306 = vsyncpa [#allocation37], 1 }
 0xedf   :  { %3307 = vsyncpa [#allocation5], 1 }
 0xee0   :  { %3309 = vsyncpa [#allocation5 + $0x1], 1 }

</bundles_post_ra>
